<compile_context>
chip_gen: v5e
topology: v5e:2x2
jax: 0.10.0
libtpu: 0.0.40
codegen_flags: <defaults>
</compile_context>

<pallas_src>
import jax
import jax.numpy as jnp
from jax.experimental import pallas as pl
from jax.experimental.pallas import tpu as pltpu

EPS = 1e-5                      # PyTorch BatchNorm2d default eps
LANES = 128                     # channel padding granularity (lane width)
TM = 256                        # M rows per grid step (multiple of 8)
COMPUTE_DTYPE = jnp.bfloat16    # MXU input dtype (accumulate in f32)
VMEM_LIMIT = 32 * 1024 * 1024   # fits v7x 64MiB physical; raises v5e 16MiB default


def _round_up(x, m):
    return (x + m - 1) // m * m


def _compiler_params():
    return pltpu.CompilerParams(
        dimension_semantics=("parallel",),  # M tiles independent (stats are per-tile)
        vmem_limit_bytes=VMEM_LIMIT,
    )


def _row_spec(tm, c):
    return pl.BlockSpec((tm, c), lambda i: (i, 0))


def _fixed_spec(r, c):
    return pl.BlockSpec((r, c), lambda i: (0, 0))


# ---------------------------------------------------------------------------
# Pallas kernels
# ---------------------------------------------------------------------------
def _conv_stats_kernel(p_ref, w_ref, y_ref, stat_ref):
    """One M-tile: raw conv matmul + per-tile (sum, sum_sq) BN partials."""
    acc = jnp.dot(p_ref[...], w_ref[...], preferred_element_type=jnp.float32)
    y_ref[...] = acc.astype(y_ref.dtype)
    stat_ref[...] = jnp.concatenate(
        [jnp.sum(acc, axis=0, keepdims=True),
         jnp.sum(acc * acc, axis=0, keepdims=True)], axis=0)[None]


def _conv_shortcut_stats_kernel(p_ref, w_ref, ps_ref, ws_ref,
                                y_ref, s_ref, stat_ref):
    """conv1 tile fused with the 1x1 stride-2 shortcut tile (+ both stats)."""
    acc = jnp.dot(p_ref[...], w_ref[...], preferred_element_type=jnp.float32)
    sac = jnp.dot(ps_ref[...], ws_ref[...], preferred_element_type=jnp.float32)
    y_ref[...] = acc.astype(y_ref.dtype)
    s_ref[...] = sac.astype(s_ref.dtype)
    stat_ref[...] = jnp.concatenate(
        [jnp.sum(acc, axis=0, keepdims=True),
         jnp.sum(acc * acc, axis=0, keepdims=True),
         jnp.sum(sac, axis=0, keepdims=True),
         jnp.sum(sac * sac, axis=0, keepdims=True)], axis=0)[None]


def _bn_relu_kernel(y_ref, scale_ref, shift_ref, o_ref):
    """Apply folded BN (scale/shift) + ReLU on one M-tile."""
    y = y_ref[...].astype(jnp.float32) * scale_ref[...] + shift_ref[...]
    o_ref[...] = jnp.maximum(y, 0.0).astype(o_ref.dtype)


def _bn_add_relu_kernel(y_ref, r_ref, sc_ref, sh_ref, rsc_ref, rsh_ref, o_ref):
    """Final: BN(conv2) + BN(shortcut)/identity residual + add + ReLU."""
    y = y_ref[...].astype(jnp.float32) * sc_ref[...] + sh_ref[...]
    r = r_ref[...].astype(jnp.float32) * rsc_ref[...] + rsh_ref[...]
    o_ref[...] = jnp.maximum(y + r, 0.0).astype(o_ref.dtype)


# ---------------------------------------------------------------------------
# pallas_call wrappers (tiled over M)
# ---------------------------------------------------------------------------
def _conv_pass(p, w, tm):
    m_pad, k = p.shape
    cpad = w.shape[1]
    grid_m = m_pad // tm
    return pl.pallas_call(
        _conv_stats_kernel,
        grid=(grid_m,),
        in_specs=[_row_spec(tm, k), _fixed_spec(k, cpad)],
        out_specs=[_row_spec(tm, cpad),
                   pl.BlockSpec((1, 2, cpad), lambda i: (i, 0, 0))],
        out_shape=[jax.ShapeDtypeStruct((m_pad, cpad), COMPUTE_DTYPE),
                   jax.ShapeDtypeStruct((grid_m, 2, cpad), jnp.float32)],
        compiler_params=_compiler_params(),
    )(p, w)


def _conv_shortcut_pass(p, w, ps, ws, tm):
    m_pad, k = p.shape
    ks = ps.shape[1]
    cpad = w.shape[1]
    grid_m = m_pad // tm
    return pl.pallas_call(
        _conv_shortcut_stats_kernel,
        grid=(grid_m,),
        in_specs=[_row_spec(tm, k), _fixed_spec(k, cpad),
                  _row_spec(tm, ks), _fixed_spec(ks, cpad)],
        out_specs=[_row_spec(tm, cpad), _row_spec(tm, cpad),
                   pl.BlockSpec((1, 4, cpad), lambda i: (i, 0, 0))],
        out_shape=[jax.ShapeDtypeStruct((m_pad, cpad), COMPUTE_DTYPE),
                   jax.ShapeDtypeStruct((m_pad, cpad), COMPUTE_DTYPE),
                   jax.ShapeDtypeStruct((grid_m, 4, cpad), jnp.float32)],
        compiler_params=_compiler_params(),
    )(p, w, ps, ws)


def _bn_relu_pass(y, scale, shift, tm, out_dtype):
    m_pad, cpad = y.shape
    return pl.pallas_call(
        _bn_relu_kernel,
        grid=(m_pad // tm,),
        in_specs=[_row_spec(tm, cpad), _fixed_spec(1, cpad), _fixed_spec(1, cpad)],
        out_specs=_row_spec(tm, cpad),
        out_shape=jax.ShapeDtypeStruct((m_pad, cpad), out_dtype),
        compiler_params=_compiler_params(),
    )(y, scale, shift)


def _bn_add_relu_pass(y, r, scale, shift, rscale, rshift, tm, out_dtype):
    m_pad, cpad = y.shape
    return pl.pallas_call(
        _bn_add_relu_kernel,
        grid=(m_pad // tm,),
        in_specs=[_row_spec(tm, cpad), _row_spec(tm, cpad),
                  _fixed_spec(1, cpad), _fixed_spec(1, cpad),
                  _fixed_spec(1, cpad), _fixed_spec(1, cpad)],
        out_specs=_row_spec(tm, cpad),
        out_shape=jax.ShapeDtypeStruct((m_pad, cpad), out_dtype),
        compiler_params=_compiler_params(),
    )(y, r, scale, shift, rscale, rshift)


# ---------------------------------------------------------------------------
# JAX glue: im2col, padding, BN folding (pure data movement / tiny scalars)
# ---------------------------------------------------------------------------
def _im2col(x, kh, kw, stride, pad):
    """Patch matrix (N*Ho*Wo, kh*kw*C) from NHWC. Pure data movement."""
    n, h, w, c = x.shape
    xp = jnp.pad(x, ((0, 0), (pad, pad), (pad, pad), (0, 0)))
    ho = (h + 2 * pad - kh) // stride + 1
    wo = (w + 2 * pad - kw) // stride + 1
    cols = []
    for i in range(kh):
        for j in range(kw):
            cols.append(xp[:, i:i + stride * ho:stride, j:j + stride * wo:stride, :])
    p = jnp.stack(cols, axis=3).reshape(n * ho * wo, kh * kw * c)
    return p, (n, ho, wo)


def _pad_rows(a, m_pad):
    return jnp.pad(a, ((0, m_pad - a.shape[0]), (0, 0)))


def _pad_weight(w_hwio, cin_pad, cout_pad):
    kh, kw, cin, cout = w_hwio.shape
    w = jnp.pad(w_hwio, ((0, 0), (0, 0), (0, cin_pad - cin), (0, cout_pad - cout)))
    return w.reshape(kh * kw * cin_pad, cout_pad).astype(COMPUTE_DTYPE)


def _pad_vec(v, cpad, fill):
    v = jnp.asarray(v, jnp.float32).reshape(-1)
    return jnp.pad(v, (0, cpad - v.shape[0]), constant_values=fill)


def _fold_bn(sum_, sumsq, gamma, beta, m_true):
    """Training-mode batch stats -> per-channel (scale, shift). Zero-padded
    rows contribute 0 to both sums, so dividing by the true M is exact."""
    mean = sum_ / m_true
    var = sumsq / m_true - mean * mean        # biased variance (PyTorch fwd)
    scale = gamma * jax.lax.rsqrt(var + EPS)
    shift = beta - mean * scale
    return (scale.reshape(1, -1).astype(jnp.float32),
            shift.reshape(1, -1).astype(jnp.float32))


# ---------------------------------------------------------------------------
# BasiclBlock forward
# ---------------------------------------------------------------------------
def basic_block_forward(x_nchw, params, in_channels, out_channels, tm=TM):
    x = jnp.transpose(x_nchw, (0, 2, 3, 1)).astype(jnp.float32)   # NCHW -> NHWC
    out_dtype = x_nchw.dtype
    downsample = in_channels != out_channels
    stride = 2 if downsample else 1
    cpad = _round_up(out_channels, LANES)

    # conv1 im2col patches (lane/row padded, bf16 for the MXU)
    p1, (n, ho, wo) = _im2col(x, 3, 3, stride, 1)
    m = n * ho * wo
    m_pad = _round_up(m, tm)
    p1 = _pad_rows(p1.astype(COMPUTE_DTYPE), m_pad)

    w1 = _pad_weight(params["w1"], in_channels, cpad)
    w2 = _pad_weight(params["w2"], cpad, cpad)
    g1 = _pad_vec(params["g1"], cpad, 1.0)
    b1 = _pad_vec(params["b1"], cpad, 0.0)
    g2 = _pad_vec(params["g2"], cpad, 1.0)
    b2 = _pad_vec(params["b2"], cpad, 0.0)

    if downsample:
        # 1x1 stride-2 shortcut fused into the conv1 pass.
        ps = x[:, ::stride, ::stride, :].reshape(m, in_channels)
        ps = _pad_rows(ps.astype(COMPUTE_DTYPE), m_pad)
        ws = _pad_weight(params["ws"], in_channels, cpad)
        y1_raw, sc_raw, stats = _conv_shortcut_pass(p1, w1, ps, ws, tm)
        s = jnp.sum(stats, axis=0)                          # (4, cpad)
        scale1, shift1 = _fold_bn(s[0], s[1], g1, b1, m)
        gs = _pad_vec(params["gs"], cpad, 1.0)
        bs = _pad_vec(params["bs"], cpad, 0.0)
        rscale, rshift = _fold_bn(s[2], s[3], gs, bs, m)
        residual = sc_raw
    else:
        y1_raw, stats = _conv_pass(p1, w1, tm)
        s = jnp.sum(stats, axis=0)                          # (2, cpad)
        scale1, shift1 = _fold_bn(s[0], s[1], g1, b1, m)
        residual = _pad_rows(
            jnp.pad(x.reshape(m, in_channels),
                    ((0, 0), (0, cpad - in_channels))), m_pad)
        rscale = jnp.ones((1, cpad), jnp.float32)
        rshift = jnp.zeros((1, cpad), jnp.float32)

    # BN1 + ReLU (folded scale/shift), bf16 output feeds the conv2 matmul.
    y1 = _bn_relu_pass(y1_raw, scale1, shift1, tm, COMPUTE_DTYPE)

    # conv2 (3x3, stride 1) on the normalized activation.
    p2, _ = _im2col(y1[:m].reshape(n, ho, wo, cpad), 3, 3, 1, 1)
    p2 = _pad_rows(p2, m_pad)
    y2_raw, stats2 = _conv_pass(p2, w2, tm)
    s2 = jnp.sum(stats2, axis=0)
    scale2, shift2 = _fold_bn(s2[0], s2[1], g2, b2, m)

    # BN2 + shortcut-BN/identity + residual add + final ReLU (fused).
    out = _bn_add_relu_pass(y2_raw, residual, scale2, shift2,
                            rscale, rshift, tm, out_dtype)
    out = out[:m, :out_channels].reshape(n, ho, wo, out_channels)
    return jnp.transpose(out, (0, 3, 1, 2))                 # NHWC -> NCHW


# ---------------------------------------------------------------------------
# Pure-JAX reference (for a loose numerical self-check)
# ---------------------------------------------------------------------------
def _reference_block(x_nchw, params, cin, cout):
    x = jnp.transpose(x_nchw, (0, 2, 3, 1)).astype(jnp.float32)
    stride = 2 if cin != cout else 1
    dn = ("NHWC", "HWIO", "NHWC")

    def conv(v, w, s, pad):
        return jax.lax.conv_general_dilated(v, w, (s, s), pad,
                                            dimension_numbers=dn)

    def bn(v, g, b):
        mean = jnp.mean(v, axis=(0, 1, 2))
        var = jnp.mean((v - mean) ** 2, axis=(0, 1, 2))
        return (v - mean) * jax.lax.rsqrt(var + EPS) * g + b

    y = jax.nn.relu(bn(conv(x, params["w1"], stride, [(1, 1), (1, 1)]),
                       params["g1"], params["b1"]))
    y = bn(conv(y, params["w2"], 1, [(1, 1), (1, 1)]), params["g2"], params["b2"])
    if cin != cout:
        r = bn(conv(x, params["ws"], stride, [(0, 0), (0, 0)]),
               params["gs"], params["bs"])
    else:
        r = x
    return jnp.transpose(jax.nn.relu(y + r), (0, 3, 1, 2))


# ---------------------------------------------------------------------------
# Deterministic synthetic parameters (shapes follow the nn.Module __init__)
# ---------------------------------------------------------------------------
def init_params(key, cin, cout, dtype=jnp.float32):
    ks = jax.random.split(key, 3)
    p = {
        # conv weights stored HWIO (synthetic values; PyTorch stores OIHW)
        "w1": jax.random.normal(ks[0], (3, 3, cin, cout), dtype) * 0.1,
        "g1": jnp.ones((cout,), dtype),
        "b1": jnp.zeros((cout,), dtype),
        "w2": jax.random.normal(ks[1], (3, 3, cout, cout), dtype) * 0.1,
        "g2": jnp.full((cout,), 1.5, dtype),
        "b2": jnp.full((cout,), 0.1, dtype),
    }
    if cin != cout:
        p["ws"] = jax.random.normal(ks[2], (1, 1, cin, cout), dtype) * 0.1
        p["gs"] = jnp.ones((cout,), dtype)
        p["bs"] = jnp.zeros((cout,), dtype)
    return p


if __name__ == "__main__":
    key = jax.random.PRNGKey(0)
    kx, kpa, kpb = jax.random.split(key, 3)
    x = jax.random.normal(kx, (2, 4, 16, 16), jnp.float32)   # NCHW, like PyTorch

    # Downsampling block (in != out channels): stride-2 conv + 1x1 shortcut.
    params_a = init_params(kpa, 4, 8)
    fwd_a = jax.jit(lambda xv, pv: basic_block_forward(xv, pv, 4, 8))
    out_a = fwd_a(x, params_a)
    jax.block_until_ready(out_a)
    assert out_a.shape == (2, 8, 8, 8), out_a.shape
    assert bool(jnp.all(out_a >= 0.0))                       # final ReLU
    ref_a = _reference_block(x, params_a, 4, 8)
    assert float(jnp.max(jnp.abs(out_a - ref_a))) < 0.3      # bf16 MXU tolerance

    # Identity block (in == out channels): stride-1, identity shortcut.
    params_b = init_params(kpb, 4, 4)
    fwd_b = jax.jit(lambda xv, pv: basic_block_forward(xv, pv, 4, 4))
    out_b = fwd_b(x, params_b)
    jax.block_until_ready(out_b)
    assert out_b.shape == (2, 4, 16, 16), out_b.shape
    assert bool(jnp.all(out_b >= 0.0))
    ref_b = _reference_block(x, params_b, 4, 4)
    assert float(jnp.max(jnp.abs(out_b - ref_b))) < 0.3

    print("KERNEL_OK")
</pallas_src>

<mosaic_0001>
module attributes {stable_mosaic.version = 11 : i64} {
  func.func @_conv_shortcut_stats_kernel(%arg0: i32, %arg1: memref<256x36xbf16, #tpu.memory_space<vmem>>, %arg2: memref<36x128xbf16, #tpu.memory_space<vmem>>, %arg3: memref<256x4xbf16, #tpu.memory_space<vmem>>, %arg4: memref<4x128xbf16, #tpu.memory_space<vmem>>, %arg5: memref<256x128xbf16, #tpu.memory_space<vmem>>, %arg6: memref<256x128xbf16, #tpu.memory_space<vmem>>, %arg7: memref<1x4x128xf32, #tpu.memory_space<vmem>>) attributes {dimension_semantics = [#tpu.dimension_semantics<parallel>], iteration_bounds = array<i64: 1>, scalar_prefetch = 0 : i64, scratch_operands = 0 : i64, tpu.core_type = #tpu.core_type<tc>, window_params = [{transform_indices = @transform_0, window_bounds = array<i64: 256, 36>}, {pipeline_mode = #tpu.pipeline_mode<synchronous>, transform_indices = @transform_1, window_bounds = array<i64: 36, 128>}, {transform_indices = @transform_2, window_bounds = array<i64: 256, 4>}, {pipeline_mode = #tpu.pipeline_mode<synchronous>, transform_indices = @transform_3, window_bounds = array<i64: 4, 128>}, {transform_indices = @transform_4, window_bounds = array<i64: 256, 128>}, {transform_indices = @transform_5, window_bounds = array<i64: 256, 128>}, {transform_indices = @transform_6, window_bounds = array<i64: 1, 4, 128>}]} {
    %c0 = arith.constant 0 : index
    %c0_0 = arith.constant 0 : index
    %0 = vector.load %arg1[%c0, %c0_0] : memref<256x36xbf16, #tpu.memory_space<vmem>>, vector<256x36xbf16>
    %c0_1 = arith.constant 0 : index
    %c0_2 = arith.constant 0 : index
    %1 = vector.load %arg2[%c0_1, %c0_2] : memref<36x128xbf16, #tpu.memory_space<vmem>>, vector<36x128xbf16>
    %cst = arith.constant dense<0.000000e+00> : vector<256x128xf32>
    %2 = tpu.matmul %0, %1, %cst {dimension_numbers = #tpu.dot_dimension_numbers<[1], [0], [0], [1], [0, 0, 1, 1], [], []>} : vector<256x36xbf16>, vector<36x128xbf16>, vector<256x128xf32> -> vector<256x128xf32>
    %c0_3 = arith.constant 0 : index
    %c0_4 = arith.constant 0 : index
    %3 = vector.load %arg3[%c0_3, %c0_4] : memref<256x4xbf16, #tpu.memory_space<vmem>>, vector<256x4xbf16>
    %c0_5 = arith.constant 0 : index
    %c0_6 = arith.constant 0 : index
    %4 = vector.load %arg4[%c0_5, %c0_6] : memref<4x128xbf16, #tpu.memory_space<vmem>>, vector<4x128xbf16>
    %cst_7 = arith.constant dense<0.000000e+00> : vector<256x128xf32>
    %5 = tpu.matmul %3, %4, %cst_7 {dimension_numbers = #tpu.dot_dimension_numbers<[1], [0], [0], [1], [0, 0, 1, 1], [], []>} : vector<256x4xbf16>, vector<4x128xbf16>, vector<256x128xf32> -> vector<256x128xf32>
    %6 = arith.truncf %2 : vector<256x128xf32> to vector<256x128xbf16>
    %c0_8 = arith.constant 0 : index
    %c0_9 = arith.constant 0 : index
    %7 = vector.load %arg5[%c0_8, %c0_9] : memref<256x128xbf16, #tpu.memory_space<vmem>>, vector<256x128xbf16>
    tpu.vector_store %arg5[%c0_8, %c0_9], %6 {strides = array<i32>} : memref<256x128xbf16, #tpu.memory_space<vmem>>, vector<256x128xbf16>,
    %8 = arith.truncf %5 : vector<256x128xf32> to vector<256x128xbf16>
    %c0_10 = arith.constant 0 : index
    %c0_11 = arith.constant 0 : index
    %9 = vector.load %arg6[%c0_10, %c0_11] : memref<256x128xbf16, #tpu.memory_space<vmem>>, vector<256x128xbf16>
    tpu.vector_store %arg6[%c0_10, %c0_11], %8 {strides = array<i32>} : memref<256x128xbf16, #tpu.memory_space<vmem>>, vector<256x128xbf16>,
    %cst_12 = arith.constant dense<0.000000e+00> : vector<128xf32>
    %10 = vector.multi_reduction <add>, %2, %cst_12 [0] : vector<256x128xf32> to vector<128xf32>
    %11 = vector.shape_cast %10 : vector<128xf32> to vector<1x128xf32>
    %12 = arith.mulf %2, %2 : vector<256x128xf32>
    %cst_13 = arith.constant dense<0.000000e+00> : vector<128xf32>
    %13 = vector.multi_reduction <add>, %12, %cst_13 [0] : vector<256x128xf32> to vector<128xf32>
    %14 = vector.shape_cast %13 : vector<128xf32> to vector<1x128xf32>
    %cst_14 = arith.constant dense<0.000000e+00> : vector<128xf32>
    %15 = vector.multi_reduction <add>, %5, %cst_14 [0] : vector<256x128xf32> to vector<128xf32>
    %16 = vector.shape_cast %15 : vector<128xf32> to vector<1x128xf32>
    %17 = arith.mulf %5, %5 : vector<256x128xf32>
    %cst_15 = arith.constant dense<0.000000e+00> : vector<128xf32>
    %18 = vector.multi_reduction <add>, %17, %cst_15 [0] : vector<256x128xf32> to vector<128xf32>
    %19 = vector.shape_cast %18 : vector<128xf32> to vector<1x128xf32>
    %20 = tpu.concatenate %11, %14, %16, %19 in 0 : vector<1x128xf32>, vector<1x128xf32>, vector<1x128xf32>, vector<1x128xf32> -> vector<4x128xf32>
    %21 = vector.shape_cast %20 : vector<4x128xf32> to vector<1x4x128xf32>
    %c0_16 = arith.constant 0 : index
    %c0_17 = arith.constant 0 : index
    %c0_18 = arith.constant 0 : index
    %22 = vector.load %arg7[%c0_16, %c0_17, %c0_18] : memref<1x4x128xf32, #tpu.memory_space<vmem>>, vector<1x4x128xf32>
    tpu.vector_store %arg7[%c0_16, %c0_17, %c0_18], %21 {strides = array<i32>} : memref<1x4x128xf32, #tpu.memory_space<vmem>>, vector<1x4x128xf32>,
    return
  }
  func.func @transform_0(%arg0: i32) -> (i32, i32) {
    %c0_i32 = arith.constant 0 : i32
    %c0_i32_0 = arith.constant 0 : i32
    return %arg0, %c0_i32 : i32, i32
  }
  func.func @transform_1(%arg0: i32) -> (i32, i32) {
    %c0_i32 = arith.constant 0 : i32
    %c0_i32_0 = arith.constant 0 : i32
    %c0_i32_1 = arith.constant 0 : i32
    return %c0_i32, %c0_i32_0 : i32, i32
  }
  func.func @transform_2(%arg0: i32) -> (i32, i32) {
    %c0_i32 = arith.constant 0 : i32
    %c0_i32_0 = arith.constant 0 : i32
    return %arg0, %c0_i32 : i32, i32
  }
  func.func @transform_3(%arg0: i32) -> (i32, i32) {
    %c0_i32 = arith.constant 0 : i32
    %c0_i32_0 = arith.constant 0 : i32
    %c0_i32_1 = arith.constant 0 : i32
    return %c0_i32, %c0_i32_0 : i32, i32
  }
  func.func @transform_4(%arg0: i32) -> (i32, i32) {
    %c0_i32 = arith.constant 0 : i32
    %c0_i32_0 = arith.constant 0 : i32
    return %arg0, %c0_i32 : i32, i32
  }
  func.func @transform_5(%arg0: i32) -> (i32, i32) {
    %c0_i32 = arith.constant 0 : i32
    %c0_i32_0 = arith.constant 0 : i32
    return %arg0, %c0_i32 : i32, i32
  }
  func.func @transform_6(%arg0: i32) -> (i32, i32, i32) {
    %c0_i32 = arith.constant 0 : i32
    %c0_i32_0 = arith.constant 0 : i32
    %c0_i32_1 = arith.constant 0 : i32
    return %arg0, %c0_i32, %c0_i32_0 : i32, i32, i32
  }
}

module attributes {stable_mosaic.version = 11 : i64} {
  func.func @_bn_relu_kernel(%arg0: i32, %arg1: memref<256x128xbf16, #tpu.memory_space<vmem>>, %arg2: memref<1x128xf32, #tpu.memory_space<vmem>>, %arg3: memref<1x128xf32, #tpu.memory_space<vmem>>, %arg4: memref<256x128xbf16, #tpu.memory_space<vmem>>) attributes {dimension_semantics = [#tpu.dimension_semantics<parallel>], iteration_bounds = array<i64: 1>, scalar_prefetch = 0 : i64, scratch_operands = 0 : i64, tpu.core_type = #tpu.core_type<tc>, window_params = [{transform_indices = @transform_0, window_bounds = array<i64: 256, 128>}, {pipeline_mode = #tpu.pipeline_mode<synchronous>, transform_indices = @transform_1, window_bounds = array<i64: 1, 128>}, {pipeline_mode = #tpu.pipeline_mode<synchronous>, transform_indices = @transform_2, window_bounds = array<i64: 1, 128>}, {transform_indices = @transform_3, window_bounds = array<i64: 256, 128>}]} {
    %c0 = arith.constant 0 : index
    %c0_0 = arith.constant 0 : index
    %0 = vector.load %arg1[%c0, %c0_0] : memref<256x128xbf16, #tpu.memory_space<vmem>>, vector<256x128xbf16>
    %1 = arith.extf %0 : vector<256x128xbf16> to vector<256x128xf32>
    %c0_1 = arith.constant 0 : index
    %c0_2 = arith.constant 0 : index
    %2 = vector.load %arg2[%c0_1, %c0_2] : memref<1x128xf32, #tpu.memory_space<vmem>>, vector<1x128xf32>
    %3 = vector.broadcast %2 : vector<1x128xf32> to vector<256x128xf32>
    %4 = arith.mulf %1, %3 : vector<256x128xf32>
    %c0_3 = arith.constant 0 : index
    %c0_4 = arith.constant 0 : index
    %5 = vector.load %arg3[%c0_3, %c0_4] : memref<1x128xf32, #tpu.memory_space<vmem>>, vector<1x128xf32>
    %6 = vector.broadcast %5 : vector<1x128xf32> to vector<256x128xf32>
    %7 = arith.addf %4, %6 : vector<256x128xf32>
    %cst = arith.constant 0.000000e+00 : f32
    %8 = vector.broadcast %cst : f32 to vector<256x128xf32>
    %9 = arith.maximumf %7, %8 : vector<256x128xf32>
    %10 = arith.truncf %9 : vector<256x128xf32> to vector<256x128xbf16>
    %c0_5 = arith.constant 0 : index
    %c0_6 = arith.constant 0 : index
    %11 = vector.load %arg4[%c0_5, %c0_6] : memref<256x128xbf16, #tpu.memory_space<vmem>>, vector<256x128xbf16>
    tpu.vector_store %arg4[%c0_5, %c0_6], %10 {strides = array<i32>} : memref<256x128xbf16, #tpu.memory_space<vmem>>, vector<256x128xbf16>,
    return
  }
  func.func @transform_0(%arg0: i32) -> (i32, i32) {
    %c0_i32 = arith.constant 0 : i32
    %c0_i32_0 = arith.constant 0 : i32
    return %arg0, %c0_i32 : i32, i32
  }
  func.func @transform_1(%arg0: i32) -> (i32, i32) {
    %c0_i32 = arith.constant 0 : i32
    %c0_i32_0 = arith.constant 0 : i32
    %c0_i32_1 = arith.constant 0 : i32
    return %c0_i32, %c0_i32_0 : i32, i32
  }
  func.func @transform_2(%arg0: i32) -> (i32, i32) {
    %c0_i32 = arith.constant 0 : i32
    %c0_i32_0 = arith.constant 0 : i32
    %c0_i32_1 = arith.constant 0 : i32
    return %c0_i32, %c0_i32_0 : i32, i32
  }
  func.func @transform_3(%arg0: i32) -> (i32, i32) {
    %c0_i32 = arith.constant 0 : i32
    %c0_i32_0 = arith.constant 0 : i32
    return %arg0, %c0_i32 : i32, i32
  }
}

module attributes {stable_mosaic.version = 11 : i64} {
  func.func @_conv_stats_kernel(%arg0: i32, %arg1: memref<256x1152xbf16, #tpu.memory_space<vmem>>, %arg2: memref<1152x128xbf16, #tpu.memory_space<vmem>>, %arg3: memref<256x128xbf16, #tpu.memory_space<vmem>>, %arg4: memref<1x2x128xf32, #tpu.memory_space<vmem>>) attributes {dimension_semantics = [#tpu.dimension_semantics<parallel>], iteration_bounds = array<i64: 1>, scalar_prefetch = 0 : i64, scratch_operands = 0 : i64, tpu.core_type = #tpu.core_type<tc>, window_params = [{transform_indices = @transform_0, window_bounds = array<i64: 256, 1152>}, {pipeline_mode = #tpu.pipeline_mode<synchronous>, transform_indices = @transform_1, window_bounds = array<i64: 1152, 128>}, {transform_indices = @transform_2, window_bounds = array<i64: 256, 128>}, {transform_indices = @transform_3, window_bounds = array<i64: 1, 2, 128>}]} {
    %c0 = arith.constant 0 : index
    %c0_0 = arith.constant 0 : index
    %0 = vector.load %arg1[%c0, %c0_0] : memref<256x1152xbf16, #tpu.memory_space<vmem>>, vector<256x1152xbf16>
    %c0_1 = arith.constant 0 : index
    %c0_2 = arith.constant 0 : index
    %1 = vector.load %arg2[%c0_1, %c0_2] : memref<1152x128xbf16, #tpu.memory_space<vmem>>, vector<1152x128xbf16>
    %cst = arith.constant dense<0.000000e+00> : vector<256x128xf32>
    %2 = tpu.matmul %0, %1, %cst {dimension_numbers = #tpu.dot_dimension_numbers<[1], [0], [0], [1], [0, 0, 1, 1], [], []>} : vector<256x1152xbf16>, vector<1152x128xbf16>, vector<256x128xf32> -> vector<256x128xf32>
    %3 = arith.truncf %2 : vector<256x128xf32> to vector<256x128xbf16>
    %c0_3 = arith.constant 0 : index
    %c0_4 = arith.constant 0 : index
    %4 = vector.load %arg3[%c0_3, %c0_4] : memref<256x128xbf16, #tpu.memory_space<vmem>>, vector<256x128xbf16>
    tpu.vector_store %arg3[%c0_3, %c0_4], %3 {strides = array<i32>} : memref<256x128xbf16, #tpu.memory_space<vmem>>, vector<256x128xbf16>,
    %cst_5 = arith.constant dense<0.000000e+00> : vector<128xf32>
    %5 = vector.multi_reduction <add>, %2, %cst_5 [0] : vector<256x128xf32> to vector<128xf32>
    %6 = vector.shape_cast %5 : vector<128xf32> to vector<1x128xf32>
    %7 = arith.mulf %2, %2 : vector<256x128xf32>
    %cst_6 = arith.constant dense<0.000000e+00> : vector<128xf32>
    %8 = vector.multi_reduction <add>, %7, %cst_6 [0] : vector<256x128xf32> to vector<128xf32>
    %9 = vector.shape_cast %8 : vector<128xf32> to vector<1x128xf32>
    %10 = tpu.concatenate %6, %9 in 0 : vector<1x128xf32>, vector<1x128xf32> -> vector<2x128xf32>
    %11 = vector.shape_cast %10 : vector<2x128xf32> to vector<1x2x128xf32>
    %c0_7 = arith.constant 0 : index
    %c0_8 = arith.constant 0 : index
    %c0_9 = arith.constant 0 : index
    %12 = vector.load %arg4[%c0_7, %c0_8, %c0_9] : memref<1x2x128xf32, #tpu.memory_space<vmem>>, vector<1x2x128xf32>
    tpu.vector_store %arg4[%c0_7, %c0_8, %c0_9], %11 {strides = array<i32>} : memref<1x2x128xf32, #tpu.memory_space<vmem>>, vector<1x2x128xf32>,
    return
  }
  func.func @transform_0(%arg0: i32) -> (i32, i32) {
    %c0_i32 = arith.constant 0 : i32
    %c0_i32_0 = arith.constant 0 : i32
    return %arg0, %c0_i32 : i32, i32
  }
  func.func @transform_1(%arg0: i32) -> (i32, i32) {
    %c0_i32 = arith.constant 0 : i32
    %c0_i32_0 = arith.constant 0 : i32
    %c0_i32_1 = arith.constant 0 : i32
    return %c0_i32, %c0_i32_0 : i32, i32
  }
  func.func @transform_2(%arg0: i32) -> (i32, i32) {
    %c0_i32 = arith.constant 0 : i32
    %c0_i32_0 = arith.constant 0 : i32
    return %arg0, %c0_i32 : i32, i32
  }
  func.func @transform_3(%arg0: i32) -> (i32, i32, i32) {
    %c0_i32 = arith.constant 0 : i32
    %c0_i32_0 = arith.constant 0 : i32
    %c0_i32_1 = arith.constant 0 : i32
    return %arg0, %c0_i32, %c0_i32_0 : i32, i32, i32
  }
}

module attributes {stable_mosaic.version = 11 : i64} {
  func.func @_bn_add_relu_kernel(%arg0: i32, %arg1: memref<256x128xbf16, #tpu.memory_space<vmem>>, %arg2: memref<256x128xbf16, #tpu.memory_space<vmem>>, %arg3: memref<1x128xf32, #tpu.memory_space<vmem>>, %arg4: memref<1x128xf32, #tpu.memory_space<vmem>>, %arg5: memref<1x128xf32, #tpu.memory_space<vmem>>, %arg6: memref<1x128xf32, #tpu.memory_space<vmem>>, %arg7: memref<256x128xf32, #tpu.memory_space<vmem>>) attributes {dimension_semantics = [#tpu.dimension_semantics<parallel>], iteration_bounds = array<i64: 1>, scalar_prefetch = 0 : i64, scratch_operands = 0 : i64, tpu.core_type = #tpu.core_type<tc>, window_params = [{transform_indices = @transform_0, window_bounds = array<i64: 256, 128>}, {transform_indices = @transform_1, window_bounds = array<i64: 256, 128>}, {pipeline_mode = #tpu.pipeline_mode<synchronous>, transform_indices = @transform_2, window_bounds = array<i64: 1, 128>}, {pipeline_mode = #tpu.pipeline_mode<synchronous>, transform_indices = @transform_3, window_bounds = array<i64: 1, 128>}, {pipeline_mode = #tpu.pipeline_mode<synchronous>, transform_indices = @transform_4, window_bounds = array<i64: 1, 128>}, {pipeline_mode = #tpu.pipeline_mode<synchronous>, transform_indices = @transform_5, window_bounds = array<i64: 1, 128>}, {transform_indices = @transform_6, window_bounds = array<i64: 256, 128>}]} {
    %c0 = arith.constant 0 : index
    %c0_0 = arith.constant 0 : index
    %0 = vector.load %arg1[%c0, %c0_0] : memref<256x128xbf16, #tpu.memory_space<vmem>>, vector<256x128xbf16>
    %1 = arith.extf %0 : vector<256x128xbf16> to vector<256x128xf32>
    %c0_1 = arith.constant 0 : index
    %c0_2 = arith.constant 0 : index
    %2 = vector.load %arg3[%c0_1, %c0_2] : memref<1x128xf32, #tpu.memory_space<vmem>>, vector<1x128xf32>
    %3 = vector.broadcast %2 : vector<1x128xf32> to vector<256x128xf32>
    %4 = arith.mulf %1, %3 : vector<256x128xf32>
    %c0_3 = arith.constant 0 : index
    %c0_4 = arith.constant 0 : index
    %5 = vector.load %arg4[%c0_3, %c0_4] : memref<1x128xf32, #tpu.memory_space<vmem>>, vector<1x128xf32>
    %6 = vector.broadcast %5 : vector<1x128xf32> to vector<256x128xf32>
    %7 = arith.addf %4, %6 : vector<256x128xf32>
    %c0_5 = arith.constant 0 : index
    %c0_6 = arith.constant 0 : index
    %8 = vector.load %arg2[%c0_5, %c0_6] : memref<256x128xbf16, #tpu.memory_space<vmem>>, vector<256x128xbf16>
    %9 = arith.extf %8 : vector<256x128xbf16> to vector<256x128xf32>
    %c0_7 = arith.constant 0 : index
    %c0_8 = arith.constant 0 : index
    %10 = vector.load %arg5[%c0_7, %c0_8] : memref<1x128xf32, #tpu.memory_space<vmem>>, vector<1x128xf32>
    %11 = vector.broadcast %10 : vector<1x128xf32> to vector<256x128xf32>
    %12 = arith.mulf %9, %11 : vector<256x128xf32>
    %c0_9 = arith.constant 0 : index
    %c0_10 = arith.constant 0 : index
    %13 = vector.load %arg6[%c0_9, %c0_10] : memref<1x128xf32, #tpu.memory_space<vmem>>, vector<1x128xf32>
    %14 = vector.broadcast %13 : vector<1x128xf32> to vector<256x128xf32>
    %15 = arith.addf %12, %14 : vector<256x128xf32>
    %16 = arith.addf %7, %15 : vector<256x128xf32>
    %cst = arith.constant 0.000000e+00 : f32
    %17 = vector.broadcast %cst : f32 to vector<256x128xf32>
    %18 = arith.maximumf %16, %17 : vector<256x128xf32>
    %c0_11 = arith.constant 0 : index
    %c0_12 = arith.constant 0 : index
    %19 = vector.load %arg7[%c0_11, %c0_12] : memref<256x128xf32, #tpu.memory_space<vmem>>, vector<256x128xf32>
    tpu.vector_store %arg7[%c0_11, %c0_12], %18 {strides = array<i32>} : memref<256x128xf32, #tpu.memory_space<vmem>>, vector<256x128xf32>,
    return
  }
  func.func @transform_0(%arg0: i32) -> (i32, i32) {
    %c0_i32 = arith.constant 0 : i32
    %c0_i32_0 = arith.constant 0 : i32
    return %arg0, %c0_i32 : i32, i32
  }
  func.func @transform_1(%arg0: i32) -> (i32, i32) {
    %c0_i32 = arith.constant 0 : i32
    %c0_i32_0 = arith.constant 0 : i32
    return %arg0, %c0_i32 : i32, i32
  }
  func.func @transform_2(%arg0: i32) -> (i32, i32) {
    %c0_i32 = arith.constant 0 : i32
    %c0_i32_0 = arith.constant 0 : i32
    %c0_i32_1 = arith.constant 0 : i32
    return %c0_i32, %c0_i32_0 : i32, i32
  }
  func.func @transform_3(%arg0: i32) -> (i32, i32) {
    %c0_i32 = arith.constant 0 : i32
    %c0_i32_0 = arith.constant 0 : i32
    %c0_i32_1 = arith.constant 0 : i32
    return %c0_i32, %c0_i32_0 : i32, i32
  }
  func.func @transform_4(%arg0: i32) -> (i32, i32) {
    %c0_i32 = arith.constant 0 : i32
    %c0_i32_0 = arith.constant 0 : i32
    %c0_i32_1 = arith.constant 0 : i32
    return %c0_i32, %c0_i32_0 : i32, i32
  }
  func.func @transform_5(%arg0: i32) -> (i32, i32) {
    %c0_i32 = arith.constant 0 : i32
    %c0_i32_0 = arith.constant 0 : i32
    %c0_i32_1 = arith.constant 0 : i32
    return %c0_i32, %c0_i32_0 : i32, i32
  }
  func.func @transform_6(%arg0: i32) -> (i32, i32) {
    %c0_i32 = arith.constant 0 : i32
    %c0_i32_0 = arith.constant 0 : i32
    return %arg0, %c0_i32 : i32, i32
  }
}

</mosaic_0001>

<bundles_post_ra>
// kernel: _lambda_.5
= control target key start
LH: loop header
LB: loop body
LE: loop exit
PB: predicated region body
PF: predicated region fallthrough
CT: control target
= control target key end

     0   :  { %s616_s0 = inlined_call_operand.vmem [shape: bf16[256,128], index: 0, kind: input, shape index: {}]   ;;  %s617_s1 = inlined_call_operand.vmem [shape: f32[1,128], index: 1, kind: input, shape index: {}]   ;;  %s618_s2 = inlined_call_operand.vmem [shape: f32[1,128], index: 2, kind: input, shape index: {}]   ;;  %s619_s3 = inlined_call_operand.vmem [shape: bf16[256,128], index: 3, kind: output, shape index: {}]  }
   0x1   :  { %v251_v0 = vld [vmem:[%s616_s0] sm:$0xff]   ;;  %v394_v5 = vld [vmem:[%s616_s0 + $0x8] sm:$0xff]   ;;  %v395_v8 = vld [vmem:[%s616_s0 + $0x10] sm:$0xff]  }
   0x2   :  { %v452_v1 = vld [vmem:[%s617_s1] ss:$0 sm:$0xff]  ;;  %v252_v2 = vunpack.c.l.bf16 %v251_v0  ;;  %v253_v3 = vunpack.c.h.bf16 %v251_v0  ;;  %v256_v6 = vunpack.c.l.bf16 %v394_v5  ;;  %v257_v7 = vunpack.c.h.bf16 %v394_v5  ;;  %v396_v9 = vld [vmem:[%s616_s0 + $0x18] sm:$0xff]   ;;  %v398_v35 = vld [vmem:[%s616_s0 + $0x28] sm:$0xff]  }
   0x3   :  { %v457_v4 = vld [vmem:[%s618_s2] ss:$0 sm:$0xff]  ;;  %v260_v12 = vunpack.c.l.bf16 %v395_v8  ;;  %v261_v13 = vunpack.c.h.bf16 %v395_v8  ;;  %v264_v16 = vunpack.c.l.bf16 %v396_v9  ;;  %v265_v17 = vunpack.c.h.bf16 %v396_v9  ;;  %v399_v40 = vld [vmem:[%s616_s0 + $0x30] sm:$0xff]   ;;  %v400_v45 = vld [vmem:[%s616_s0 + $0x38] sm:$0xff]  }
   0x4   :  { %v82_v10 = vmul.f32 %v452_v1, %v252_v2  ;;  %v83_v11 = vmul.f32 %v452_v1, %v253_v3  ;;  %v84_v14 = vmul.f32 %v452_v1, %v256_v6  ;;  %v85_v15 = vmul.f32 %v452_v1, %v257_v7  ;;  %v397_v26 = vld [vmem:[%s616_s0 + $0x20] sm:$0xff]  }
   0x5   :  { %v86_v20 = vmul.f32 %v452_v1, %v260_v12  ;;  %v87_v21 = vmul.f32 %v452_v1, %v261_v13  ;;  %v88_v24 = vmul.f32 %v452_v1, %v264_v16  ;;  %v89_v25 = vmul.f32 %v452_v1, %v265_v17  ;;  %v401_v62 = vld [vmem:[%s616_s0 + $0x40] sm:$0xff]   ;;  %v402_v13 = vld [vmem:[%s616_s0 + $0x48] sm:$0xff]  }
   0x6   :  { %v118_v18 = vadd.f32 %v457_v4, %v82_v10  ;;  %v119_v19 = vadd.f32 %v457_v4, %v83_v11  ;;  %v120_v22 = vadd.f32 %v457_v4, %v84_v14  ;;  %v121_v23 = vadd.f32 %v457_v4, %v85_v15 }
   0x7   :  { %v122_v29 = vadd.f32 %v457_v4, %v86_v20  ;;  %v123_v30 = vadd.f32 %v457_v4, %v87_v21  ;;  %v124_v33 = vadd.f32 %v457_v4, %v88_v24  ;;  %v125_v34 = vadd.f32 %v457_v4, %v89_v25 }
   0x8   :  { %v150_v27 = vmax.f32 %v118_v18, 0.0  ;;  %v151_v28 = vmax.f32 %v119_v19, 0.0  ;;  %v152_v31 = vmax.f32 %v120_v22, 0.0  ;;  %v153_v32 = vmax.f32 %v121_v23, 0.0  ;;  %v403_v18 = vld [vmem:[%s616_s0 + $0x50] sm:$0xff]   ;;  %v404_v23 = vld [vmem:[%s616_s0 + $0x58] sm:$0xff]  }
   0x9   :  { %v154_v37 = vmax.f32 %v122_v29, 0.0  ;;  %v155_v38 = vmax.f32 %v123_v30, 0.0  ;;  %v268_v39 = vunpack.c.l.bf16 %v397_v26  ;;  %v156_v42 = vmax.f32 %v124_v33, 0.0 }
   0xa   :  { %v317_v36 = vpack.c.bf16 %v151_v28, %v150_v27  ;;  %v322_v41 = vpack.c.bf16 %v153_v32, %v152_v31  ;;  %v157_v43 = vmax.f32 %v125_v34, 0.0  ;;  %v269_v44 = vunpack.c.h.bf16 %v397_v26 }
   0xb   :  { %v327_v46 = vpack.c.bf16 %v155_v38, %v154_v37  ;;  %v90_v47 = vmul.f32 %v452_v1, %v268_v39  ;;  %v272_v48 = vunpack.c.l.bf16 %v398_v35  ;;  %v273_v49 = vunpack.c.h.bf16 %v398_v35 }
   0xc   :  { %318 = vst [vmem:[%s619_s3] sm:$0xff] %v317_v36   ;;  %v332_v50 = vpack.c.bf16 %v157_v43, %v156_v42  ;;  %v91_v51 = vmul.f32 %v452_v1, %v269_v44  ;;  %v276_v52 = vunpack.c.l.bf16 %v399_v40  ;;  %v277_v53 = vunpack.c.h.bf16 %v399_v40  ;;  %v405_v36 = vld [vmem:[%s616_s0 + $0x60] sm:$0xff]  }
   0xd   :  { %409 = vst [vmem:[%s619_s3 + $0x8] sm:$0xff] %v322_v41   ;;  %v126_v54 = vadd.f32 %v457_v4, %v90_v47  ;;  %v92_v55 = vmul.f32 %v452_v1, %v272_v48  ;;  %v93_v56 = vmul.f32 %v452_v1, %v273_v49  ;;  %v280_v57 = vunpack.c.l.bf16 %v400_v45 }
   0xe   :  { %410 = vst [vmem:[%s619_s3 + $0x10] sm:$0xff] %v327_v46   ;;  %v127_v58 = vadd.f32 %v457_v4, %v91_v51  ;;  %v94_v59 = vmul.f32 %v452_v1, %v276_v52  ;;  %v95_v60 = vmul.f32 %v452_v1, %v277_v53  ;;  %v281_v61 = vunpack.c.h.bf16 %v400_v45  ;;  %v406_v53 = vld [vmem:[%s616_s0 + $0x68] sm:$0xff]  }
   0xf   :  { %411 = vst [vmem:[%s619_s3 + $0x18] sm:$0xff] %v332_v50   ;;  %v158_v63 = vmax.f32 %v126_v54, 0.0  ;;  %v128_v0 = vadd.f32 %v457_v4, %v92_v55  ;;  %v129_v2 = vadd.f32 %v457_v4, %v93_v56  ;;  %v96_v3 = vmul.f32 %v452_v1, %v280_v57 }
  0x10   :  { %v159_v5 = vmax.f32 %v127_v58, 0.0  ;;  %v130_v6 = vadd.f32 %v457_v4, %v94_v59  ;;  %v131_v7 = vadd.f32 %v457_v4, %v95_v60  ;;  %v97_v8 = vmul.f32 %v452_v1, %v281_v61  ;;  %v407_v58 = vld [vmem:[%s616_s0 + $0x70] sm:$0xff]  }
  0x11   :  { %v160_v9 = vmax.f32 %v128_v0, 0.0  ;;  %v161_v10 = vmax.f32 %v129_v2, 0.0  ;;  %v132_v11 = vadd.f32 %v457_v4, %v96_v3  ;;  %v284_v12 = vunpack.c.l.bf16 %v401_v62 }
  0x12   :  { %v337_v14 = vpack.c.bf16 %v159_v5, %v158_v63  ;;  %v162_v15 = vmax.f32 %v130_v6, 0.0  ;;  %v163_v16 = vmax.f32 %v131_v7, 0.0  ;;  %v133_v17 = vadd.f32 %v457_v4, %v97_v8  ;;  %v408_v63 = vld [vmem:[%s616_s0 + $0x78] sm:$0xff]  }
  0x13   :  { %v342_v19 = vpack.c.bf16 %v161_v10, %v160_v9  ;;  %v164_v20 = vmax.f32 %v132_v11, 0.0  ;;  %v285_v21 = vunpack.c.h.bf16 %v401_v62  ;;  %v98_v22 = vmul.f32 %v452_v1, %v284_v12 }
  0x14   :  { %412 = vst [vmem:[%s619_s3 + $0x20] sm:$0xff] %v337_v14   ;;  %v347_v24 = vpack.c.bf16 %v163_v16, %v162_v15  ;;  %v165_v25 = vmax.f32 %v133_v17, 0.0  ;;  %v288_v26 = vunpack.c.l.bf16 %v402_v13  ;;  %v289_v27 = vunpack.c.h.bf16 %v402_v13 }
  0x15   :  { %413 = vst [vmem:[%s619_s3 + $0x28] sm:$0xff] %v342_v19   ;;  %v99_v28 = vmul.f32 %v452_v1, %v285_v21  ;;  %v134_v29 = vadd.f32 %v457_v4, %v98_v22  ;;  %v292_v30 = vunpack.c.l.bf16 %v403_v18  ;;  %v293_v31 = vunpack.c.h.bf16 %v403_v18 }
  0x16   :  { %414 = vst [vmem:[%s619_s3 + $0x30] sm:$0xff] %v347_v24   ;;  %v352_v32 = vpack.c.bf16 %v165_v25, %v164_v20  ;;  %v100_v33 = vmul.f32 %v452_v1, %v288_v26  ;;  %v101_v34 = vmul.f32 %v452_v1, %v289_v27  ;;  %v296_v35 = vunpack.c.l.bf16 %v404_v23 }
  0x17   :  { %v135_v37 = vadd.f32 %v457_v4, %v99_v28  ;;  %v166_v38 = vmax.f32 %v134_v29, 0.0  ;;  %v102_v39 = vmul.f32 %v452_v1, %v292_v30  ;;  %v103_v40 = vmul.f32 %v452_v1, %v293_v31 }
  0x18   :  { %415 = vst [vmem:[%s619_s3 + $0x38] sm:$0xff] %v352_v32   ;;  %v136_v41 = vadd.f32 %v457_v4, %v100_v33  ;;  %v137_v42 = vadd.f32 %v457_v4, %v101_v34  ;;  %v297_v43 = vunpack.c.h.bf16 %v404_v23  ;;  %v104_v44 = vmul.f32 %v452_v1, %v296_v35 }
  0x19   :  { %v167_v45 = vmax.f32 %v135_v37, 0.0  ;;  %v138_v46 = vadd.f32 %v457_v4, %v102_v39  ;;  %v139_v47 = vadd.f32 %v457_v4, %v103_v40  ;;  %v300_v48 = vunpack.c.l.bf16 %v405_v36 }
  0x1a   :  { %v168_v49 = vmax.f32 %v136_v41, 0.0  ;;  %v169_v50 = vmax.f32 %v137_v42, 0.0  ;;  %v105_v51 = vmul.f32 %v452_v1, %v297_v43  ;;  %v140_v52 = vadd.f32 %v457_v4, %v104_v44 }
  0x1b   :  { %v357_v54 = vpack.c.bf16 %v167_v45, %v166_v38  ;;  %v170_v55 = vmax.f32 %v138_v46, 0.0  ;;  %v171_v56 = vmax.f32 %v139_v47, 0.0  ;;  %v301_v57 = vunpack.c.h.bf16 %v405_v36 }
  0x1c   :  { %v362_v59 = vpack.c.bf16 %v169_v50, %v168_v49  ;;  %v141_v60 = vadd.f32 %v457_v4, %v105_v51  ;;  %v172_v61 = vmax.f32 %v140_v52, 0.0  ;;  %v106_v62 = vmul.f32 %v452_v1, %v300_v48 }
  0x1d   :  { %416 = vst [vmem:[%s619_s3 + $0x40] sm:$0xff] %v357_v54   ;;  %v367_v0 = vpack.c.bf16 %v171_v56, %v170_v55  ;;  %v107_v2 = vmul.f32 %v452_v1, %v301_v57  ;;  %v304_v3 = vunpack.c.l.bf16 %v406_v53  ;;  %v305_v5 = vunpack.c.h.bf16 %v406_v53 }
  0x1e   :  { %417 = vst [vmem:[%s619_s3 + $0x48] sm:$0xff] %v362_v59   ;;  %v173_v6 = vmax.f32 %v141_v60, 0.0  ;;  %v142_v7 = vadd.f32 %v457_v4, %v106_v62  ;;  %v308_v8 = vunpack.c.l.bf16 %v407_v58  ;;  %v309_v9 = vunpack.c.h.bf16 %v407_v58 }
  0x1f   :  { %418 = vst [vmem:[%s619_s3 + $0x50] sm:$0xff] %v367_v0   ;;  %v143_v10 = vadd.f32 %v457_v4, %v107_v2  ;;  %v108_v11 = vmul.f32 %v452_v1, %v304_v3  ;;  %v109_v12 = vmul.f32 %v452_v1, %v305_v5  ;;  %v312_v13 = vunpack.c.l.bf16 %v408_v63 }
  0x20   :  { %v372_v14 = vpack.c.bf16 %v173_v6, %v172_v61  ;;  %v174_v15 = vmax.f32 %v142_v7, 0.0  ;;  %v110_v16 = vmul.f32 %v452_v1, %v308_v8  ;;  %v111_v17 = vmul.f32 %v452_v1, %v309_v9 }
  0x21   :  { %v175_v18 = vmax.f32 %v143_v10, 0.0  ;;  %v144_v19 = vadd.f32 %v457_v4, %v108_v11  ;;  %v145_v20 = vadd.f32 %v457_v4, %v109_v12  ;;  %v313_v21 = vunpack.c.h.bf16 %v408_v63 }
  0x22   :  { %419 = vst [vmem:[%s619_s3 + $0x58] sm:$0xff] %v372_v14   ;;  %v146_v22 = vadd.f32 %v457_v4, %v110_v16  ;;  %v147_v23 = vadd.f32 %v457_v4, %v111_v17  ;;  %v112_v24 = vmul.f32 %v452_v1, %v312_v13 }
  0x23   :  { %v377_v25 = vpack.c.bf16 %v175_v18, %v174_v15  ;;  %v176_v26 = vmax.f32 %v144_v19, 0.0  ;;  %v177_v27 = vmax.f32 %v145_v20, 0.0  ;;  %v113_v28 = vmul.f32 %v452_v1, %v313_v21 }
  0x24   :  { %v178_v29 = vmax.f32 %v146_v22, 0.0  ;;  %v179_v30 = vmax.f32 %v147_v23, 0.0  ;;  %v148_v31 = vadd.f32 %v457_v4, %v112_v24 }
  0x25   :  { %420 = vst [vmem:[%s619_s3 + $0x60] sm:$0xff] %v377_v25   ;;  %v382_v32 = vpack.c.bf16 %v177_v27, %v176_v26  ;;  %v149_v33 = vadd.f32 %v457_v4, %v113_v28 }
  0x26   :  { %v387_v34 = vpack.c.bf16 %v179_v30, %v178_v29  ;;  %v180_v35 = vmax.f32 %v148_v31, 0.0 }
  0x27   :  { %421 = vst [vmem:[%s619_s3 + $0x68] sm:$0xff] %v382_v32   ;;  %v181_v36 = vmax.f32 %v149_v33, 0.0 }
  0x28   :  { %422 = vst [vmem:[%s619_s3 + $0x70] sm:$0xff] %v387_v34  }
  0x29   :  { %v392_v1 = vpack.c.bf16 %v181_v36, %v180_v35 }
  0x2b   :  { %423 = vst [vmem:[%s619_s3 + $0x78] sm:$0xff] %v392_v1  }

// kernel: _lambda_.4
= control target key start
LH: loop header
LB: loop body
LE: loop exit
PB: predicated region body
PF: predicated region fallthrough
CT: control target
= control target key end

     0   :  { %vm202_vm0 = vcmask 1041408   ;;  %vm408_vm1 = vcmask 31744   ;;  %vm153_vm2 = vcmask 293888   ;;  %vm889_vm3 = vcmask 1040384   ;;  %s1826_s3 = inlined_call_operand.vmem [shape: bf16[4,128], index: 3, kind: input, shape index: {}]   ;;  %s1827_s2 = inlined_call_operand.vmem [shape: bf16[256,4], index: 2, kind: input, shape index: {}]   ;;  %s1828_s1 = inlined_call_operand.vmem [shape: bf16[36,128], index: 1, kind: input, shape index: {}]   ;;  %s1829_s0 = inlined_call_operand.vmem [shape: bf16[256,36], index: 0, kind: input, shape index: {}]   ;;  %s1830_s5 = inlined_call_operand.vmem [shape: bf16[256,128], index: 5, kind: output, shape index: {1}]   ;;  %s1831_s4 = inlined_call_operand.vmem [shape: bf16[256,128], index: 4, kind: output, shape index: {0}]   ;;  %s1832_s6 = inlined_call_operand.vmem [shape: f32[1,4,128], index: 6, kind: output, shape index: {2}]  }
   0x1   :  { %v327_v0 = vld [vmem:[%s1826_s3] sm:$0x3]  ;;  %v57_v1 = vld [vmem:[%s1828_s1 + $0x10] sm:$0x3]  ;;  %v1092_v7 = vld [vmem:[%s1828_s1 + $0x8] sm:$0xff]  ;;  %vm892_vm4 = vcmask 1042432  }
   0x2   :  { %v458_v2 = vsel %vm202_vm0, %v327_v0, 0  ;;  %v1093_v3 = vld [vmem:[%s1827_s2] sm:$0xff]  ;;  %v147_v4 = vunpack.c.l.b16 %v57_v1  ;;  %v1094_v11 = vld [vmem:[%s1827_s2 + $0x8] sm:$0xff]  ;;  %v1095_v15 = vld [vmem:[%s1827_s2 + $0x10] sm:$0xff] }
   0x3   :  { %467 = vmatpush.bf16.msra.mxu1 %v458_v2  ;;  %1302 = vmatpush.bf16.msra.mxu3 %v458_v2  ;;  %v1091_v8 = vld [vmem:[%s1828_s1] sm:$0xff]  ;;  %v1102_v12 = vld [vmem:[%s1827_s2 + $0x48] sm:$0xff]  ;;  %v1103_v16 = vld [vmem:[%s1827_s2 + $0x50] sm:$0xff] }
   0x4   :  { %v150_v5 = vpack.c.b16 %v147_v4, %v147_v4  ;;  %v1075_v9 = vld [vmem:[%s1829_s0] sm:$0xff]  ;;  %v1076_v13 = vld [vmem:[%s1829_s0 + $0x8] sm:$0xff]  ;;  %v1077_v17 = vld [vmem:[%s1829_s0 + $0x10] sm:$0xff] }
   0x5   :  { %v1083_v10 = vld [vmem:[%s1829_s0 + $0x40] sm:$0xff]  ;;  %v1084_v14 = vld [vmem:[%s1829_s0 + $0x48] sm:$0xff]  ;;  %v1085_v18 = vld [vmem:[%s1829_s0 + $0x50] sm:$0xff] }
   0x6   :  { %1059 = vmatmul.msk.bf16.vlgmr.msra.gmra.mxu1 %vm408_vm1, %v1093_v3  ;;  %v204_v6 = vsel %vm202_vm0, %v150_v5, 0  ;;  %1068 = vmatmul.msk.bf16.vlgmr.msra.gmra.mxu3 %vm408_vm1, %v1102_v12  ;;  %v1096_v19 = vld [vmem:[%s1827_s2 + $0x18] sm:$0xff]  ;;  %v1097_v23 = vld [vmem:[%s1827_s2 + $0x20] sm:$0xff]  ;;  %v1098_v27 = vld [vmem:[%s1827_s2 + $0x28] sm:$0xff] }
   0x7   :  { %211 = vmatpush.bf16.msra.mxu0 %v204_v6  ;;  %1299 = vmatpush.bf16.msra.mxu2 %v204_v6  ;;  %v1104_v20 = vld [vmem:[%s1827_s2 + $0x58] sm:$0xff]  ;;  %v1105_v24 = vld [vmem:[%s1827_s2 + $0x60] sm:$0xff]  ;;  %v1106_v28 = vld [vmem:[%s1827_s2 + $0x68] sm:$0xff] }
   0x8   :  { %v1078_v21 = vld [vmem:[%s1829_s0 + $0x18] sm:$0xff]  ;;  %v1079_v25 = vld [vmem:[%s1829_s0 + $0x20] sm:$0xff]  ;;  %v1080_v29 = vld [vmem:[%s1829_s0 + $0x28] sm:$0xff] }
   0x9   :  { %v1086_v22 = vld [vmem:[%s1829_s0 + $0x58] sm:$0xff]  ;;  %v1087_v26 = vld [vmem:[%s1829_s0 + $0x60] sm:$0xff]  ;;  %v1088_v30 = vld [vmem:[%s1829_s0 + $0x68] sm:$0xff] }
   0xa   :  { %v1099_v31 = vld [vmem:[%s1827_s2 + $0x30] sm:$0xff]  ;;  %v1100_v35 = vld [vmem:[%s1827_s2 + $0x38] sm:$0xff]  ;;  %v1101_v39 = vld [vmem:[%s1827_s2 + $0x40] sm:$0xff] }
   0xb   :  { %212 = vmatpush.bf16.msra.mxu0 %v1092_v7  ;;  %1300 = vmatpush.bf16.msra.mxu2 %v1092_v7  ;;  %v1107_v32 = vld [vmem:[%s1827_s2 + $0x70] sm:$0xff]  ;;  %v1108_v36 = vld [vmem:[%s1827_s2 + $0x78] sm:$0xff] }
   0xc   :  { %v1081_v33 = vld [vmem:[%s1829_s0 + $0x30] sm:$0xff]  ;;  %v1082_v37 = vld [vmem:[%s1829_s0 + $0x38] sm:$0xff] }
   0xd   :  { %v1089_v34 = vld [vmem:[%s1829_s0 + $0x70] sm:$0xff]  ;;  %v1090_v38 = vld [vmem:[%s1829_s0 + $0x78] sm:$0xff] }
   0xf   :  { %213 = vmatpush.bf16.msra.mxu0 %v1091_v8  ;;  %1301 = vmatpush.bf16.msra.mxu2 %v1091_v8 }
  0x12   :  { %979 = vmatmul.msk.bf16.vlgmr.msra.gmra.mxu0 %vm153_vm2, %v1075_v9  ;;  %987 = vmatmul.msk.bf16.vlgmr.msra.gmra.mxu2 %vm153_vm2, %v1083_v10 }
  0x16   :  { %1060 = vmatmul.msk.bf16.gmra.mxu1 %vm408_vm1, %v1094_v11  ;;  %1069 = vmatmul.msk.bf16.gmra.mxu3 %vm408_vm1, %v1103_v16 }
  0x22   :  { %980 = vmatmul.msk.bf16.gmra.mxu0 %vm153_vm2, %v1076_v13  ;;  %988 = vmatmul.msk.bf16.gmra.mxu2 %vm153_vm2, %v1084_v14 }
  0x26   :  { %1061 = vmatmul.msk.bf16.gmra.mxu1 %vm408_vm1, %v1095_v15  ;;  %1070 = vmatmul.msk.bf16.gmra.mxu3 %vm408_vm1, %v1104_v20 }
  0x32   :  { %981 = vmatmul.msk.bf16.gmra.mxu0 %vm153_vm2, %v1077_v17  ;;  %989 = vmatmul.msk.bf16.gmra.mxu2 %vm153_vm2, %v1085_v18 }
  0x36   :  { %1062 = vmatmul.msk.bf16.gmra.mxu1 %vm408_vm1, %v1096_v19  ;;  %1071 = vmatmul.msk.bf16.gmra.mxu3 %vm408_vm1, %v1105_v24 }
  0x42   :  { %982 = vmatmul.msk.bf16.gmra.mxu0 %vm153_vm2, %v1078_v21  ;;  %990 = vmatmul.msk.bf16.gmra.mxu2 %vm153_vm2, %v1086_v22 }
  0x46   :  { %1063 = vmatmul.msk.bf16.gmra.mxu1 %vm408_vm1, %v1097_v23  ;;  %1072 = vmatmul.msk.bf16.gmra.mxu3 %vm408_vm1, %v1106_v28 }
  0x52   :  { %983 = vmatmul.msk.bf16.gmra.mxu0 %vm153_vm2, %v1079_v25  ;;  %991 = vmatmul.msk.bf16.gmra.mxu2 %vm153_vm2, %v1087_v26 }
  0x56   :  { %1064 = vmatmul.msk.bf16.gmra.mxu1 %vm408_vm1, %v1098_v27  ;;  %1073 = vmatmul.msk.bf16.gmra.mxu3 %vm408_vm1, %v1107_v32 }
  0x62   :  { %984 = vmatmul.msk.bf16.gmra.mxu0 %vm153_vm2, %v1080_v29  ;;  %992 = vmatmul.msk.bf16.gmra.mxu2 %vm153_vm2, %v1088_v30 }
  0x66   :  { %1065 = vmatmul.msk.bf16.gmra.mxu1 %vm408_vm1, %v1099_v31  ;;  %1074 = vmatmul.msk.bf16.gmra.mxu3 %vm408_vm1, %v1108_v36 }
  0x72   :  { %985 = vmatmul.msk.bf16.gmra.mxu0 %vm153_vm2, %v1081_v33  ;;  %993 = vmatmul.msk.bf16.gmra.mxu2 %vm153_vm2, %v1089_v34 }
  0x76   :  { %1066 = vmatmul.msk.bf16.gmra.mxu1 %vm408_vm1, %v1100_v35 }
  0x82   :  { %986 = vmatmul.msk.bf16.gmra.mxu0 %vm153_vm2, %v1082_v37  ;;  %994 = vmatmul.msk.bf16.gmra.mxu2 %vm153_vm2, %v1090_v38 }
  0x83   :  { %v469_v40 = vpop.f32.mrf.mxu1 }
  0x84   :  { %v820_v42 = vmul.f32 %v469_v40, %v469_v40 }
  0x86   :  { %1067 = vmatmul.msk.bf16.gmra.mxu1 %vm408_vm1, %v1101_v39 }
  0x89   :  { %v1485_v58 = vpop.f32.mrf.mxu3 }
  0x8b   :  { %v471_v41 = vpop.f32.mrf.mxu1 }
  0x8c   :  { %v1192_v43 = vpack.c.bf16 %v471_v41, %v469_v40  ;;  %v783_v44 = vadd.f32 %v471_v41, %v469_v40  ;;  %v821_v45 = vmul.f32 %v471_v41, %v471_v41 }
  0x8e   :  { %1193 = vst [vmem:[%s1830_s5] sm:$0xff] %v1192_v43   ;;  %v852_v46 = vadd.f32 %v821_v45, %v820_v42 }
  0x8f   :  { %v215_v47 = vpop.f32.mrf.mxu0 }
  0x90   :  { %v714_v54 = vmul.f32 %v215_v47, %v215_v47 }
  0x91   :  { %v1500_v6 = vpop.f32.mrf.mxu3 }
  0x92   :  { %v1237_v8 = vpack.c.bf16 %v1500_v6, %v1485_v58 }
  0x93   :  { %v474_v48 = vpop.f32.mrf.mxu1 }
  0x94   :  { %v784_v49 = vadd.f32 %v783_v44, %v474_v48  ;;  %v822_v50 = vmul.f32 %v474_v48, %v474_v48  ;;  %1292 = vst [vmem:[%s1830_s5 + $0x48] sm:$0xff] %v1237_v8  }
  0x95   :  { %v1483_v51 = vpop.f32.mrf.mxu2 }
  0x96   :  { %v853_v52 = vadd.f32 %v852_v46, %v822_v50 }
  0x97   :  { %v217_v53 = vpop.f32.mrf.mxu0 }
  0x98   :  { %v1112_v55 = vpack.c.bf16 %v217_v53, %v215_v47  ;;  %v677_v56 = vadd.f32 %v217_v53, %v215_v47  ;;  %v715_v57 = vmul.f32 %v217_v53, %v217_v53 }
  0x99   :  { %v1509_v18 = vpop.f32.mrf.mxu3 }
  0x9a   :  { %1113 = vst [vmem:[%s1831_s4] sm:$0xff] %v1112_v55   ;;  %v746_v59 = vadd.f32 %v715_v57, %v714_v54 }
  0x9b   :  { %v476_v60 = vpop.f32.mrf.mxu1 }
  0x9c   :  { %v1197_v61 = vpack.c.bf16 %v476_v60, %v474_v48  ;;  %v785_v62 = vadd.f32 %v784_v49, %v476_v60  ;;  %v823_v63 = vmul.f32 %v476_v60, %v476_v60 }
  0x9d   :  { %v1490_v0 = vpop.f32.mrf.mxu2 }
  0x9e   :  { %1284 = vst [vmem:[%s1830_s5 + $0x8] sm:$0xff] %v1197_v61   ;;  %v854_v1 = vadd.f32 %v853_v52, %v823_v63  ;;  %v1152_v2 = vpack.c.bf16 %v1490_v0, %v1483_v51 }
  0x9f   :  { %v220_v3 = vpop.f32.mrf.mxu0 }
  0xa0   :  { %v678_v4 = vadd.f32 %v677_v56, %v220_v3  ;;  %v716_v5 = vmul.f32 %v220_v3, %v220_v3  ;;  %1276 = vst [vmem:[%s1831_s4 + $0x40] sm:$0xff] %v1152_v2  }
  0xa1   :  { %v1526_v30 = vpop.f32.mrf.mxu3 }
  0xa2   :  { %v747_v7 = vadd.f32 %v746_v59, %v716_v5  ;;  %v1242_v32 = vpack.c.bf16 %v1526_v30, %v1509_v18 }
  0xa3   :  { %v479_v9 = vpop.f32.mrf.mxu1 }
  0xa4   :  { %v786_v10 = vadd.f32 %v785_v62, %v479_v9  ;;  %v824_v11 = vmul.f32 %v479_v9, %v479_v9  ;;  %1293 = vst [vmem:[%s1830_s5 + $0x50] sm:$0xff] %v1242_v32  }
  0xa5   :  { %v1507_v12 = vpop.f32.mrf.mxu2 }
  0xa6   :  { %v855_v13 = vadd.f32 %v854_v1, %v824_v11 }
  0xa7   :  { %v222_v14 = vpop.f32.mrf.mxu0 }
  0xa8   :  { %v1117_v15 = vpack.c.bf16 %v222_v14, %v220_v3  ;;  %v679_v16 = vadd.f32 %v678_v4, %v222_v14  ;;  %v717_v17 = vmul.f32 %v222_v14, %v222_v14 }
  0xa9   :  { %v1544_v40 = vpop.f32.mrf.mxu3 }
  0xaa   :  { %1269 = vst [vmem:[%s1831_s4 + $0x8] sm:$0xff] %v1117_v15   ;;  %v748_v19 = vadd.f32 %v747_v7, %v717_v17 }
  0xab   :  { %v481_v20 = vpop.f32.mrf.mxu1 }
  0xac   :  { %v1202_v21 = vpack.c.bf16 %v481_v20, %v479_v9  ;;  %v787_v22 = vadd.f32 %v786_v10, %v481_v20  ;;  %v825_v23 = vmul.f32 %v481_v20, %v481_v20 }
  0xad   :  { %v1514_v24 = vpop.f32.mrf.mxu2 }
  0xae   :  { %1285 = vst [vmem:[%s1830_s5 + $0x10] sm:$0xff] %v1202_v21   ;;  %v856_v25 = vadd.f32 %v855_v13, %v825_v23  ;;  %v1157_v26 = vpack.c.bf16 %v1514_v24, %v1507_v12 }
  0xaf   :  { %v225_v27 = vpop.f32.mrf.mxu0 }
  0xb0   :  { %v1521_v28 = vadd.f32 %v679_v16, %v225_v27  ;;  %v718_v29 = vmul.f32 %v225_v27, %v225_v27  ;;  %1277 = vst [vmem:[%s1831_s4 + $0x48] sm:$0xff] %v1157_v26  }
  0xb1   :  { %v1562_v46 = vpop.f32.mrf.mxu3 }
  0xb2   :  { %v1528_v31 = vadd.f32 %v748_v19, %v718_v29  ;;  %v1247_v47 = vpack.c.bf16 %v1562_v46, %v1544_v40 }
  0xb3   :  { %v484_v33 = vpop.f32.mrf.mxu1 }
  0xb4   :  { %v1532_v34 = vadd.f32 %v787_v22, %v484_v33  ;;  %v826_v35 = vmul.f32 %v484_v33, %v484_v33  ;;  %1294 = vst [vmem:[%s1830_s5 + $0x58] sm:$0xff] %v1247_v47  }
  0xb5   :  { %v1537_v36 = vpop.f32.mrf.mxu2 }
  0xb6   :  { %v1539_v37 = vadd.f32 %v856_v25, %v826_v35 }
  0xb7   :  { %v1541_v38 = vpop.f32.mrf.mxu0 }
  0xb8   :  { %v1122_v39 = vpack.c.bf16 %v1541_v38, %v225_v27  ;;  %v719_v25 = vmul.f32 %v1541_v38, %v1541_v38  ;;  %v681_v32 = vadd.f32 %v1521_v28, %v1541_v38 }
  0xb9   :  { %v1573_v53 = vpop.f32.mrf.mxu3 }
  0xba   :  { %1270 = vst [vmem:[%s1831_s4 + $0x10] sm:$0xff] %v1122_v39   ;;  %v750_v39 = vadd.f32 %v1528_v31, %v719_v25 }
  0xbb   :  { %v1549_v41 = vpop.f32.mrf.mxu1 }
  0xbc   :  { %v1207_v42 = vpack.c.bf16 %v1549_v41, %v484_v33  ;;  %v789_v47 = vadd.f32 %v1532_v34, %v1549_v41 }
  0xbd   :  { %v1552_v43 = vpop.f32.mrf.mxu2 }
  0xbe   :  { %1286 = vst [vmem:[%s1830_s5 + $0x18] sm:$0xff] %v1207_v42   ;;  %v1162_v44 = vpack.c.bf16 %v1552_v43, %v1537_v36 }
  0xbf   :  { %v230_v45 = vpop.f32.mrf.mxu0 }
  0xc0   :  { %1278 = vst [vmem:[%s1831_s4 + $0x50] sm:$0xff] %v1162_v44   ;;  %v720_v33 = vmul.f32 %v230_v45, %v230_v45  ;;  %v682_v42 = vadd.f32 %v681_v32, %v230_v45 }
  0xc1   :  { %v1592_v60 = vpop.f32.mrf.mxu3 }
  0xc2   :  { %v1252_v61 = vpack.c.bf16 %v1592_v60, %v1573_v53 }
  0xc3   :  { %v1566_v48 = vpop.f32.mrf.mxu1 }
  0xc4   :  { %1295 = vst [vmem:[%s1830_s5 + $0x60] sm:$0xff] %v1252_v61  }
  0xc5   :  { %v1571_v49 = vpop.f32.mrf.mxu2 }
  0xc7   :  { %v232_v50 = vpop.f32.mrf.mxu0 }
  0xc8   :  { %v1127_v52 = vpack.c.bf16 %v232_v50, %v230_v45  ;;  %v721_v44 = vmul.f32 %v232_v50, %v232_v50  ;;  %v683_v28 = vadd.f32 %v682_v42, %v232_v50 }
  0xc9   :  { %v1603_v3 = vpop.f32.mrf.mxu3 }
  0xca   :  { %1271 = vst [vmem:[%s1831_s4 + $0x18] sm:$0xff] %v1127_v52   ;;  %v827_v52 = vmul.f32 %v1549_v41, %v1549_v41 }
  0xcb   :  { %v1578_v54 = vpop.f32.mrf.mxu1 }
  0xcc   :  { %v1212_v55 = vpack.c.bf16 %v1578_v54, %v1566_v48  ;;  %v858_v41 = vadd.f32 %v1539_v37, %v827_v52 }
  0xcd   :  { %v1582_v56 = vpop.f32.mrf.mxu2 }
  0xce   :  { %1287 = vst [vmem:[%s1830_s5 + $0x20] sm:$0xff] %v1212_v55   ;;  %v1167_v57 = vpack.c.bf16 %v1582_v56, %v1571_v49 }
  0xcf   :  { %v235_v59 = vpop.f32.mrf.mxu0 }
  0xd0   :  { %1279 = vst [vmem:[%s1831_s4 + $0x58] sm:$0xff] %v1167_v57   ;;  %v751_v57 = vadd.f32 %v750_v39, %v720_v33  ;;  %v722_v38 = vmul.f32 %v235_v59, %v235_v59  ;;  %v684_v31 = vadd.f32 %v683_v28, %v235_v59 }
  0xd1   :  { %v1622_v10 = vpop.f32.mrf.mxu3 }
  0xd2   :  { %v1257_v11 = vpack.c.bf16 %v1622_v10, %v1603_v3 }
  0xd3   :  { %v1596_v62 = vpop.f32.mrf.mxu1 }
  0xd4   :  { %1296 = vst [vmem:[%s1830_s5 + $0x68] sm:$0xff] %v1257_v11   ;;  %v829_v11 = vmul.f32 %v1578_v54, %v1578_v54  ;;  %v830_v32 = vmul.f32 %v1596_v62, %v1596_v62 }
  0xd5   :  { %v1601_v63 = vpop.f32.mrf.mxu2 }
  0xd7   :  { %v237_v1 = vpop.f32.mrf.mxu0 }
  0xd8   :  { %v1132_v2 = vpack.c.bf16 %v237_v1, %v235_v59  ;;  %v723_v45 = vmul.f32 %v237_v1, %v237_v1 }
  0xd9   :  { %v1633_v17 = vpop.f32.mrf.mxu3 }
  0xda   :  { %1272 = vst [vmem:[%s1831_s4 + $0x20] sm:$0xff] %v1132_v2   ;;  %v790_v2 = vadd.f32 %v789_v47, %v1566_v48 }
  0xdb   :  { %v1608_v4 = vpop.f32.mrf.mxu1 }
  0xdc   :  { %v1217_v5 = vpack.c.bf16 %v1608_v4, %v1596_v62  ;;  %v791_v50 = vadd.f32 %v790_v2, %v1578_v54  ;;  %v831_v47 = vmul.f32 %v1608_v4, %v1608_v4 }
  0xdd   :  { %v1612_v7 = vpop.f32.mrf.mxu2 }
  0xde   :  { %1288 = vst [vmem:[%s1830_s5 + $0x28] sm:$0xff] %v1217_v5   ;;  %v1172_v8 = vpack.c.bf16 %v1612_v7, %v1601_v63  ;;  %v828_v5 = vmul.f32 %v1566_v48, %v1566_v48 }
  0xdf   :  { %v240_v9 = vpop.f32.mrf.mxu0 }
  0xe0   :  { %1280 = vst [vmem:[%s1831_s4 + $0x60] sm:$0xff] %v1172_v8   ;;  %v752_v8 = vadd.f32 %v751_v57, %v721_v44  ;;  %v724_v48 = vmul.f32 %v240_v9, %v240_v9  ;;  %v859_v25 = vadd.f32 %v858_v41, %v828_v5 }
  0xe1   :  { %v1654_v26 = vpop.f32.mrf.mxu3 }
  0xe2   :  { %v1262_v29 = vpack.c.bf16 %v1654_v26, %v1633_v17 }
  0xe3   :  { %v1626_v13 = vpop.f32.mrf.mxu1 }
  0xe4   :  { %1297 = vst [vmem:[%s1830_s5 + $0x70] sm:$0xff] %v1262_v29   ;;  %v792_v29 = vadd.f32 %v791_v50, %v1596_v62 }
  0xe5   :  { %v1631_v14 = vpop.f32.mrf.mxu2 }
  0xe6   :  { %v793_v44 = vadd.f32 %v792_v29, %v1608_v4 }
  0xe7   :  { %v242_v15 = vpop.f32.mrf.mxu0 }
  0xe8   :  { %v1137_v16 = vpack.c.bf16 %v242_v15, %v240_v9  ;;  %v725_v42 = vmul.f32 %v242_v15, %v242_v15 }
  0xe9   :  { %v1678_v34 = vpop.f32.mrf.mxu3 }
  0xea   :  { %1273 = vst [vmem:[%s1831_s4 + $0x28] sm:$0xff] %v1137_v16  }
  0xeb   :  { %v1638_v19 = vpop.f32.mrf.mxu1 }
  0xec   :  { %v1222_v20 = vpack.c.bf16 %v1638_v19, %v1626_v13 }
  0xed   :  { %v1642_v21 = vpop.f32.mrf.mxu2 }
  0xee   :  { %1289 = vst [vmem:[%s1830_s5 + $0x30] sm:$0xff] %v1222_v20   ;;  %v1177_v22 = vpack.c.bf16 %v1642_v21, %v1631_v14  ;;  %v753_v20 = vadd.f32 %v752_v8, %v722_v38  ;;  %v794_v38 = vadd.f32 %v793_v44, %v1626_v13 }
  0xef   :  { %v245_v23 = vpop.f32.mrf.mxu0 }
  0xf0   :  { %1281 = vst [vmem:[%s1831_s4 + $0x68] sm:$0xff] %v1177_v22   ;;  %v685_v22 = vadd.f32 %v684_v31, %v237_v1  ;;  %v754_v37 = vadd.f32 %v753_v20, %v723_v45  ;;  %v860_v1 = vadd.f32 %v859_v25, %v829_v11  ;;  %v726_v28 = vmul.f32 %v245_v23, %v245_v23 }
  0xf1   :  { %v1704_v31 = vpop.f32.mrf.mxu3  ;;  %v795_v45 = vadd.f32 %v794_v38, %v1638_v19 }
  0xf2   :  { %v686_v39 = vadd.f32 %v685_v22, %v240_v9  ;;  %v755_v62 = vadd.f32 %v754_v37, %v724_v48  ;;  %v861_v9 = vadd.f32 %v860_v1, %v830_v32  ;;  %v1267_v50 = vpack.c.bf16 %v1704_v31, %v1678_v34 }
  0xf3   :  { %v1656_v27 = vpop.f32.mrf.mxu1 }
  0xf4   :  { %v687_v57 = vadd.f32 %v686_v39, %v242_v15  ;;  %v756_v2 = vadd.f32 %v755_v62, %v725_v42  ;;  %v862_v4 = vadd.f32 %v861_v9, %v831_v47  ;;  %v833_v15 = vmul.f32 %v1638_v19, %v1638_v19  ;;  %1298 = vst [vmem:[%s1830_s5 + $0x78] sm:$0xff] %v1267_v50  }
  0xf5   :  { %v1662_v35 = vpop.f32.mrf.mxu2 }
  0xf6   :  { %v688_v5 = vadd.f32 %v687_v57, %v245_v23  ;;  %v757_v11 = vadd.f32 %v756_v2, %v726_v28 }
  0xf7   :  { %v247_v55 = vpop.f32.mrf.mxu0 }
  0xf8   :  { %v1142_v61 = vpack.c.bf16 %v247_v55, %v245_v23  ;;  %v727_v8 = vmul.f32 %v247_v55, %v247_v55  ;;  %v689_v20 = vadd.f32 %v688_v5, %v247_v55  ;;  %v834_v23 = vmul.f32 %v1656_v27, %v1656_v27 }
  0xfa   :  { %1274 = vst [vmem:[%s1831_s4 + $0x30] sm:$0xff] %v1142_v61   ;;  %v832_v61 = vmul.f32 %v1626_v13, %v1626_v13  ;;  %v796_v13 = vadd.f32 %v795_v45, %v1656_v27  ;;  %v758_v19 = vadd.f32 %v757_v11, %v727_v8  ;;  %v732_v8 = vmul.f32 %v1507_v12, %v1507_v12 }
  0xfb   :  { %v506_v16 = vpop.f32.mrf.mxu1 }
  0xfc   :  { %v1227_v59 = vpack.c.bf16 %v506_v16, %v1656_v27  ;;  %v863_v48 = vadd.f32 %v862_v4, %v832_v61  ;;  %v797_v32 = vadd.f32 %v796_v13, %v506_v16  ;;  %v835_v37 = vmul.f32 %v506_v16, %v506_v16 }
  0xfd   :  { %v1688_v33 = vpop.f32.mrf.mxu2  ;;  %v730_v27 = vmul.f32 %v1483_v51, %v1483_v51  ;;  %v731_v16 = vmul.f32 %v1490_v0, %v1490_v0 }
  0xfe   :  { %1290 = vst [vmem:[%s1830_s5 + $0x38] sm:$0xff] %v1227_v59   ;;  %v1182_v54 = vpack.c.bf16 %v1688_v33, %v1662_v35  ;;  %v864_v29 = vadd.f32 %v863_v48, %v833_v15 }
  0xff   :  { %v250_v52 = vpop.f32.mrf.mxu0 }
 0x100   :  { %1282 = vst [vmem:[%s1831_s4 + $0x70] sm:$0xff] %v1182_v54   ;;  %v728_v22 = vmul.f32 %v250_v52, %v250_v52  ;;  %v690_v25 = vadd.f32 %v689_v20, %v250_v52  ;;  %v865_v44 = vadd.f32 %v864_v29, %v834_v23  ;;  %v839_v23 = vmul.f32 %v1500_v6, %v1500_v6 }
 0x102   :  { %v759_v55 = vadd.f32 %v758_v19, %v728_v22  ;;  %v866_v9 = vadd.f32 %v865_v44, %v835_v37  ;;  %v733_v22 = vmul.f32 %v1514_v24, %v1514_v24 }
 0x103   :  { %v509_v41 = vpop.f32.mrf.mxu1 }
 0x104   :  { %v836_v47 = vmul.f32 %v509_v41, %v509_v41  ;;  %v798_v62 = vadd.f32 %v797_v32, %v509_v41 }
 0x105   :  { %v1714_v59 = vpop.f32.mrf.mxu2 }
 0x106   :  { %v867_v4 = vadd.f32 %v866_v9, %v836_v47 }
 0x107   :  { %v252_v39 = vpop.f32.mrf.mxu0 }
 0x108   :  { %v1147_v42 = vpack.c.bf16 %v252_v39, %v250_v52  ;;  %v691_v54 = vadd.f32 %v690_v25, %v252_v39  ;;  %v729_v1 = vmul.f32 %v252_v39, %v252_v39  ;;  %v735_v39 = vmul.f32 %v1552_v43, %v1552_v43 }
 0x10a   :  { %1275 = vst [vmem:[%s1831_s4 + $0x38] sm:$0xff] %v1147_v42   ;;  %v692_v57 = vadd.f32 %v691_v54, %v1483_v51  ;;  %v760_v28 = vadd.f32 %v759_v55, %v729_v1  ;;  %v841_v54 = vmul.f32 %v1526_v30, %v1526_v30 }
 0x10b   :  { %v511_v52 = vpop.f32.mrf.mxu1 }
 0x10c   :  { %v693_v38 = vadd.f32 %v692_v57, %v1490_v0  ;;  %v761_v61 = vadd.f32 %v760_v28, %v730_v27  ;;  %v1232_v2 = vpack.c.bf16 %v511_v52, %v509_v41  ;;  %v799_v5 = vadd.f32 %v798_v62, %v511_v52 }
 0x10d   :  { %v837_v45 = vmul.f32 %v511_v52, %v511_v52  ;;  %v1730_v15 = vpop.f32.mrf.mxu2  ;;  %v838_v41 = vmul.f32 %v1485_v58, %v1485_v58  ;;  %v842_v27 = vmul.f32 %v1544_v40, %v1544_v40 }
 0x10e   :  { %v694_v51 = vadd.f32 %v693_v38, %v1507_v12  ;;  %v762_v50 = vadd.f32 %v761_v61, %v731_v16  ;;  %1291 = vst [vmem:[%s1830_s5 + $0x40] sm:$0xff] %v1232_v2   ;;  %v800_v11 = vadd.f32 %v799_v5, %v1485_v58  ;;  %v1187_v0 = vpack.c.bf16 %v1730_v15, %v1714_v59 }
 0x10f   :  { %v868_v20 = vadd.f32 %v867_v4, %v837_v45  ;;  %v734_v58 = vmul.f32 %v1537_v36, %v1537_v36  ;;  %v843_v16 = vmul.f32 %v1562_v46, %v1562_v46  ;;  %v844_v61 = vmul.f32 %v1573_v53, %v1573_v53 }
 0x110   :  { %v695_v48 = vadd.f32 %v694_v51, %v1514_v24  ;;  %v763_v12 = vadd.f32 %v762_v50, %v732_v8  ;;  %v801_v13 = vadd.f32 %v800_v11, %v1500_v6  ;;  %1283 = vst [vmem:[%s1831_s4 + $0x78] sm:$0xff] %v1187_v0   ;;  %v840_v24 = vmul.f32 %v1509_v18, %v1509_v18 }
 0x111   :  { %v869_v19 = vadd.f32 %v868_v20, %v838_v41  ;;  %v845_v4 = vmul.f32 %v1592_v60, %v1592_v60  ;;  %v846_v11 = vmul.f32 %v1603_v3, %v1603_v3 }
 0x112   :  { %v696_v25 = vadd.f32 %v695_v48, %v1537_v36  ;;  %v764_v29 = vadd.f32 %v763_v12, %v733_v22  ;;  %v802_v32 = vadd.f32 %v801_v13, %v1509_v18  ;;  %v736_v36 = vmul.f32 %v1571_v49, %v1571_v49 }
 0x113   :  { %v870_v37 = vadd.f32 %v869_v19, %v839_v23  ;;  %v847_v22 = vmul.f32 %v1622_v10, %v1622_v10  ;;  %v742_v12 = vmul.f32 %v1662_v35, %v1662_v35  ;;  %v848_v23 = vmul.f32 %v1633_v17, %v1633_v17 }
 0x114   :  { %v697_v55 = vadd.f32 %v696_v25, %v1552_v43  ;;  %v765_v42 = vadd.f32 %v764_v29, %v734_v58  ;;  %v803_v6 = vadd.f32 %v802_v32, %v1526_v30  ;;  %v737_v43 = vmul.f32 %v1582_v56, %v1582_v56 }
 0x115   :  { %v871_v1 = vadd.f32 %v870_v37, %v840_v24  ;;  %v743_v25 = vmul.f32 %v1688_v33, %v1688_v33  ;;  %v849_v29 = vmul.f32 %v1654_v26, %v1654_v26  ;;  %v744_v37 = vmul.f32 %v1714_v59, %v1714_v59 }
 0x116   :  { %v766_v44 = vadd.f32 %v765_v42, %v735_v39  ;;  %v698_v47 = vadd.f32 %v697_v55, %v1571_v49  ;;  %v804_v18 = vadd.f32 %v803_v6, %v1544_v40  ;;  %v738_v49 = vmul.f32 %v1601_v63, %v1601_v63 }
 0x117   :  { %v872_v62 = vadd.f32 %v871_v1, %v841_v54  ;;  %v850_v55 = vmul.f32 %v1678_v34, %v1678_v34  ;;  %v745_v6 = vmul.f32 %v1730_v15, %v1730_v15  ;;  %v851_v1 = vmul.f32 %v1704_v31, %v1704_v31 }
 0x118   :  { %v699_v57 = vadd.f32 %v698_v47, %v1582_v56  ;;  %v767_v28 = vadd.f32 %v766_v44, %v736_v36  ;;  %v805_v30 = vadd.f32 %v804_v18, %v1562_v46  ;;  %v739_v56 = vmul.f32 %v1612_v7, %v1612_v7 }
 0x119   :  { %v873_v9 = vadd.f32 %v872_v62, %v842_v27 }
 0x11a   :  { %v700_v52 = vadd.f32 %v699_v57, %v1601_v63  ;;  %v768_v38 = vadd.f32 %v767_v28, %v737_v43  ;;  %v806_v40 = vadd.f32 %v805_v30, %v1573_v53  ;;  %v740_v63 = vmul.f32 %v1631_v14, %v1631_v14 }
 0x11b   :  { %v874_v2 = vadd.f32 %v873_v9, %v843_v16 }
 0x11c   :  { %v701_v5 = vadd.f32 %v700_v52, %v1612_v7  ;;  %v769_v8 = vadd.f32 %v768_v38, %v738_v49  ;;  %v807_v46 = vadd.f32 %v806_v40, %v1592_v60  ;;  %v741_v7 = vmul.f32 %v1642_v21, %v1642_v21 }
 0x11d   :  { %v875_v45 = vadd.f32 %v874_v2, %v844_v61 }
 0x11e   :  { %v702_v51 = vadd.f32 %v701_v5, %v1631_v14  ;;  %v770_v50 = vadd.f32 %v769_v8, %v739_v56  ;;  %v808_v53 = vadd.f32 %v807_v46, %v1603_v3 }
 0x11f   :  { %v876_v0 = vadd.f32 %v875_v45, %v845_v4 }
 0x120   :  { %v703_v41 = vadd.f32 %v702_v51, %v1642_v21  ;;  %v771_v20 = vadd.f32 %v770_v50, %v740_v63  ;;  %v809_v60 = vadd.f32 %v808_v53, %v1622_v10 }
 0x121   :  { %v877_v48 = vadd.f32 %v876_v0, %v846_v11 }
 0x122   :  { %v704_v14 = vadd.f32 %v703_v41, %v1662_v35  ;;  %v772_v13 = vadd.f32 %v771_v20, %v741_v7  ;;  %v810_v3 = vadd.f32 %v809_v60, %v1633_v17 }
 0x123   :  { %v878_v19 = vadd.f32 %v877_v48, %v847_v22 }
 0x124   :  { %v773_v21 = vadd.f32 %v772_v13, %v742_v12  ;;  %v705_v58 = vadd.f32 %v704_v14, %v1688_v33  ;;  %v811_v10 = vadd.f32 %v810_v3, %v1654_v26 }
 0x125   :  { %v879_v32 = vadd.f32 %v878_v19, %v848_v23 }
 0x126   :  { %v774_v35 = vadd.f32 %v773_v21, %v743_v25  ;;  %v706_v24 = vadd.f32 %v705_v58, %v1714_v59  ;;  %v812_v17 = vadd.f32 %v811_v10, %v1678_v34 }
 0x127   :  { %v880_v39 = vadd.f32 %v879_v32, %v849_v29 }
 0x128   :  { %v775_v42 = vadd.f32 %v774_v35, %v744_v37  ;;  %v707_v33 = vadd.f32 %v706_v24, %v1730_v15  ;;  %v813_v26 = vadd.f32 %v812_v17, %v1704_v31 }
 0x129   :  { %v881_v54 = vadd.f32 %v880_v39, %v850_v55 }
 0x12a   :  { %v708_v36 = vrot.slane %v707_v33, 4  ;;  %v776_v59 = vadd.f32 %v775_v42, %v745_v6  ;;  %v814_v44 = vrot.slane %v813_v26, 4 }
 0x12b   :  { %v882_v47 = vadd.f32 %v881_v54, %v851_v1 }
 0x12c   :  { %v709_v18 = vadd.f32 %v708_v36, %v707_v33  ;;  %v777_v27 = vrot.slane %v776_v59, 4  ;;  %v815_v62 = vadd.f32 %v814_v44, %v813_v26 }
 0x12d   :  { %v883_v34 = vrot.slane %v882_v47, 4 }
 0x12e   :  { %v710_v43 = vrot.slane %v709_v18, 2  ;;  %v778_v57 = vadd.f32 %v777_v27, %v776_v59  ;;  %v816_v28 = vrot.slane %v815_v62, 2 }
 0x12f   :  { %v884_v30 = vadd.f32 %v883_v34, %v882_v47 }
 0x130   :  { %v711_v16 = vadd.f32 %v710_v43, %v709_v18  ;;  %v779_v15 = vrot.slane %v778_v57, 2  ;;  %v817_v9 = vadd.f32 %v816_v28, %v815_v62 }
 0x131   :  { %v885_v49 = vrot.slane %v884_v30, 2 }
 0x132   :  { %v712_v52 = vrot.slane %v711_v16, 1  ;;  %v780_v38 = vadd.f32 %v779_v15, %v778_v57  ;;  %v818_v40 = vrot.slane %v817_v9, 1 }
 0x133   :  { %v886_v31 = vadd.f32 %v885_v49, %v884_v30 }
 0x134   :  { %v781_v61 = vrot.slane %v780_v38, 1  ;;  %v713_v56 = vadd.f32 %v712_v52, %v711_v16  ;;  %v819_v8 = vadd.f32 %v818_v40, %v817_v9 }
 0x135   :  { %v887_v2 = vrot.slane %v886_v31, 1 }
 0x136   :  { %v782_v5 = vadd.f32 %v781_v61, %v780_v38 }
 0x137   :  { %v888_v4 = vadd.f32 %v887_v2, %v886_v31 }
 0x138   :  { %v890_v46 = vsel %vm889_vm3, %v713_v56, %v782_v5 }
 0x139   :  { %v891_v45 = vsel %vm202_vm0, %v890_v46, %v819_v8 }
 0x13a   :  { %v893_v63 = vsel %vm892_vm4, %v891_v45, %v888_v4 }
 0x13b   :  { %894 = vst [vmem:[%s1832_s6] sm:$0xf] %v893_v63 }

// kernel: _lambda_.7
= control target key start
LH: loop header
LB: loop body
LE: loop exit
PB: predicated region body
PF: predicated region fallthrough
CT: control target
= control target key end

     0   :  { %s932_s0 = inlined_call_operand.vmem [shape: bf16[256,128], index: 0, kind: input, shape index: {}]   ;;  %s933_s1 = inlined_call_operand.vmem [shape: bf16[256,128], index: 1, kind: input, shape index: {}]   ;;  %s934_s2 = inlined_call_operand.vmem [shape: f32[1,128], index: 2, kind: input, shape index: {}]   ;;  %s935_s3 = inlined_call_operand.vmem [shape: f32[1,128], index: 3, kind: input, shape index: {}]   ;;  %s936_s4 = inlined_call_operand.vmem [shape: f32[1,128], index: 4, kind: input, shape index: {}]   ;;  %s937_s5 = inlined_call_operand.vmem [shape: f32[1,128], index: 5, kind: input, shape index: {}]   ;;  %s938_s6 = inlined_call_operand.vmem [shape: f32[256,128], index: 6, kind: output, shape index: {}]  }
   0x1   :  { %v396_v0 = vld [vmem:[%s932_s0] sm:$0xff]   ;;  %v523_v12 = vld [vmem:[%s932_s0 + $0x8] sm:$0xff]   ;;  %v524_v18 = vld [vmem:[%s932_s0 + $0x10] sm:$0xff]  }
   0x2   :  { %v598_v1 = vld [vmem:[%s934_s2] ss:$0 sm:$0xff]  ;;  %v397_v2 = vunpack.c.l.bf16 %v396_v0  ;;  %v398_v5 = vunpack.c.h.bf16 %v396_v0  ;;  %v538_v13 = vld [vmem:[%s933_s1 + $0x8] sm:$0xff]   ;;  %v401_v16 = vunpack.c.l.bf16 %v523_v12  ;;  %v539_v19 = vld [vmem:[%s933_s1 + $0x10] sm:$0xff]   ;;  %v402_v22 = vunpack.c.h.bf16 %v523_v12 }
   0x3   :  { %v603_v3 = vld [vmem:[%s935_s3] ss:$0 sm:$0xff]  ;;  %v465_v17 = vunpack.c.l.bf16 %v538_v13  ;;  %v466_v23 = vunpack.c.h.bf16 %v538_v13  ;;  %v405_v30 = vunpack.c.l.bf16 %v524_v18  ;;  %v469_v31 = vunpack.c.l.bf16 %v539_v19  ;;  %v525_v40 = vld [vmem:[%s932_s0 + $0x18] sm:$0xff]   ;;  %v527_v12 = vld [vmem:[%s932_s0 + $0x28] sm:$0xff]  }
   0x4   :  { %v460_v4 = vld [vmem:[%s933_s1] sm:$0xff]   ;;  %v91_v9 = vmul.f32 %v598_v1, %v397_v2  ;;  %v92_v11 = vmul.f32 %v598_v1, %v398_v5  ;;  %v93_v26 = vmul.f32 %v598_v1, %v401_v16  ;;  %v94_v28 = vmul.f32 %v598_v1, %v402_v22  ;;  %v540_v41 = vld [vmem:[%s933_s1 + $0x18] sm:$0xff]  }
   0x5   :  { %v461_v6 = vunpack.c.l.bf16 %v460_v4  ;;  %v611_v7 = vld [vmem:[%s936_s4] ss:$0 sm:$0xff]  ;;  %v462_v8 = vunpack.c.h.bf16 %v460_v4  ;;  %v95_v38 = vmul.f32 %v598_v1, %v405_v30  ;;  %v406_v45 = vunpack.c.h.bf16 %v524_v18  ;;  %v528_v30 = vld [vmem:[%s932_s0 + $0x30] sm:$0xff]  }
   0x6   :  { %v617_v10 = vld [vmem:[%s937_s5] ss:$0 sm:$0xff]  ;;  %v127_v20 = vadd.f32 %v603_v3, %v91_v9  ;;  %v128_v21 = vadd.f32 %v603_v3, %v92_v11  ;;  %v229_v27 = vmul.f32 %v611_v7, %v465_v17  ;;  %v230_v29 = vmul.f32 %v611_v7, %v466_v23 }
   0x7   :  { %v227_v14 = vmul.f32 %v611_v7, %v461_v6  ;;  %v228_v15 = vmul.f32 %v611_v7, %v462_v8  ;;  %v129_v34 = vadd.f32 %v603_v3, %v93_v26  ;;  %v130_v36 = vadd.f32 %v603_v3, %v94_v28  ;;  %v526_v54 = vld [vmem:[%s932_s0 + $0x20] sm:$0xff]  }
   0x8   :  { %v265_v35 = vadd.f32 %v617_v10, %v229_v27  ;;  %v266_v37 = vadd.f32 %v617_v10, %v230_v29  ;;  %v231_v39 = vmul.f32 %v611_v7, %v469_v31  ;;  %v131_v47 = vadd.f32 %v603_v3, %v95_v38  ;;  %v541_v59 = vld [vmem:[%s933_s1 + $0x20] sm:$0xff]  }
   0x9   :  { %v263_v24 = vadd.f32 %v617_v10, %v227_v14  ;;  %v264_v25 = vadd.f32 %v617_v10, %v228_v15  ;;  %v470_v49 = vunpack.c.h.bf16 %v539_v19  ;;  %v96_v51 = vmul.f32 %v598_v1, %v406_v45 }
   0xa   :  { %v297_v44 = vadd.f32 %v265_v35, %v129_v34  ;;  %v298_v46 = vadd.f32 %v266_v37, %v130_v36  ;;  %v267_v48 = vadd.f32 %v617_v10, %v231_v39  ;;  %v409_v52 = vunpack.c.l.bf16 %v525_v40  ;;  %v543_v35 = vld [vmem:[%s933_s1 + $0x30] sm:$0xff]  }
   0xb   :  { %v295_v32 = vadd.f32 %v263_v24, %v127_v20  ;;  %v296_v33 = vadd.f32 %v264_v25, %v128_v21  ;;  %v473_v53 = vunpack.c.l.bf16 %v540_v41  ;;  %v232_v57 = vmul.f32 %v611_v7, %v470_v49  ;;  %v542_v21 = vld [vmem:[%s933_s1 + $0x28] sm:$0xff]  }
   0xc   :  { %v329_v50 = vmax.f32 %v297_v44, 0.0  ;;  %v330_v55 = vmax.f32 %v298_v46, 0.0  ;;  %v299_v56 = vadd.f32 %v267_v48, %v131_v47  ;;  %v410_v58 = vunpack.c.h.bf16 %v525_v40  ;;  %v529_v48 = vld [vmem:[%s932_s0 + $0x38] sm:$0xff]  }
   0xd   :  { %v327_v42 = vmax.f32 %v295_v32, 0.0  ;;  %v328_v43 = vmax.f32 %v296_v33, 0.0  ;;  %v132_v60 = vadd.f32 %v603_v3, %v96_v51  ;;  %v97_v61 = vmul.f32 %v598_v1, %v409_v52 }
   0xe   :  { %361 = vst [vmem:[%s938_s6 + $0x10] sm:$0xff] %v329_v50  ;;  %v233_v62 = vmul.f32 %v611_v7, %v473_v53  ;;  %v474_v63 = vunpack.c.h.bf16 %v540_v41  ;;  %v331_v0 = vmax.f32 %v299_v56, 0.0  ;;  %v268_v2 = vadd.f32 %v617_v10, %v232_v57  ;;  %v544_v53 = vld [vmem:[%s933_s1 + $0x38] sm:$0xff]  }
   0xf   :  { %359 = vst [vmem:[%s938_s6] sm:$0xff] %v327_v42  ;;  %v98_v4 = vmul.f32 %v598_v1, %v410_v58  ;;  %v413_v5 = vunpack.c.l.bf16 %v526_v54  ;;  %v133_v6 = vadd.f32 %v603_v3, %v97_v61  ;;  %v477_v11 = vunpack.c.l.bf16 %v541_v59 }
  0x10   :  { %360 = vst [vmem:[%s938_s6 + $0x8] sm:$0xff] %v328_v43  ;;  %v269_v8 = vadd.f32 %v617_v10, %v233_v62  ;;  %v234_v9 = vmul.f32 %v611_v7, %v474_v63  ;;  %v300_v13 = vadd.f32 %v268_v2, %v132_v60  ;;  %v414_v16 = vunpack.c.h.bf16 %v526_v54 }
  0x11   :  { %362 = vst [vmem:[%s938_s6 + $0x18] sm:$0xff] %v330_v55  ;;  %v134_v14 = vadd.f32 %v603_v3, %v98_v4  ;;  %v99_v15 = vmul.f32 %v598_v1, %v413_v5  ;;  %v235_v19 = vmul.f32 %v611_v7, %v477_v11  ;;  %v478_v20 = vunpack.c.h.bf16 %v541_v59  ;;  %v530_v4 = vld [vmem:[%s932_s0 + $0x40] sm:$0xff]  }
  0x12   :  { %363 = vst [vmem:[%s938_s6 + $0x20] sm:$0xff] %v331_v0  ;;  %v301_v17 = vadd.f32 %v269_v8, %v133_v6  ;;  %v270_v18 = vadd.f32 %v617_v10, %v234_v9  ;;  %v332_v22 = vmax.f32 %v300_v13, 0.0  ;;  %v100_v24 = vmul.f32 %v598_v1, %v414_v16  ;;  %v545_v11 = vld [vmem:[%s933_s1 + $0x40] sm:$0xff]  }
  0x13   :  { %v135_v23 = vadd.f32 %v603_v3, %v99_v15  ;;  %v417_v25 = vunpack.c.l.bf16 %v527_v12  ;;  %v271_v28 = vadd.f32 %v617_v10, %v235_v19  ;;  %v236_v29 = vmul.f32 %v611_v7, %v478_v20 }
  0x14   :  { %v333_v26 = vmax.f32 %v301_v17, 0.0  ;;  %v302_v27 = vadd.f32 %v270_v18, %v134_v14  ;;  %364 = vst [vmem:[%s938_s6 + $0x28] sm:$0xff] %v332_v22  ;;  %v136_v31 = vadd.f32 %v603_v3, %v100_v24  ;;  %v481_v33 = vunpack.c.l.bf16 %v542_v21  ;;  %v531_v24 = vld [vmem:[%s932_s0 + $0x48] sm:$0xff]  }
  0x15   :  { %v101_v32 = vmul.f32 %v598_v1, %v417_v25  ;;  %v418_v34 = vunpack.c.h.bf16 %v527_v12  ;;  %v303_v37 = vadd.f32 %v271_v28, %v135_v23  ;;  %v272_v38 = vadd.f32 %v617_v10, %v236_v29  ;;  %v546_v29 = vld [vmem:[%s933_s1 + $0x48] sm:$0xff]  }
  0x16   :  { %365 = vst [vmem:[%s938_s6 + $0x30] sm:$0xff] %v333_v26  ;;  %v334_v36 = vmax.f32 %v302_v27, 0.0  ;;  %v482_v39 = vunpack.c.h.bf16 %v542_v21  ;;  %v237_v41 = vmul.f32 %v611_v7, %v481_v33  ;;  %v421_v43 = vunpack.c.l.bf16 %v528_v30 }
  0x17   :  { %v137_v40 = vadd.f32 %v603_v3, %v101_v32  ;;  %v102_v42 = vmul.f32 %v598_v1, %v418_v34  ;;  %v335_v44 = vmax.f32 %v303_v37, 0.0  ;;  %v304_v45 = vadd.f32 %v272_v38, %v136_v31 }
  0x18   :  { %366 = vst [vmem:[%s938_s6 + $0x38] sm:$0xff] %v334_v36  ;;  %v238_v46 = vmul.f32 %v611_v7, %v482_v39  ;;  %v485_v47 = vunpack.c.l.bf16 %v543_v35  ;;  %v273_v49 = vadd.f32 %v617_v10, %v237_v41  ;;  %v103_v51 = vmul.f32 %v598_v1, %v421_v43 }
  0x19   :  { %v138_v50 = vadd.f32 %v603_v3, %v102_v42  ;;  %v422_v52 = vunpack.c.h.bf16 %v528_v30  ;;  %367 = vst [vmem:[%s938_s6 + $0x40] sm:$0xff] %v335_v44  ;;  %v336_v54 = vmax.f32 %v304_v45, 0.0  ;;  %v486_v57 = vunpack.c.h.bf16 %v543_v35  ;;  %v532_v42 = vld [vmem:[%s932_s0 + $0x50] sm:$0xff]  }
  0x1a   :  { %v274_v55 = vadd.f32 %v617_v10, %v238_v46  ;;  %v239_v56 = vmul.f32 %v611_v7, %v485_v47  ;;  %v305_v58 = vadd.f32 %v273_v49, %v137_v40  ;;  %v139_v59 = vadd.f32 %v603_v3, %v103_v51  ;;  %v547_v51 = vld [vmem:[%s933_s1 + $0x50] sm:$0xff]  }
  0x1b   :  { %v104_v60 = vmul.f32 %v598_v1, %v422_v52  ;;  %v425_v61 = vunpack.c.l.bf16 %v529_v48  ;;  %368 = vst [vmem:[%s938_s6 + $0x48] sm:$0xff] %v336_v54  ;;  %v240_v0 = vmul.f32 %v611_v7, %v486_v57  ;;  %v489_v2 = vunpack.c.l.bf16 %v544_v53 }
  0x1c   :  { %v306_v62 = vadd.f32 %v274_v55, %v138_v50  ;;  %v275_v63 = vadd.f32 %v617_v10, %v239_v56  ;;  %v337_v5 = vmax.f32 %v305_v58, 0.0  ;;  %v426_v9 = vunpack.c.h.bf16 %v529_v48 }
  0x1d   :  { %v140_v6 = vadd.f32 %v603_v3, %v104_v60  ;;  %v105_v8 = vmul.f32 %v598_v1, %v425_v61  ;;  %v276_v14 = vadd.f32 %v617_v10, %v240_v0  ;;  %v241_v15 = vmul.f32 %v611_v7, %v489_v2  ;;  %v533_v60 = vld [vmem:[%s932_s0 + $0x58] sm:$0xff]  }
  0x1e   :  { %v338_v12 = vmax.f32 %v306_v62, 0.0  ;;  %v307_v13 = vadd.f32 %v275_v63, %v139_v59  ;;  %369 = vst [vmem:[%s938_s6 + $0x50] sm:$0xff] %v337_v5  ;;  %v106_v17 = vmul.f32 %v598_v1, %v426_v9  ;;  %v490_v18 = vunpack.c.h.bf16 %v544_v53  ;;  %v548_v2 = vld [vmem:[%s933_s1 + $0x58] sm:$0xff]  }
  0x1f   :  { %v141_v16 = vadd.f32 %v603_v3, %v105_v8  ;;  %v429_v19 = vunpack.c.l.bf16 %v530_v4  ;;  %v308_v21 = vadd.f32 %v276_v14, %v140_v6  ;;  %v277_v22 = vadd.f32 %v617_v10, %v241_v15 }
  0x20   :  { %370 = vst [vmem:[%s938_s6 + $0x58] sm:$0xff] %v338_v12  ;;  %v339_v20 = vmax.f32 %v307_v13, 0.0  ;;  %v493_v23 = vunpack.c.l.bf16 %v545_v11  ;;  %v142_v25 = vadd.f32 %v603_v3, %v106_v17  ;;  %v242_v26 = vmul.f32 %v611_v7, %v490_v18  ;;  %v534_v18 = vld [vmem:[%s932_s0 + $0x60] sm:$0xff]  }
  0x21   :  { %v107_v27 = vmul.f32 %v598_v1, %v429_v19  ;;  %v430_v28 = vunpack.c.h.bf16 %v530_v4  ;;  %v340_v30 = vmax.f32 %v308_v21, 0.0  ;;  %v309_v31 = vadd.f32 %v277_v22, %v141_v16 }
  0x22   :  { %371 = vst [vmem:[%s938_s6 + $0x60] sm:$0xff] %v339_v20  ;;  %v243_v32 = vmul.f32 %v611_v7, %v493_v23  ;;  %v494_v33 = vunpack.c.h.bf16 %v545_v11  ;;  %v278_v34 = vadd.f32 %v617_v10, %v242_v26  ;;  %v433_v37 = vunpack.c.l.bf16 %v531_v24  ;;  %v549_v23 = vld [vmem:[%s933_s1 + $0x60] sm:$0xff]  }
  0x23   :  { %v143_v35 = vadd.f32 %v603_v3, %v107_v27  ;;  %v108_v36 = vmul.f32 %v598_v1, %v430_v28  ;;  %372 = vst [vmem:[%s938_s6 + $0x68] sm:$0xff] %v340_v30  ;;  %v341_v38 = vmax.f32 %v309_v31, 0.0  ;;  %v497_v41 = vunpack.c.l.bf16 %v546_v29 }
  0x24   :  { %v279_v39 = vadd.f32 %v617_v10, %v243_v32  ;;  %v244_v40 = vmul.f32 %v611_v7, %v494_v33  ;;  %v310_v43 = vadd.f32 %v278_v34, %v142_v25  ;;  %v109_v45 = vmul.f32 %v598_v1, %v433_v37 }
  0x25   :  { %v144_v44 = vadd.f32 %v603_v3, %v108_v36  ;;  %v434_v46 = vunpack.c.h.bf16 %v531_v24  ;;  %373 = vst [vmem:[%s938_s6 + $0x70] sm:$0xff] %v341_v38  ;;  %v245_v49 = vmul.f32 %v611_v7, %v497_v41  ;;  %v498_v50 = vunpack.c.h.bf16 %v546_v29  ;;  %v535_v36 = vld [vmem:[%s932_s0 + $0x68] sm:$0xff]  }
  0x26   :  { %v311_v47 = vadd.f32 %v279_v39, %v143_v35  ;;  %v280_v48 = vadd.f32 %v617_v10, %v244_v40  ;;  %v342_v52 = vmax.f32 %v310_v43, 0.0  ;;  %v145_v53 = vadd.f32 %v603_v3, %v109_v45  ;;  %v550_v41 = vld [vmem:[%s933_s1 + $0x68] sm:$0xff]  }
  0x27   :  { %v110_v54 = vmul.f32 %v598_v1, %v434_v46  ;;  %v437_v55 = vunpack.c.l.bf16 %v532_v42  ;;  %v281_v58 = vadd.f32 %v617_v10, %v245_v49  ;;  %v246_v59 = vmul.f32 %v611_v7, %v498_v50 }
  0x28   :  { %v343_v56 = vmax.f32 %v311_v47, 0.0  ;;  %v312_v57 = vadd.f32 %v280_v48, %v144_v44  ;;  %374 = vst [vmem:[%s938_s6 + $0x78] sm:$0xff] %v342_v52  ;;  %v501_v63 = vunpack.c.l.bf16 %v547_v51  ;;  %v438_v0 = vunpack.c.h.bf16 %v532_v42 }
  0x29   :  { %v146_v61 = vadd.f32 %v603_v3, %v110_v54  ;;  %v111_v62 = vmul.f32 %v598_v1, %v437_v55  ;;  %v313_v5 = vadd.f32 %v281_v58, %v145_v53  ;;  %v282_v6 = vadd.f32 %v617_v10, %v246_v59  ;;  %v536_v54 = vld [vmem:[%s932_s0 + $0x70] sm:$0xff]  }
  0x2a   :  { %375 = vst [vmem:[%s938_s6 + $0x80] sm:$0xff] %v343_v56  ;;  %v344_v4 = vmax.f32 %v312_v57, 0.0  ;;  %v502_v8 = vunpack.c.h.bf16 %v547_v51  ;;  %v247_v11 = vmul.f32 %v611_v7, %v501_v63  ;;  %v112_v12 = vmul.f32 %v598_v1, %v438_v0  ;;  %v551_v59 = vld [vmem:[%s933_s1 + $0x70] sm:$0xff]  }
  0x2b   :  { %v147_v9 = vadd.f32 %v603_v3, %v111_v62  ;;  %v441_v13 = vunpack.c.l.bf16 %v533_v60  ;;  %v345_v14 = vmax.f32 %v313_v5, 0.0  ;;  %v314_v15 = vadd.f32 %v282_v6, %v146_v61 }
  0x2c   :  { %376 = vst [vmem:[%s938_s6 + $0x88] sm:$0xff] %v344_v4  ;;  %v248_v16 = vmul.f32 %v611_v7, %v502_v8  ;;  %v505_v17 = vunpack.c.l.bf16 %v548_v2  ;;  %v283_v19 = vadd.f32 %v617_v10, %v247_v11  ;;  %v148_v20 = vadd.f32 %v603_v3, %v112_v12  ;;  %v537_v12 = vld [vmem:[%s932_s0 + $0x78] sm:$0xff]  }
  0x2d   :  { %v113_v21 = vmul.f32 %v598_v1, %v441_v13  ;;  %v442_v22 = vunpack.c.h.bf16 %v533_v60  ;;  %377 = vst [vmem:[%s938_s6 + $0x90] sm:$0xff] %v345_v14  ;;  %v346_v24 = vmax.f32 %v314_v15, 0.0  ;;  %v506_v27 = vunpack.c.h.bf16 %v548_v2 }
  0x2e   :  { %v284_v25 = vadd.f32 %v617_v10, %v248_v16  ;;  %v249_v26 = vmul.f32 %v611_v7, %v505_v17  ;;  %v315_v28 = vadd.f32 %v283_v19, %v147_v9  ;;  %v445_v31 = vunpack.c.l.bf16 %v534_v18 }
  0x2f   :  { %v149_v29 = vadd.f32 %v603_v3, %v113_v21  ;;  %v114_v30 = vmul.f32 %v598_v1, %v442_v22  ;;  %378 = vst [vmem:[%s938_s6 + $0x98] sm:$0xff] %v346_v24  ;;  %v250_v34 = vmul.f32 %v611_v7, %v506_v27  ;;  %v509_v35 = vunpack.c.l.bf16 %v549_v23  ;;  %v552_v21 = vld [vmem:[%s933_s1 + $0x78] sm:$0xff]  }
  0x30   :  { %v316_v32 = vadd.f32 %v284_v25, %v148_v20  ;;  %v285_v33 = vadd.f32 %v617_v10, %v249_v26  ;;  %v347_v37 = vmax.f32 %v315_v28, 0.0  ;;  %v115_v39 = vmul.f32 %v598_v1, %v445_v31 }
  0x31   :  { %v150_v38 = vadd.f32 %v603_v3, %v114_v30  ;;  %v446_v40 = vunpack.c.h.bf16 %v534_v18  ;;  %v286_v44 = vadd.f32 %v617_v10, %v250_v34  ;;  %v251_v45 = vmul.f32 %v611_v7, %v509_v35 }
  0x32   :  { %v348_v42 = vmax.f32 %v316_v32, 0.0  ;;  %v317_v43 = vadd.f32 %v285_v33, %v149_v29  ;;  %379 = vst [vmem:[%s938_s6 + $0xa0] sm:$0xff] %v347_v37  ;;  %v151_v46 = vadd.f32 %v603_v3, %v115_v39  ;;  %v510_v48 = vunpack.c.h.bf16 %v549_v23 }
  0x33   :  { %v116_v47 = vmul.f32 %v598_v1, %v446_v40  ;;  %v449_v49 = vunpack.c.l.bf16 %v535_v36  ;;  %v318_v51 = vadd.f32 %v286_v44, %v150_v38  ;;  %v287_v52 = vadd.f32 %v617_v10, %v251_v45 }
  0x34   :  { %380 = vst [vmem:[%s938_s6 + $0xa8] sm:$0xff] %v348_v42  ;;  %v349_v50 = vmax.f32 %v317_v43, 0.0  ;;  %v513_v53 = vunpack.c.l.bf16 %v550_v41  ;;  %v252_v56 = vmul.f32 %v611_v7, %v510_v48  ;;  %v450_v58 = vunpack.c.h.bf16 %v535_v36 }
  0x35   :  { %v152_v55 = vadd.f32 %v603_v3, %v116_v47  ;;  %v117_v57 = vmul.f32 %v598_v1, %v449_v49  ;;  %v350_v60 = vmax.f32 %v318_v51, 0.0  ;;  %v319_v61 = vadd.f32 %v287_v52, %v151_v46 }
  0x36   :  { %381 = vst [vmem:[%s938_s6 + $0xb0] sm:$0xff] %v349_v50  ;;  %v253_v62 = vmul.f32 %v611_v7, %v513_v53  ;;  %v514_v63 = vunpack.c.h.bf16 %v550_v41  ;;  %v288_v0 = vadd.f32 %v617_v10, %v252_v56  ;;  %v118_v4 = vmul.f32 %v598_v1, %v450_v58 }
  0x37   :  { %v153_v2 = vadd.f32 %v603_v3, %v117_v57  ;;  %v453_v5 = vunpack.c.l.bf16 %v536_v54  ;;  %382 = vst [vmem:[%s938_s6 + $0xb8] sm:$0xff] %v350_v60  ;;  %v351_v6 = vmax.f32 %v319_v61, 0.0  ;;  %v517_v11 = vunpack.c.l.bf16 %v551_v59 }
  0x38   :  { %v289_v8 = vadd.f32 %v617_v10, %v253_v62  ;;  %v254_v9 = vmul.f32 %v611_v7, %v514_v63  ;;  %v320_v13 = vadd.f32 %v288_v0, %v152_v55  ;;  %v154_v14 = vadd.f32 %v603_v3, %v118_v4 }
  0x39   :  { %v119_v15 = vmul.f32 %v598_v1, %v453_v5  ;;  %v454_v16 = vunpack.c.h.bf16 %v536_v54  ;;  %383 = vst [vmem:[%s938_s6 + $0xc0] sm:$0xff] %v351_v6  ;;  %v255_v19 = vmul.f32 %v611_v7, %v517_v11  ;;  %v518_v20 = vunpack.c.h.bf16 %v551_v59 }
  0x3a   :  { %v321_v17 = vadd.f32 %v289_v8, %v153_v2  ;;  %v290_v18 = vadd.f32 %v617_v10, %v254_v9  ;;  %v352_v22 = vmax.f32 %v320_v13, 0.0  ;;  %v457_v25 = vunpack.c.l.bf16 %v537_v12 }
  0x3b   :  { %v155_v23 = vadd.f32 %v603_v3, %v119_v15  ;;  %v120_v24 = vmul.f32 %v598_v1, %v454_v16  ;;  %v291_v28 = vadd.f32 %v617_v10, %v255_v19  ;;  %v256_v29 = vmul.f32 %v611_v7, %v518_v20 }
  0x3c   :  { %v353_v26 = vmax.f32 %v321_v17, 0.0  ;;  %v322_v27 = vadd.f32 %v290_v18, %v154_v14  ;;  %384 = vst [vmem:[%s938_s6 + $0xc8] sm:$0xff] %v352_v22  ;;  %v121_v31 = vmul.f32 %v598_v1, %v457_v25  ;;  %v521_v32 = vunpack.c.l.bf16 %v552_v21 }
  0x3d   :  { %v156_v30 = vadd.f32 %v603_v3, %v120_v24  ;;  %v458_v33 = vunpack.c.h.bf16 %v537_v12  ;;  %v323_v35 = vadd.f32 %v291_v28, %v155_v23  ;;  %v292_v36 = vadd.f32 %v617_v10, %v256_v29 }
  0x3e   :  { %385 = vst [vmem:[%s938_s6 + $0xd0] sm:$0xff] %v353_v26  ;;  %v354_v34 = vmax.f32 %v322_v27, 0.0  ;;  %v522_v37 = vunpack.c.h.bf16 %v552_v21  ;;  %v157_v38 = vadd.f32 %v603_v3, %v121_v31  ;;  %v257_v39 = vmul.f32 %v611_v7, %v521_v32 }
  0x3f   :  { %v122_v40 = vmul.f32 %v598_v1, %v458_v33  ;;  %v355_v41 = vmax.f32 %v323_v35, 0.0  ;;  %v324_v42 = vadd.f32 %v292_v36, %v156_v30 }
  0x40   :  { %386 = vst [vmem:[%s938_s6 + $0xd8] sm:$0xff] %v354_v34  ;;  %v258_v43 = vmul.f32 %v611_v7, %v522_v37  ;;  %v293_v44 = vadd.f32 %v617_v10, %v257_v39 }
  0x41   :  { %v158_v45 = vadd.f32 %v603_v3, %v122_v40  ;;  %387 = vst [vmem:[%s938_s6 + $0xe0] sm:$0xff] %v355_v41  ;;  %v356_v46 = vmax.f32 %v324_v42, 0.0 }
  0x42   :  { %v294_v47 = vadd.f32 %v617_v10, %v258_v43  ;;  %v325_v1 = vadd.f32 %v293_v44, %v157_v38 }
  0x43   :  { %388 = vst [vmem:[%s938_s6 + $0xe8] sm:$0xff] %v356_v46 }
  0x44   :  { %v326_v48 = vadd.f32 %v294_v47, %v158_v45  ;;  %v357_v49 = vmax.f32 %v325_v1, 0.0 }
  0x46   :  { %v358_v50 = vmax.f32 %v326_v48, 0.0  ;;  %389 = vst [vmem:[%s938_s6 + $0xf0] sm:$0xff] %v357_v49 }
  0x48   :  { %390 = vst [vmem:[%s938_s6 + $0xf8] sm:$0xff] %v358_v50 }

// kernel: _lambda_.6
= control target key start
LH: loop header
LB: loop body
LE: loop exit
PB: predicated region body
PF: predicated region fallthrough
CT: control target
= control target key end

     0   :  { %vm2456_vm0 = vcmask 1040384   ;;  %s5009_s1 = inlined_call_operand.vmem [shape: bf16[1152,128], index: 1, kind: input, shape index: {}]   ;;  %s5010_s0 = inlined_call_operand.vmem [shape: bf16[256,1152], index: 0, kind: input, shape index: {}]   ;;  %s5011_s2 = inlined_call_operand.vmem [shape: bf16[256,128], index: 2, kind: output, shape index: {0}]   ;;  %s5012_s3 = inlined_call_operand.vmem [shape: f32[1,2,128], index: 3, kind: output, shape index: {1}]  }
   0x1   :  { %v3482_v0 = vld [vmem:[%s5009_s1 + $0x38] sm:$0xff]  ;;  %v3481_v1 = vld [vmem:[%s5009_s1 + $0x30] sm:$0xff]  ;;  %v3480_v2 = vld [vmem:[%s5009_s1 + $0x28] sm:$0xff] }
   0x2   :  { %3642 = vmatpush.bf16.msra.mxu1 %v3482_v0  ;;  %3643 = vmatpush.bf16.msra.mxu2 %v3482_v0  ;;  %v3479_v3 = vld [vmem:[%s5009_s1 + $0x20] sm:$0xff]  ;;  %v3478_v4 = vld [vmem:[%s5009_s1 + $0x18] sm:$0xff]  ;;  %v3477_v5 = vld [vmem:[%s5009_s1 + $0x10] sm:$0xff] }
   0x3   :  { %3644 = vmatpush.bf16.msra.mxu3 %v3482_v0  ;;  %1485 = vmatpush.bf16.msra.mxu0 %v3482_v0  ;;  %v3476_v6 = vld [vmem:[%s5009_s1 + $0x8] sm:$0xff]  ;;  %v3475_v7 = vld [vmem:[%s5009_s1] sm:$0xff]  ;;  %v3498_v16 = vld [vmem:[%s5009_s1 + $0xb8] sm:$0xff] }
   0x4   :  { %v2613_v8 = vld [vmem:[%s5010_s0 + $0x120] sm:$0xf]  ;;  %v3371_v9 = vld [vmem:[%s5010_s0 + $0x140] sm:$0xf0]  ;;  %v3506_v17 = vld [vmem:[%s5009_s1 + $0xf8] sm:$0xff] }
   0x5   :  { %v2757_v10 = vld [vmem:[%s5010_s0 + $0x240] sm:$0xf]  ;;  %v3407_v11 = vld [vmem:[%s5010_s0 + $0x260] sm:$0xf0]  ;;  %v2614_v18 = vor.u32 %v3371_v9, %v2613_v8  ;;  %v3490_v22 = vld [vmem:[%s5009_s1 + $0x78] sm:$0xff] }
   0x6   :  { %3645 = vmatpush.bf16.msra.mxu1 %v3481_v1  ;;  %3646 = vmatpush.bf16.msra.mxu2 %v3481_v1  ;;  %v2901_v12 = vld [vmem:[%s5010_s0 + $0x360] sm:$0xf]  ;;  %v3443_v13 = vld [vmem:[%s5010_s0 + $0x380] sm:$0xf0]  ;;  %v2758_v19 = vor.u32 %v3407_v11, %v2757_v10  ;;  %v3514_v23 = vld [vmem:[%s5009_s1 + $0x138] sm:$0xff] }
   0x7   :  { %3647 = vmatpush.bf16.msra.mxu3 %v3481_v1  ;;  %1486 = vmatpush.bf16.msra.mxu0 %v3481_v1  ;;  %v2469_v14 = vld [vmem:[%s5010_s0] sm:$0xf]  ;;  %v3335_v15 = vld [vmem:[%s5010_s0 + $0x20] sm:$0xf0]  ;;  %v2902_v20 = vor.u32 %v3443_v13, %v2901_v12  ;;  %v3497_v24 = vld [vmem:[%s5009_s1 + $0xb0] sm:$0xff] }
   0x8   :  { %v2470_v21 = vor.u32 %v3335_v15, %v2469_v14  ;;  %v3505_v25 = vld [vmem:[%s5009_s1 + $0xf0] sm:$0xff]  ;;  %v3496_v28 = vld [vmem:[%s5009_s1 + $0xa8] sm:$0xff]  ;;  %v3495_v33 = vld [vmem:[%s5009_s1 + $0xa0] sm:$0xff] }
   0x9   :  { %v3489_v26 = vld [vmem:[%s5009_s1 + $0x70] sm:$0xff]  ;;  %v3504_v29 = vld [vmem:[%s5009_s1 + $0xe8] sm:$0xff]  ;;  %v3503_v34 = vld [vmem:[%s5009_s1 + $0xe0] sm:$0xff] }
   0xa   :  { %3648 = vmatpush.bf16.msra.mxu1 %v3480_v2  ;;  %3649 = vmatpush.bf16.msra.mxu2 %v3480_v2  ;;  %v3513_v27 = vld [vmem:[%s5009_s1 + $0x130] sm:$0xff]  ;;  %v3488_v30 = vld [vmem:[%s5009_s1 + $0x68] sm:$0xff]  ;;  %v3487_v42 = vld [vmem:[%s5009_s1 + $0x60] sm:$0xff] }
   0xb   :  { %3650 = vmatpush.bf16.msra.mxu3 %v3480_v2  ;;  %1487 = vmatpush.bf16.msra.mxu0 %v3480_v2  ;;  %v3512_v31 = vld [vmem:[%s5009_s1 + $0x128] sm:$0xff]  ;;  %v3511_v43 = vld [vmem:[%s5009_s1 + $0x120] sm:$0xff]  ;;  %v3494_v44 = vld [vmem:[%s5009_s1 + $0x98] sm:$0xff] }
   0xc   :  { %v2649_v32 = vld [vmem:[%s5010_s0 + $0x168] sm:$0xf]  ;;  %v3380_v35 = vld [vmem:[%s5010_s0 + $0x188] sm:$0xf0]  ;;  %v3502_v45 = vld [vmem:[%s5009_s1 + $0xd8] sm:$0xff] }
   0xd   :  { %v2793_v36 = vld [vmem:[%s5010_s0 + $0x288] sm:$0xf]  ;;  %v3416_v37 = vld [vmem:[%s5010_s0 + $0x2a8] sm:$0xf0]  ;;  %v2650_v46 = vor.u32 %v3380_v35, %v2649_v32  ;;  %v3486_v50 = vld [vmem:[%s5009_s1 + $0x58] sm:$0xff] }
   0xe   :  { %3651 = vmatpush.bf16.msra.mxu1 %v3479_v3  ;;  %3652 = vmatpush.bf16.msra.mxu2 %v3479_v3  ;;  %v2937_v38 = vld [vmem:[%s5010_s0 + $0x3a8] sm:$0xf]  ;;  %v3452_v39 = vld [vmem:[%s5010_s0 + $0x3c8] sm:$0xf0]  ;;  %v2794_v47 = vor.u32 %v3416_v37, %v2793_v36  ;;  %v3510_v51 = vld [vmem:[%s5009_s1 + $0x118] sm:$0xff] }
   0xf   :  { %3653 = vmatpush.bf16.msra.mxu3 %v3479_v3  ;;  %1488 = vmatpush.bf16.msra.mxu0 %v3479_v3  ;;  %v2505_v40 = vld [vmem:[%s5010_s0 + $0x48] sm:$0xf]  ;;  %v3344_v41 = vld [vmem:[%s5010_s0 + $0x68] sm:$0xf0]  ;;  %v2938_v48 = vor.u32 %v3452_v39, %v2937_v38  ;;  %v3493_v52 = vld [vmem:[%s5009_s1 + $0x90] sm:$0xff] }
  0x10   :  { %v2506_v49 = vor.u32 %v3344_v41, %v2505_v40  ;;  %v3501_v53 = vld [vmem:[%s5009_s1 + $0xd0] sm:$0xff]  ;;  %v3492_v56 = vld [vmem:[%s5009_s1 + $0x88] sm:$0xff]  ;;  %v3491_v61 = vld [vmem:[%s5009_s1 + $0x80] sm:$0xff] }
  0x11   :  { %v3485_v54 = vld [vmem:[%s5009_s1 + $0x50] sm:$0xff]  ;;  %v3500_v57 = vld [vmem:[%s5009_s1 + $0xc8] sm:$0xff]  ;;  %v3499_v62 = vld [vmem:[%s5009_s1 + $0xc0] sm:$0xff] }
  0x12   :  { %3654 = vmatpush.bf16.msra.mxu1 %v3478_v4  ;;  %3655 = vmatpush.bf16.msra.mxu2 %v3478_v4  ;;  %v3509_v55 = vld [vmem:[%s5009_s1 + $0x110] sm:$0xff]  ;;  %v3484_v58 = vld [vmem:[%s5009_s1 + $0x48] sm:$0xff]  ;;  %v3530_v12 = vld [vmem:[%s5009_s1 + $0x1b8] sm:$0xff] }
  0x13   :  { %3656 = vmatpush.bf16.msra.mxu3 %v3478_v4  ;;  %1489 = vmatpush.bf16.msra.mxu0 %v3478_v4  ;;  %v3508_v59 = vld [vmem:[%s5009_s1 + $0x108] sm:$0xff]  ;;  %v2685_v60 = vld [vmem:[%s5010_s0 + $0x1b0] sm:$0xf]  ;;  %v3389_v63 = vld [vmem:[%s5010_s0 + $0x1d0] sm:$0xf0] }
  0x14   :  { %v2829_v0 = vld [vmem:[%s5010_s0 + $0x2d0] sm:$0xf]  ;;  %v3425_v1 = vld [vmem:[%s5010_s0 + $0x2f0] sm:$0xf0]  ;;  %v2686_v8 = vor.u32 %v3389_v63, %v2685_v60  ;;  %v3538_v13 = vld [vmem:[%s5009_s1 + $0x1f8] sm:$0xff] }
  0x15   :  { %v2973_v2 = vld [vmem:[%s5010_s0 + $0x3f0] sm:$0xf]  ;;  %v3461_v3 = vld [vmem:[%s5010_s0 + $0x410] sm:$0xf0]  ;;  %v2830_v9 = vor.u32 %v3425_v1, %v2829_v0  ;;  %v3522_v14 = vld [vmem:[%s5009_s1 + $0x178] sm:$0xff] }
  0x16   :  { %3657 = vmatpush.bf16.msra.mxu1 %v3477_v5  ;;  %3658 = vmatpush.bf16.msra.mxu2 %v3477_v5  ;;  %v2541_v4 = vld [vmem:[%s5010_s0 + $0x90] sm:$0xf]  ;;  %v2974_v10 = vor.u32 %v3461_v3, %v2973_v2  ;;  %v3546_v15 = vld [vmem:[%s5009_s1 + $0x238] sm:$0xff]  ;;  %v3332_v32 = vld [vmem:[%s5010_s0 + $0xc] sm:$0xf] }
  0x17   :  { %3659 = vmatpush.bf16.msra.mxu3 %v3477_v5  ;;  %1490 = vmatpush.bf16.msra.mxu0 %v3477_v5  ;;  %v3353_v5 = vld [vmem:[%s5010_s0 + $0xb0] sm:$0xf0]  ;;  %v3350_v60 = vld [vmem:[%s5010_s0 + $0x9c] sm:$0xf]  ;;  %v3355_v63 = vld [vmem:[%s5010_s0 + $0xc0] sm:$0xf0] }
  0x18   :  { %v2542_v11 = vor.u32 %v3353_v5, %v2541_v4  ;;  %v3337_v35 = vld [vmem:[%s5010_s0 + $0x30] sm:$0xf0]  ;;  %v3528_v4 = vld [vmem:[%s5009_s1 + $0x1a8] sm:$0xff] }
  0x19   :  { %v3529_v40 = vld [vmem:[%s5009_s1 + $0x1b0] sm:$0xff]  ;;  %v3536_v5 = vld [vmem:[%s5009_s1 + $0x1e8] sm:$0xff] }
  0x1a   :  { %3660 = vmatpush.bf16.msra.mxu1 %v3476_v6  ;;  %3661 = vmatpush.bf16.msra.mxu2 %v3476_v6  ;;  %v3537_v41 = vld [vmem:[%s5009_s1 + $0x1f0] sm:$0xff] }
  0x1b   :  { %3662 = vmatpush.bf16.msra.mxu3 %v3476_v6  ;;  %1491 = vmatpush.bf16.msra.mxu0 %v3476_v6  ;;  %v3483_v6 = vld [vmem:[%s5009_s1 + $0x40] sm:$0xff] }
  0x1e   :  { %3663 = vmatpush.bf16.msra.mxu1 %v3475_v7  ;;  %3664 = vmatpush.bf16.msra.mxu2 %v3475_v7 }
  0x1f   :  { %3665 = vmatpush.bf16.msra.mxu3 %v3475_v7  ;;  %1492 = vmatpush.bf16.msra.mxu0 %v3475_v7  ;;  %v3507_v7 = vld [vmem:[%s5009_s1 + $0x100] sm:$0xff] }
  0x21   :  { %1513 = vmatmul.bf16.vlgmr.msra.gmra.mxu1 %v2614_v18  ;;  %1533 = vmatmul.bf16.vlgmr.msra.gmra.mxu2 %v2758_v19  ;;  %v2865_v18 = vld [vmem:[%s5010_s0 + $0x318] sm:$0xf]  ;;  %v3434_v19 = vld [vmem:[%s5010_s0 + $0x338] sm:$0xf0] }
  0x22   :  { %1663 = vmatpush.bf16.msrb.mxu2 %v3498_v16  ;;  %1553 = vmatmul.bf16.vlgmr.msra.gmra.mxu3 %v2902_v20  ;;  %v2721_v16 = vld [vmem:[%s5010_s0 + $0x1f8] sm:$0xf] }
  0x23   :  { %1752 = vmatpush.bf16.msrb.mxu3 %v3506_v17  ;;  %1493 = vmatmul.bf16.vlgmr.msra.gmra.mxu0 %v2470_v21  ;;  %v3398_v17 = vld [vmem:[%s5010_s0 + $0x218] sm:$0xf0]  ;;  %v3009_v20 = vld [vmem:[%s5010_s0 + $0x438] sm:$0xf] }
  0x24   :  { %1574 = vmatpush.bf16.msrb.mxu1 %v3490_v22  ;;  %1841 = vmatpush.bf16.msrb.mxu0 %v3514_v23  ;;  %v3470_v21 = vld [vmem:[%s5010_s0 + $0x458] sm:$0xf0]  ;;  %v2577_v22 = vld [vmem:[%s5010_s0 + $0xd8] sm:$0xf] }
  0x25   :  { %v3362_v23 = vld [vmem:[%s5010_s0 + $0xf8] sm:$0xf0] }
  0x26   :  { %1664 = vmatpush.bf16.msrb.mxu2 %v3497_v24  ;;  %v2722_v24 = vor.u32 %v3398_v17, %v2721_v16 }
  0x27   :  { %1753 = vmatpush.bf16.msrb.mxu3 %v3505_v25  ;;  %v2866_v25 = vor.u32 %v3434_v19, %v2865_v18 }
  0x28   :  { %1575 = vmatpush.bf16.msrb.mxu1 %v3489_v26  ;;  %1842 = vmatpush.bf16.msrb.mxu0 %v3513_v27  ;;  %v3010_v26 = vor.u32 %v3470_v21, %v3009_v20  ;;  %v2578_v27 = vor.u32 %v3362_v23, %v2577_v22  ;;  %v3367_v20 = vld [vmem:[%s5010_s0 + $0x124] sm:$0xf]  ;;  %v2615_v21 = vld [vmem:[%s5010_s0 + $0x144] sm:$0xf0]  ;;  %v3372_v23 = vld [vmem:[%s5010_s0 + $0x148] sm:$0xf0] }
  0x29   :  { %v2621_v22 = vld [vmem:[%s5010_s0 + $0x128] sm:$0xf] }
  0x2a   :  { %1665 = vmatpush.bf16.msrb.mxu2 %v3496_v28  ;;  %v3331_v28 = vld [vmem:[%s5010_s0 + $0x4] sm:$0xf] }
  0x2b   :  { %1754 = vmatpush.bf16.msrb.mxu3 %v3504_v29  ;;  %v2471_v29 = vld [vmem:[%s5010_s0 + $0x24] sm:$0xf0] }
  0x2c   :  { %1576 = vmatpush.bf16.msrb.mxu1 %v3488_v30  ;;  %1843 = vmatpush.bf16.msrb.mxu0 %v3512_v31  ;;  %v2477_v30 = vld [vmem:[%s5010_s0 + $0x8] sm:$0xf]  ;;  %v3336_v31 = vld [vmem:[%s5010_s0 + $0x28] sm:$0xf0]  ;;  %v2474_v36 = vor.u32 %v3331_v28, %v2471_v29  ;;  %v2618_v28 = vor.u32 %v3367_v20, %v2615_v21  ;;  %v2622_v29 = vor.u32 %v3372_v23, %v2621_v22  ;;  %v3518_v20 = vld [vmem:[%s5009_s1 + $0x158] sm:$0xff] }
  0x2d   :  { %v2478_v37 = vor.u32 %v3336_v31, %v2477_v30  ;;  %v3542_v21 = vld [vmem:[%s5009_s1 + $0x218] sm:$0xff]  ;;  %v2723_v23 = vld [vmem:[%s5010_s0 + $0x21c] sm:$0xf0] }
  0x2e   :  { %1666 = vmatpush.bf16.msrb.mxu2 %v3495_v33  ;;  %v2479_v33 = vld [vmem:[%s5010_s0 + $0x2c] sm:$0xf0]  ;;  %v3394_v22 = vld [vmem:[%s5010_s0 + $0x1fc] sm:$0xf] }
  0x2f   :  { %1755 = vmatpush.bf16.msrb.mxu3 %v3503_v34  ;;  %v2485_v34 = vld [vmem:[%s5010_s0 + $0x10] sm:$0xf]  ;;  %v2482_v38 = vor.u32 %v3332_v32, %v2479_v33 }
  0x30   :  { %1577 = vmatpush.bf16.msrb.mxu1 %v3487_v42  ;;  %1844 = vmatpush.bf16.msrb.mxu0 %v3511_v43  ;;  %v2486_v39 = vor.u32 %v3337_v35, %v2485_v34  ;;  %v3521_v42 = vld [vmem:[%s5009_s1 + $0x170] sm:$0xff]  ;;  %v3527_v34 = vld [vmem:[%s5009_s1 + $0x1a0] sm:$0xff] }
  0x31   :  { %1518 = vmatmul.bf16.gmra.mxu1 %v2650_v46  ;;  %1538 = vmatmul.bf16.gmra.mxu2 %v2794_v47  ;;  %v3545_v43 = vld [vmem:[%s5009_s1 + $0x230] sm:$0xff]  ;;  %v3535_v35 = vld [vmem:[%s5009_s1 + $0x1e0] sm:$0xff] }
  0x32   :  { %1667 = vmatpush.bf16.msrb.mxu2 %v3494_v44  ;;  %1558 = vmatmul.bf16.gmra.mxu3 %v2938_v48  ;;  %v3340_v44 = vld [vmem:[%s5010_s0 + $0x4c] sm:$0xf]  ;;  %v2513_v46 = vld [vmem:[%s5010_s0 + $0x50] sm:$0xf]  ;;  %v3345_v47 = vld [vmem:[%s5010_s0 + $0x70] sm:$0xf0] }
  0x33   :  { %1756 = vmatpush.bf16.msrb.mxu3 %v3502_v45  ;;  %1498 = vmatmul.bf16.gmra.mxu0 %v2506_v49  ;;  %v2507_v45 = vld [vmem:[%s5010_s0 + $0x6c] sm:$0xf0]  ;;  %v3341_v48 = vld [vmem:[%s5010_s0 + $0x54] sm:$0xf]  ;;  %v2515_v49 = vld [vmem:[%s5010_s0 + $0x74] sm:$0xf0] }
  0x34   :  { %1578 = vmatpush.bf16.msrb.mxu1 %v3486_v50  ;;  %1845 = vmatpush.bf16.msrb.mxu0 %v3510_v51  ;;  %v2521_v50 = vld [vmem:[%s5010_s0 + $0x58] sm:$0xf]  ;;  %v3346_v51 = vld [vmem:[%s5010_s0 + $0x78] sm:$0xf0] }
  0x36   :  { %1668 = vmatpush.bf16.msrb.mxu2 %v3493_v52  ;;  %v2510_v52 = vor.u32 %v3340_v44, %v2507_v45  ;;  %v2657_v44 = vld [vmem:[%s5010_s0 + $0x170] sm:$0xf]  ;;  %v3381_v45 = vld [vmem:[%s5010_s0 + $0x190] sm:$0xf0] }
  0x37   :  { %1757 = vmatpush.bf16.msrb.mxu3 %v3501_v53  ;;  %v2514_v53 = vor.u32 %v3345_v47, %v2513_v46  ;;  %v3377_v46 = vld [vmem:[%s5010_s0 + $0x174] sm:$0xf]  ;;  %v2659_v47 = vld [vmem:[%s5010_s0 + $0x194] sm:$0xf0] }
  0x38   :  { %1579 = vmatpush.bf16.msrb.mxu1 %v3485_v54  ;;  %1846 = vmatpush.bf16.msrb.mxu0 %v3509_v55  ;;  %v2518_v54 = vor.u32 %v3341_v48, %v2515_v49  ;;  %v2522_v55 = vor.u32 %v3346_v51, %v2521_v50  ;;  %v2665_v48 = vld [vmem:[%s5010_s0 + $0x178] sm:$0xf]  ;;  %v3382_v49 = vld [vmem:[%s5010_s0 + $0x198] sm:$0xf0] }
  0x3a   :  { %1669 = vmatpush.bf16.msrb.mxu2 %v3492_v56  ;;  %v3349_v56 = vld [vmem:[%s5010_s0 + $0x94] sm:$0xf] }
  0x3b   :  { %1758 = vmatpush.bf16.msrb.mxu3 %v3500_v57  ;;  %v2543_v57 = vld [vmem:[%s5010_s0 + $0xb4] sm:$0xf0] }
  0x3c   :  { %1580 = vmatpush.bf16.msrb.mxu1 %v3484_v58  ;;  %1847 = vmatpush.bf16.msrb.mxu0 %v3508_v59  ;;  %v2549_v58 = vld [vmem:[%s5010_s0 + $0x98] sm:$0xf]  ;;  %v3354_v59 = vld [vmem:[%s5010_s0 + $0xb8] sm:$0xf0]  ;;  %v2546_v0 = vor.u32 %v3349_v56, %v2543_v57  ;;  %v2666_v56 = vor.u32 %v3382_v49, %v2665_v48  ;;  %v3403_v48 = vld [vmem:[%s5010_s0 + $0x244] sm:$0xf] }
  0x3d   :  { %v2550_v1 = vor.u32 %v3354_v59, %v2549_v58  ;;  %v2759_v49 = vld [vmem:[%s5010_s0 + $0x264] sm:$0xf0] }
  0x3e   :  { %1670 = vmatpush.bf16.msrb.mxu2 %v3491_v61  ;;  %v2551_v61 = vld [vmem:[%s5010_s0 + $0xbc] sm:$0xf0] }
  0x3f   :  { %1759 = vmatpush.bf16.msrb.mxu3 %v3499_v62  ;;  %v2557_v62 = vld [vmem:[%s5010_s0 + $0xa0] sm:$0xf]  ;;  %v2554_v2 = vor.u32 %v3350_v60, %v2551_v61 }
  0x40   :  { %1581 = vmatpush.bf16.msrb.mxu1 %v3483_v6  ;;  %1848 = vmatpush.bf16.msrb.mxu0 %v3507_v7  ;;  %v2558_v3 = vor.u32 %v3355_v63, %v2557_v62  ;;  %v3520_v6 = vld [vmem:[%s5009_s1 + $0x168] sm:$0xff]  ;;  %v3385_v62 = vld [vmem:[%s5010_s0 + $0x1b4] sm:$0xf]  ;;  %v2687_v63 = vld [vmem:[%s5010_s0 + $0x1d4] sm:$0xf0] }
  0x41   :  { %1523 = vmatmul.bf16.gmra.mxu1 %v2686_v8  ;;  %1543 = vmatmul.bf16.gmra.mxu2 %v2830_v9  ;;  %v3544_v7 = vld [vmem:[%s5009_s1 + $0x228] sm:$0xff]  ;;  %v3358_v8 = vld [vmem:[%s5010_s0 + $0xdc] sm:$0xf]  ;;  %v2579_v9 = vld [vmem:[%s5010_s0 + $0xfc] sm:$0xf0] }
  0x42   :  { %1563 = vmatmul.bf16.gmra.mxu3 %v2974_v10  ;;  %2019 = vmatpush.bf16.msra.mxu2 %v3530_v12  ;;  %v2585_v10 = vld [vmem:[%s5010_s0 + $0xe0] sm:$0xf]  ;;  %v3359_v12 = vld [vmem:[%s5010_s0 + $0xe4] sm:$0xf]  ;;  %v2582_v16 = vor.u32 %v3358_v8, %v2579_v9  ;;  %v2690_v8 = vor.u32 %v3385_v62, %v2687_v63  ;;  %v2773_v62 = vld [vmem:[%s5010_s0 + $0x250] sm:$0xf] }
  0x43   :  { %1503 = vmatmul.bf16.gmra.mxu0 %v2542_v11  ;;  %2108 = vmatpush.bf16.msra.mxu3 %v3538_v13  ;;  %v3363_v11 = vld [vmem:[%s5010_s0 + $0x100] sm:$0xf0]  ;;  %v2587_v13 = vld [vmem:[%s5010_s0 + $0x104] sm:$0xf0]  ;;  %v3409_v63 = vld [vmem:[%s5010_s0 + $0x270] sm:$0xf0] }
  0x44   :  { %1930 = vmatpush.bf16.msra.mxu1 %v3522_v14  ;;  %2197 = vmatpush.bf16.msra.mxu0 %v3546_v15  ;;  %v2593_v14 = vld [vmem:[%s5010_s0 + $0xe8] sm:$0xf]  ;;  %v3364_v15 = vld [vmem:[%s5010_s0 + $0x108] sm:$0xf0]  ;;  %v2586_v17 = vor.u32 %v3363_v11, %v2585_v10  ;;  %v2590_v18 = vor.u32 %v3359_v12, %v2587_v13 }
  0x45   :  { %v2594_v19 = vor.u32 %v3364_v15, %v2593_v14  ;;  %v3526_v14 = vld [vmem:[%s5009_s1 + $0x198] sm:$0xff] }
  0x46   :  { %2020 = vmatpush.bf16.msra.mxu2 %v3529_v40  ;;  %v3534_v15 = vld [vmem:[%s5009_s1 + $0x1d8] sm:$0xff] }
  0x47   :  { %2109 = vmatpush.bf16.msra.mxu3 %v3537_v41  ;;  %v3543_v41 = vld [vmem:[%s5009_s1 + $0x220] sm:$0xff] }
  0x48   :  { %1931 = vmatpush.bf16.msra.mxu1 %v3521_v42  ;;  %2198 = vmatpush.bf16.msra.mxu0 %v3545_v43  ;;  %v3376_v42 = vld [vmem:[%s5010_s0 + $0x16c] sm:$0xf]  ;;  %v2651_v43 = vld [vmem:[%s5010_s0 + $0x18c] sm:$0xf0] }
  0x4a   :  { %2021 = vmatpush.bf16.msra.mxu2 %v3528_v4  ;;  %v2701_v4 = vld [vmem:[%s5010_s0 + $0x1c0] sm:$0xf] }
  0x4b   :  { %2110 = vmatpush.bf16.msra.mxu3 %v3536_v5  ;;  %v3391_v5 = vld [vmem:[%s5010_s0 + $0x1e0] sm:$0xf0] }
  0x4c   :  { %1932 = vmatpush.bf16.msra.mxu1 %v3520_v6  ;;  %2199 = vmatpush.bf16.msra.mxu0 %v3544_v7  ;;  %v2702_v12 = vor.u32 %v3391_v5, %v2701_v4 }
  0x4e   :  { %2022 = vmatpush.bf16.msra.mxu2 %v3527_v34  ;;  %v2726_v34 = vor.u32 %v3394_v22, %v2723_v23 }
  0x4f   :  { %2111 = vmatpush.bf16.msra.mxu3 %v3535_v35 }
  0x50   :  { %2200 = vmatpush.bf16.msra.mxu0 %v3543_v41 }
  0x51   :  { %1528 = vmatmul.bf16.gmra.mxu1 %v2722_v24  ;;  %1548 = vmatmul.bf16.gmra.mxu2 %v2866_v25  ;;  %v3368_v24 = vld [vmem:[%s5010_s0 + $0x12c] sm:$0xf]  ;;  %v2623_v25 = vld [vmem:[%s5010_s0 + $0x14c] sm:$0xf0] }
  0x52   :  { %1568 = vmatmul.bf16.gmra.mxu3 %v3010_v26  ;;  %v2629_v26 = vld [vmem:[%s5010_s0 + $0x130] sm:$0xf]  ;;  %v2626_v31 = vor.u32 %v3368_v24, %v2623_v25  ;;  %2023 = vmatpush.bf16.msra.mxu2 %v3526_v14  ;;  %v2729_v24 = vld [vmem:[%s5010_s0 + $0x200] sm:$0xf]  ;;  %v3399_v25 = vld [vmem:[%s5010_s0 + $0x220] sm:$0xf0] }
  0x53   :  { %1508 = vmatmul.bf16.gmra.mxu0 %v2578_v27  ;;  %v3373_v27 = vld [vmem:[%s5010_s0 + $0x150] sm:$0xf0]  ;;  %2112 = vmatpush.bf16.msra.mxu3 %v3534_v15  ;;  %v2730_v35 = vor.u32 %v3399_v25, %v2729_v24 }
  0x54   :  { %v2630_v32 = vor.u32 %v3373_v27, %v2629_v26  ;;  %2201 = vmatpush.bf16.msra.mxu0 %v3542_v21  ;;  %v3395_v26 = vld [vmem:[%s5010_s0 + $0x204] sm:$0xf]  ;;  %v2731_v27 = vld [vmem:[%s5010_s0 + $0x224] sm:$0xf0]  ;;  %v3533_v14 = vld [vmem:[%s5009_s1 + $0x1d0] sm:$0xff] }
  0x55   :  { %v2734_v41 = vor.u32 %v3395_v26, %v2731_v27  ;;  %v3517_v25 = vld [vmem:[%s5009_s1 + $0x150] sm:$0xff]  ;;  %v3412_v27 = vld [vmem:[%s5010_s0 + $0x28c] sm:$0xf] }
  0x56   :  { %v3541_v26 = vld [vmem:[%s5009_s1 + $0x210] sm:$0xff] }
  0x57   :  { %2113 = vmatpush.bf16.msra.mxu3 %v3533_v14 }
  0x58   :  { %2202 = vmatpush.bf16.msra.mxu0 %v3541_v26  ;;  %v2845_v26 = vld [vmem:[%s5010_s0 + $0x2e0] sm:$0xf] }
  0x61   :  { %1582 = vmatmul.bf16.vlgmr.msrb.gmra.mxu1 %v2474_v36  ;;  %1671 = vmatmul.bf16.vlgmr.msrb.gmra.mxu2 %v2478_v37 }
  0x62   :  { %1760 = vmatmul.bf16.vlgmr.msrb.gmra.mxu3 %v2482_v38  ;;  %v3519_v38 = vld [vmem:[%s5009_s1 + $0x160] sm:$0xff] }
  0x63   :  { %1849 = vmatmul.bf16.vlgmr.msrb.gmra.mxu0 %v2486_v39  ;;  %1933 = vmatpush.bf16.msra.mxu1 %v3519_v38 }
  0x67   :  { %1934 = vmatpush.bf16.msra.mxu1 %v3518_v20 }
  0x6b   :  { %1935 = vmatpush.bf16.msra.mxu1 %v3517_v25  ;;  %v2839_v25 = vld [vmem:[%s5010_s0 + $0x2fc] sm:$0xf0] }
  0x71   :  { %1587 = vmatmul.bf16.gmra.mxu1 %v2510_v52  ;;  %1676 = vmatmul.bf16.gmra.mxu2 %v2514_v53  ;;  %v2654_v52 = vor.u32 %v3376_v42, %v2651_v43  ;;  %v2658_v53 = vor.u32 %v3381_v45, %v2657_v44 }
  0x72   :  { %1765 = vmatmul.bf16.gmra.mxu3 %v2518_v54 }
  0x73   :  { %1854 = vmatmul.bf16.gmra.mxu0 %v2522_v55  ;;  %v2662_v55 = vor.u32 %v3377_v46, %v2659_v47 }
  0x81   :  { %1592 = vmatmul.bf16.gmra.mxu1 %v2546_v0  ;;  %1681 = vmatmul.bf16.gmra.mxu2 %v2550_v1  ;;  %v2693_v0 = vld [vmem:[%s5010_s0 + $0x1b8] sm:$0xf]  ;;  %v3390_v1 = vld [vmem:[%s5010_s0 + $0x1d8] sm:$0xf0] }
  0x82   :  { %1770 = vmatmul.bf16.gmra.mxu3 %v2554_v2  ;;  %v3386_v2 = vld [vmem:[%s5010_s0 + $0x1bc] sm:$0xf]  ;;  %v2694_v9 = vor.u32 %v3390_v1, %v2693_v0 }
  0x83   :  { %1859 = vmatmul.bf16.gmra.mxu0 %v2558_v3  ;;  %v2695_v3 = vld [vmem:[%s5010_s0 + $0x1dc] sm:$0xf0] }
  0x84   :  { %v2698_v11 = vor.u32 %v3386_v2, %v2695_v3  ;;  %v2762_v2 = vor.u32 %v3403_v48, %v2759_v49  ;;  %v3418_v48 = vld [vmem:[%s5010_s0 + $0x2b8] sm:$0xf0] }
  0x91   :  { %1597 = vmatmul.bf16.gmra.mxu1 %v2582_v16  ;;  %1686 = vmatmul.bf16.gmra.mxu2 %v2586_v17 }
  0x92   :  { %1775 = vmatmul.bf16.gmra.mxu3 %v2590_v18 }
  0x93   :  { %1864 = vmatmul.bf16.gmra.mxu0 %v2594_v19 }
  0x9e   :  { %v4058_v30 = vpop.f32.mrf.mxu1 }
  0xa0   :  { %v4060_v33 = vpop.f32.mrf.mxu0 }
  0xa1   :  { %1602 = vmatmul.bf16.gmra.mxu1 %v2618_v28  ;;  %1691 = vmatmul.bf16.gmra.mxu2 %v2622_v29  ;;  %v2737_v28 = vld [vmem:[%s5010_s0 + $0x208] sm:$0xf]  ;;  %v3400_v29 = vld [vmem:[%s5010_s0 + $0x228] sm:$0xf0] }
  0xa2   :  { %1780 = vmatmul.bf16.gmra.mxu3 %v2626_v31  ;;  %v2738_v42 = vor.u32 %v3400_v29, %v2737_v28  ;;  %v2795_v28 = vld [vmem:[%s5010_s0 + $0x2ac] sm:$0xf0] }
  0xa3   :  { %1869 = vmatmul.bf16.gmra.mxu0 %v2630_v32  ;;  %v2801_v29 = vld [vmem:[%s5010_s0 + $0x290] sm:$0xf] }
  0xa4   :  { %v4068_v36 = vpop.f32.mrf.mxu2 }
  0xa5   :  { %v4070_v37 = vpop.f32.mrf.mxu3 }
  0xa6   :  { %v4075_v39 = vpop.f32.mrf.mxu1 }
  0xa8   :  { %v4077_v40 = vpop.f32.mrf.mxu0 }
  0xac   :  { %v4106_v50 = vpop.f32.mrf.mxu2 }
  0xad   :  { %v4108_v51 = vpop.f32.mrf.mxu3 }
  0xae   :  { %v4110_v54 = vpop.f32.mrf.mxu1 }
  0xb0   :  { %v4112_v57 = vpop.f32.mrf.mxu0 }
  0xb1   :  { %1607 = vmatmul.bf16.gmra.mxu1 %v2654_v52  ;;  %1696 = vmatmul.bf16.gmra.mxu2 %v2658_v53  ;;  %v2765_v52 = vld [vmem:[%s5010_s0 + $0x248] sm:$0xf]  ;;  %v3408_v53 = vld [vmem:[%s5010_s0 + $0x268] sm:$0xf0] }
  0xb2   :  { %1785 = vmatmul.bf16.gmra.mxu3 %v2662_v55  ;;  %v3404_v55 = vld [vmem:[%s5010_s0 + $0x24c] sm:$0xf]  ;;  %v2766_v3 = vor.u32 %v3408_v53, %v2765_v52 }
  0xb3   :  { %1874 = vmatmul.bf16.gmra.mxu0 %v2666_v56  ;;  %v2767_v56 = vld [vmem:[%s5010_s0 + $0x26c] sm:$0xf0] }
  0xb4   :  { %v4114_v58 = vpop.f32.mrf.mxu2  ;;  %v2770_v5 = vor.u32 %v3404_v55, %v2767_v56  ;;  %v2798_v55 = vor.u32 %v3412_v27, %v2795_v28  ;;  %v3427_v27 = vld [vmem:[%s5010_s0 + $0x300] sm:$0xf0] }
  0xb5   :  { %v4116_v59 = vpop.f32.mrf.mxu3 }
  0xb6   :  { %v4118_v60 = vpop.f32.mrf.mxu1 }
  0xb8   :  { %v4120_v61 = vpop.f32.mrf.mxu0 }
  0xbc   :  { %v4146_v6 = vpop.f32.mrf.mxu2 }
  0xbd   :  { %v4148_v7 = vpop.f32.mrf.mxu3 }
  0xbe   :  { %v4150_v10 = vpop.f32.mrf.mxu1 }
  0xc0   :  { %v4152_v13 = vpop.f32.mrf.mxu0 }
  0xc1   :  { %1612 = vmatmul.bf16.gmra.mxu1 %v2690_v8  ;;  %1701 = vmatmul.bf16.gmra.mxu2 %v2694_v9  ;;  %v2774_v8 = vor.u32 %v3409_v63, %v2773_v62 }
  0xc2   :  { %1790 = vmatmul.bf16.gmra.mxu3 %v2698_v11 }
  0xc3   :  { %1879 = vmatmul.bf16.gmra.mxu0 %v2702_v12  ;;  %v3525_v12 = vld [vmem:[%s5009_s1 + $0x190] sm:$0xff] }
  0xc4   :  { %v4160_v16 = vpop.f32.mrf.mxu2  ;;  %2024 = vmatpush.bf16.msra.mxu2 %v3525_v12 }
  0xc5   :  { %v4162_v17 = vpop.f32.mrf.mxu3 }
  0xc6   :  { %v4164_v18 = vpop.f32.mrf.mxu1 }
  0xc8   :  { %v4166_v19 = vpop.f32.mrf.mxu0 }
  0xcc   :  { %v4198_v31 = vpop.f32.mrf.mxu2 }
  0xcd   :  { %v4200_v32 = vpop.f32.mrf.mxu3 }
  0xce   :  { %v4202_v38 = vpop.f32.mrf.mxu1 }
  0xd0   :  { %v4204_v43 = vpop.f32.mrf.mxu0 }
  0xd1   :  { %1617 = vmatmul.bf16.gmra.mxu1 %v2726_v34  ;;  %1706 = vmatmul.bf16.gmra.mxu2 %v2730_v35  ;;  %v3417_v34 = vld [vmem:[%s5010_s0 + $0x2b0] sm:$0xf0] }
  0xd2   :  { %1795 = vmatmul.bf16.gmra.mxu3 %v2734_v41  ;;  %v3413_v35 = vld [vmem:[%s5010_s0 + $0x294] sm:$0xf]  ;;  %v2803_v41 = vld [vmem:[%s5010_s0 + $0x2b4] sm:$0xf0]  ;;  %v2802_v56 = vor.u32 %v3417_v34, %v2801_v29 }
  0xd3   :  { %1884 = vmatmul.bf16.gmra.mxu0 %v2738_v42  ;;  %v2809_v42 = vld [vmem:[%s5010_s0 + $0x298] sm:$0xf]  ;;  %v2806_v63 = vor.u32 %v3413_v35, %v2803_v41 }
  0xd4   :  { %v4206_v44 = vpop.f32.mrf.mxu2 }
  0xd5   :  { %v4208_v45 = vpop.f32.mrf.mxu3 }
  0xd6   :  { %v4210_v46 = vpop.f32.mrf.mxu1 }
  0xd8   :  { %v4212_v47 = vpop.f32.mrf.mxu0 }
  0xdc   :  { %v4238_v0 = vpop.f32.mrf.mxu2 }
  0xdd   :  { %v4240_v1 = vpop.f32.mrf.mxu3 }
  0xde   :  { %v1583_v4 = vpop.f32.mrf.mxu1 }
  0xdf   :  { %v1584_v9 = vadd.f32 %v1583_v4, %v4060_v33 }
  0xe0   :  { %v1850_v11 = vpop.f32.mrf.mxu0 }
  0xe1   :  { %1622 = vmatmul.bf16.gmra.mxu1 %v2762_v2  ;;  %1711 = vmatmul.bf16.gmra.mxu2 %v2766_v3  ;;  %v2810_v2 = vor.u32 %v3418_v48, %v2809_v42 }
  0xe2   :  { %1800 = vmatmul.bf16.gmra.mxu3 %v2770_v5 }
  0xe3   :  { %1889 = vmatmul.bf16.gmra.mxu0 %v2774_v8 }
  0xe4   :  { %v1672_v15 = vpop.f32.mrf.mxu2 }
  0xe5   :  { %v1673_v20 = vadd.f32 %v1672_v15, %v1584_v9  ;;  %v1761_v21 = vpop.f32.mrf.mxu3 }
  0xe6   :  { %v1585_v22 = vpop.f32.mrf.mxu1 }
  0xe7   :  { %v1762_v33 = vadd.f32 %v1761_v21, %v1673_v20  ;;  %v1586_v23 = vadd.f32 %v1585_v22, %v4077_v40  ;;  %v3421_v22 = vld [vmem:[%s5010_s0 + $0x2d4] sm:$0xf] }
  0xe8   :  { %v1852_v24 = vpop.f32.mrf.mxu0 }
  0xe9   :  { %v4262_v40 = vadd.f32 %v1850_v11, %v1762_v33 }
  0xec   :  { %v1674_v49 = vpop.f32.mrf.mxu2 }
  0xed   :  { %v1675_v52 = vadd.f32 %v1674_v49, %v1586_v23  ;;  %v1763_v53 = vpop.f32.mrf.mxu3  ;;  %v2837_v23 = vld [vmem:[%s5010_s0 + $0x2d8] sm:$0xf]  ;;  %v2846_v49 = vor.u32 %v3427_v27, %v2845_v26 }
  0xee   :  { %v1588_v62 = vpop.f32.mrf.mxu1 }
  0xef   :  { %v1764_v3 = vadd.f32 %v1763_v53, %v1675_v52  ;;  %v1589_v4 = vadd.f32 %v1588_v62, %v4112_v57  ;;  %v2831_v57 = vld [vmem:[%s5010_s0 + $0x2f4] sm:$0xf0]  ;;  %v3524_v62 = vld [vmem:[%s5009_s1 + $0x188] sm:$0xff] }
  0xf0   :  { %v1855_v5 = vpop.f32.mrf.mxu0  ;;  %v2834_v35 = vor.u32 %v3421_v22, %v2831_v57  ;;  %2025 = vmatpush.bf16.msra.mxu2 %v3524_v62  ;;  %v3435_v22 = vld [vmem:[%s5010_s0 + $0x340] sm:$0xf0] }
  0xf1   :  { %1627 = vmatmul.bf16.gmra.mxu1 %v2798_v55  ;;  %1716 = vmatmul.bf16.gmra.mxu2 %v2802_v56  ;;  %v4283_v8 = vadd.f32 %v1852_v24, %v1764_v3  ;;  %v3426_v24 = vld [vmem:[%s5010_s0 + $0x2f8] sm:$0xf0]  ;;  %v3431_v57 = vld [vmem:[%s5010_s0 + $0x324] sm:$0xf] }
  0xf2   :  { %1805 = vmatmul.bf16.gmra.mxu3 %v2806_v63  ;;  %v2838_v41 = vor.u32 %v3426_v24, %v2837_v23  ;;  %v3532_v63 = vld [vmem:[%s5009_s1 + $0x1c8] sm:$0xff] }
  0xf3   :  { %1894 = vmatmul.bf16.gmra.mxu0 %v2810_v2  ;;  %2114 = vmatpush.bf16.msra.mxu3 %v3532_v63  ;;  %v2875_v23 = vld [vmem:[%s5010_s0 + $0x344] sm:$0xf0] }
  0xf4   :  { %v1677_v9 = vpop.f32.mrf.mxu2  ;;  %v2881_v24 = vld [vmem:[%s5010_s0 + $0x328] sm:$0xf] }
  0xf5   :  { %v1678_v11 = vadd.f32 %v1677_v9, %v1589_v4  ;;  %v1766_v12 = vpop.f32.mrf.mxu3 }
  0xf6   :  { %v1590_v14 = vpop.f32.mrf.mxu1 }
  0xf7   :  { %v1767_v15 = vadd.f32 %v1766_v12, %v1678_v11  ;;  %v1591_v20 = vadd.f32 %v1590_v14, %v4120_v61  ;;  %v3422_v61 = vld [vmem:[%s5010_s0 + $0x2dc] sm:$0xf]  ;;  %v3516_v12 = vld [vmem:[%s5009_s1 + $0x148] sm:$0xff] }
  0xf8   :  { %v1857_v21 = vpop.f32.mrf.mxu0  ;;  %v2842_v48 = vor.u32 %v3422_v61, %v2839_v25  ;;  %v3540_v14 = vld [vmem:[%s5009_s1 + $0x208] sm:$0xff]  ;;  %1936 = vmatpush.bf16.msra.mxu1 %v3516_v12  ;;  %v2911_v12 = vld [vmem:[%s5010_s0 + $0x38c] sm:$0xf0] }
  0xf9   :  { %v4292_v33 = vadd.f32 %v1855_v5, %v1767_v15  ;;  %v3430_v15 = vld [vmem:[%s5010_s0 + $0x31c] sm:$0xf]  ;;  %2203 = vmatpush.bf16.msra.mxu0 %v3540_v14  ;;  %v3436_v61 = vld [vmem:[%s5010_s0 + $0x348] sm:$0xf0]  ;;  %v2917_v14 = vld [vmem:[%s5010_s0 + $0x370] sm:$0xf] }
  0xfc   :  { %v1679_v28 = vpop.f32.mrf.mxu2 }
  0xfd   :  { %v1680_v29 = vadd.f32 %v1679_v28, %v1591_v20  ;;  %v1768_v34 = vpop.f32.mrf.mxu3  ;;  %v2867_v20 = vld [vmem:[%s5010_s0 + $0x33c] sm:$0xf0] }
  0xfe   :  { %v1593_v42 = vpop.f32.mrf.mxu1  ;;  %v2870_v28 = vor.u32 %v3430_v15, %v2867_v20  ;;  %v3445_v15 = vld [vmem:[%s5010_s0 + $0x390] sm:$0xf0] }
  0xff   :  { %v1769_v52 = vadd.f32 %v1768_v34, %v1680_v29  ;;  %v1594_v53 = vadd.f32 %v1593_v42, %v4152_v13 }
 0x100   :  { %v1860_v55 = vpop.f32.mrf.mxu0 }
 0x101   :  { %1632 = vmatmul.bf16.gmra.mxu1 %v2834_v35  ;;  %1721 = vmatmul.bf16.gmra.mxu2 %v2838_v41  ;;  %v4313_v56 = vadd.f32 %v1857_v21, %v1769_v52  ;;  %v2873_v21 = vld [vmem:[%s5010_s0 + $0x320] sm:$0xf]  ;;  %v2878_v35 = vor.u32 %v3431_v57, %v2875_v23  ;;  %v2882_v41 = vor.u32 %v3436_v61, %v2881_v24 }
 0x102   :  { %1810 = vmatmul.bf16.gmra.mxu3 %v2842_v48  ;;  %v2874_v29 = vor.u32 %v3435_v22, %v2873_v21 }
 0x103   :  { %1899 = vmatmul.bf16.gmra.mxu0 %v2846_v49 }
 0x104   :  { %v1682_v2 = vpop.f32.mrf.mxu2 }
 0x105   :  { %v1683_v3 = vadd.f32 %v1682_v2, %v1594_v53  ;;  %v1771_v13 = vpop.f32.mrf.mxu3 }
 0x106   :  { %v1595_v4 = vpop.f32.mrf.mxu1 }
 0x107   :  { %v1772_v5 = vadd.f32 %v1771_v13, %v1683_v3  ;;  %v1596_v9 = vadd.f32 %v1595_v4, %v4166_v19  ;;  %v3439_v4 = vld [vmem:[%s5010_s0 + $0x364] sm:$0xf] }
 0x108   :  { %v1862_v11 = vpop.f32.mrf.mxu0 }
 0x109   :  { %v4334_v19 = vadd.f32 %v1860_v55, %v1772_v5 }
 0x10c   :  { %v1684_v25 = vpop.f32.mrf.mxu2 }
 0x10d   :  { %v1685_v26 = vadd.f32 %v1684_v25, %v1596_v9  ;;  %v1773_v27 = vpop.f32.mrf.mxu3  ;;  %v2909_v9 = vld [vmem:[%s5010_s0 + $0x368] sm:$0xf]  ;;  %v2918_v25 = vor.u32 %v3445_v15, %v2917_v14 }
 0x10e   :  { %v1598_v34 = vpop.f32.mrf.mxu1 }
 0x10f   :  { %v1774_v42 = vadd.f32 %v1773_v27, %v1685_v26  ;;  %v1599_v48 = vadd.f32 %v1598_v34, %v4204_v43  ;;  %v2903_v43 = vld [vmem:[%s5010_s0 + $0x384] sm:$0xf0]  ;;  %v3531_v34 = vld [vmem:[%s5009_s1 + $0x1c0] sm:$0xff] }
 0x110   :  { %v1865_v49 = vpop.f32.mrf.mxu0  ;;  %v2906_v57 = vor.u32 %v3439_v4, %v2903_v43  ;;  %2115 = vmatpush.bf16.msra.mxu3 %v3531_v34  ;;  %v3453_v4 = vld [vmem:[%s5010_s0 + $0x3d0] sm:$0xf0] }
 0x111   :  { %1637 = vmatmul.bf16.gmra.mxu1 %v2870_v28  ;;  %1726 = vmatmul.bf16.gmra.mxu2 %v2874_v29  ;;  %v4355_v52 = vadd.f32 %v1862_v11, %v1774_v42  ;;  %v3444_v11 = vld [vmem:[%s5010_s0 + $0x388] sm:$0xf0]  ;;  %v3523_v29 = vld [vmem:[%s5009_s1 + $0x180] sm:$0xff]  ;;  %v3449_v43 = vld [vmem:[%s5010_s0 + $0x3b4] sm:$0xf] }
 0x112   :  { %1815 = vmatmul.bf16.gmra.mxu3 %v2878_v35  ;;  %v2910_v23 = vor.u32 %v3444_v11, %v2909_v9  ;;  %2026 = vmatpush.bf16.msra.mxu2 %v3523_v29  ;;  %v2947_v11 = vld [vmem:[%s5010_s0 + $0x3d4] sm:$0xf0] }
 0x113   :  { %1904 = vmatmul.bf16.gmra.mxu0 %v2882_v41 }
 0x114   :  { %v1687_v53 = vpop.f32.mrf.mxu2 }
 0x115   :  { %v1688_v55 = vadd.f32 %v1687_v53, %v1599_v48  ;;  %v1776_v62 = vpop.f32.mrf.mxu3 }
 0x116   :  { %v1600_v63 = vpop.f32.mrf.mxu1 }
 0x117   :  { %v1777_v2 = vadd.f32 %v1776_v62, %v1688_v55  ;;  %v1601_v3 = vadd.f32 %v1600_v63, %v4212_v47  ;;  %v3440_v47 = vld [vmem:[%s5010_s0 + $0x36c] sm:$0xf]  ;;  %v3515_v62 = vld [vmem:[%s5009_s1 + $0x140] sm:$0xff] }
 0x118   :  { %v1867_v13 = vpop.f32.mrf.mxu0  ;;  %v2914_v61 = vor.u32 %v3440_v47, %v2911_v12  ;;  %v3539_v63 = vld [vmem:[%s5009_s1 + $0x200] sm:$0xff]  ;;  %1937 = vmatpush.bf16.msra.mxu1 %v3515_v62  ;;  %v2953_v47 = vld [vmem:[%s5010_s0 + $0x3b8] sm:$0xf]  ;;  %v3454_v12 = vld [vmem:[%s5010_s0 + $0x3d8] sm:$0xf0] }
 0x119   :  { %v4364_v5 = vadd.f32 %v1865_v49, %v1777_v2  ;;  %v2939_v2 = vld [vmem:[%s5010_s0 + $0x3cc] sm:$0xf0]  ;;  %2204 = vmatpush.bf16.msra.mxu0 %v3539_v63  ;;  %v3458_v62 = vld [vmem:[%s5010_s0 + $0x3fc] sm:$0xf] }
 0x11c   :  { %v1689_v20 = vpop.f32.mrf.mxu2 }
 0x11d   :  { %v1690_v21 = vadd.f32 %v1689_v20, %v1601_v3  ;;  %v1778_v22 = vpop.f32.mrf.mxu3 }
 0x11e   :  { %v1603_v24 = vpop.f32.mrf.mxu1 }
 0x11f   :  { %v1779_v26 = vadd.f32 %v1778_v22, %v1690_v21  ;;  %v1604_v35 = vadd.f32 %v1603_v24, %v4058_v30  ;;  %v3448_v30 = vld [vmem:[%s5010_s0 + $0x3ac] sm:$0xf] }
 0x120   :  { %v1870_v27 = vpop.f32.mrf.mxu0  ;;  %v2942_v21 = vor.u32 %v3448_v30, %v2939_v2  ;;  %v2983_v30 = vld [vmem:[%s5010_s0 + $0x41c] sm:$0xf0] }
 0x121   :  { %1642 = vmatmul.bf16.gmra.mxu1 %v2906_v57  ;;  %1731 = vmatmul.bf16.gmra.mxu2 %v2910_v23  ;;  %v4384_v28 = vadd.f32 %v1867_v13, %v1779_v26  ;;  %v2945_v13 = vld [vmem:[%s5010_s0 + $0x3b0] sm:$0xf]  ;;  %v2950_v23 = vor.u32 %v3449_v43, %v2947_v11  ;;  %v2989_v2 = vld [vmem:[%s5010_s0 + $0x400] sm:$0xf] }
 0x122   :  { %1820 = vmatmul.bf16.gmra.mxu3 %v2914_v61  ;;  %v2946_v22 = vor.u32 %v3453_v4, %v2945_v13  ;;  %v3463_v13 = vld [vmem:[%s5010_s0 + $0x420] sm:$0xf0] }
 0x123   :  { %1909 = vmatmul.bf16.gmra.mxu0 %v2918_v25 }
 0x124   :  { %v1692_v41 = vpop.f32.mrf.mxu2 }
 0x125   :  { %v1693_v42 = vadd.f32 %v1692_v41, %v1604_v35  ;;  %v1781_v48 = vpop.f32.mrf.mxu3 }
 0x126   :  { %v1605_v49 = vpop.f32.mrf.mxu1 }
 0x127   :  { %v1782_v53 = vadd.f32 %v1781_v48, %v1693_v42  ;;  %v1606_v9 = vadd.f32 %v1605_v49, %v4075_v39  ;;  %v2954_v39 = vor.u32 %v3454_v12, %v2953_v47  ;;  %v3457_v48 = vld [vmem:[%s5010_s0 + $0x3f4] sm:$0xf]  ;;  %v2975_v49 = vld [vmem:[%s5010_s0 + $0x414] sm:$0xf0] }
 0x128   :  { %v1872_v55 = vpop.f32.mrf.mxu0  ;;  %v2978_v11 = vor.u32 %v3457_v48, %v2975_v49  ;;  %v3019_v48 = vld [vmem:[%s5010_s0 + $0x464] sm:$0xf0] }
 0x129   :  { %v4405_v3 = vadd.f32 %v1870_v27, %v1782_v53  ;;  %v3025_v49 = vld [vmem:[%s5010_s0 + $0x448] sm:$0xf] }
 0x12c   :  { %v1694_v14 = vpop.f32.mrf.mxu2 }
 0x12d   :  { %v1695_v15 = vadd.f32 %v1694_v14, %v1606_v9  ;;  %v1783_v20 = vpop.f32.mrf.mxu3  ;;  %v2986_v14 = vor.u32 %v3458_v62, %v2983_v30 }
 0x12e   :  { %v1608_v57 = vpop.f32.mrf.mxu1 }
 0x12f   :  { %v1784_v24 = vadd.f32 %v1783_v20, %v1695_v15  ;;  %v1609_v26 = vadd.f32 %v1608_v57, %v4110_v54  ;;  %v2981_v54 = vld [vmem:[%s5010_s0 + $0x3f8] sm:$0xf] }
 0x130   :  { %v1875_v61 = vpop.f32.mrf.mxu0 }
 0x131   :  { %1647 = vmatmul.bf16.gmra.mxu1 %v2942_v21  ;;  %1736 = vmatmul.bf16.gmra.mxu2 %v2946_v22  ;;  %v4426_v25 = vadd.f32 %v1872_v55, %v1784_v24  ;;  %v3462_v55 = vld [vmem:[%s5010_s0 + $0x418] sm:$0xf0] }
 0x132   :  { %1825 = vmatmul.bf16.gmra.mxu3 %v2950_v23  ;;  %v2982_v47 = vor.u32 %v3462_v55, %v2981_v54  ;;  %v3472_v54 = vld [vmem:[%s5010_s0 + $0x468] sm:$0xf0] }
 0x133   :  { %1914 = vmatmul.bf16.gmra.mxu0 %v2954_v39 }
 0x134   :  { %v1697_v27 = vpop.f32.mrf.mxu2 }
 0x135   :  { %v1698_v29 = vadd.f32 %v1697_v27, %v1609_v26  ;;  %v1786_v34 = vpop.f32.mrf.mxu3  ;;  %v3466_v27 = vld [vmem:[%s5010_s0 + $0x43c] sm:$0xf] }
 0x136   :  { %v1610_v35 = vpop.f32.mrf.mxu1 }
 0x137   :  { %v1787_v41 = vadd.f32 %v1786_v34, %v1698_v29  ;;  %v1611_v63 = vadd.f32 %v1610_v35, %v4118_v60  ;;  %v2990_v60 = vor.u32 %v3463_v13, %v2989_v2  ;;  %v3011_v29 = vld [vmem:[%s5010_s0 + $0x45c] sm:$0xf0]  ;;  %v3471_v35 = vld [vmem:[%s5010_s0 + $0x460] sm:$0xf0] }
 0x138   :  { %v1877_v42 = vpop.f32.mrf.mxu0  ;;  %v3014_v30 = vor.u32 %v3466_v27, %v3011_v29  ;;  %v2495_v27 = vld [vmem:[%s5010_s0 + $0x3c] sm:$0xf0] }
 0x139   :  { %v4435_v53 = vadd.f32 %v1875_v61, %v1787_v41  ;;  %v3467_v41 = vld [vmem:[%s5010_s0 + $0x444] sm:$0xf]  ;;  %v2501_v29 = vld [vmem:[%s5010_s0 + $0x20] sm:$0xf] }
 0x13c   :  { %v1699_v4 = vpop.f32.mrf.mxu2 }
 0x13d   :  { %v1700_v43 = vadd.f32 %v1699_v4, %v1611_v63  ;;  %v1788_v9 = vpop.f32.mrf.mxu3  ;;  %v3022_v4 = vor.u32 %v3467_v41, %v3019_v48 }
 0x13e   :  { %v1613_v12 = vpop.f32.mrf.mxu1 }
 0x13f   :  { %v1789_v15 = vadd.f32 %v1788_v9, %v1700_v43  ;;  %v1614_v22 = vadd.f32 %v1613_v12, %v4150_v10  ;;  %v3017_v10 = vld [vmem:[%s5010_s0 + $0x440] sm:$0xf] }
 0x140   :  { %v1880_v20 = vpop.f32.mrf.mxu0  ;;  %v3018_v2 = vor.u32 %v3471_v35, %v3017_v10  ;;  %v3339_v10 = vld [vmem:[%s5010_s0 + $0x40] sm:$0xf0] }
 0x141   :  { %1652 = vmatmul.bf16.gmra.mxu1 %v2978_v11  ;;  %1741 = vmatmul.bf16.gmra.mxu2 %v2982_v47  ;;  %v4456_v21 = vadd.f32 %v1877_v42, %v1789_v15 }
 0x142   :  { %1830 = vmatmul.bf16.gmra.mxu3 %v2986_v14 }
 0x143   :  { %1919 = vmatmul.bf16.gmra.mxu0 %v2990_v60 }
 0x144   :  { %v1702_v57 = vpop.f32.mrf.mxu2 }
 0x145   :  { %v1703_v23 = vadd.f32 %v1702_v57, %v1614_v22  ;;  %v1791_v39 = vpop.f32.mrf.mxu3  ;;  %v3333_v57 = vld [vmem:[%s5010_s0 + $0x14] sm:$0xf] }
 0x146   :  { %v1615_v24 = vpop.f32.mrf.mxu1 }
 0x147   :  { %v1792_v61 = vadd.f32 %v1791_v39, %v1703_v23  ;;  %v1616_v42 = vadd.f32 %v1615_v24, %v4164_v18  ;;  %v3026_v18 = vor.u32 %v3472_v54, %v3025_v49  ;;  %v2487_v23 = vld [vmem:[%s5010_s0 + $0x34] sm:$0xf0]  ;;  %v3338_v24 = vld [vmem:[%s5010_s0 + $0x38] sm:$0xf0] }
 0x148   :  { %v1882_v26 = vpop.f32.mrf.mxu0  ;;  %v2490_v48 = vor.u32 %v3333_v57, %v2487_v23  ;;  %v2531_v57 = vld [vmem:[%s5010_s0 + $0x84] sm:$0xf0] }
 0x149   :  { %v4465_v34 = vadd.f32 %v1880_v20, %v1792_v61  ;;  %v3334_v61 = vld [vmem:[%s5010_s0 + $0x1c] sm:$0xf]  ;;  %v2537_v23 = vld [vmem:[%s5010_s0 + $0x68] sm:$0xf] }
 0x14c   :  { %v1704_v55 = vpop.f32.mrf.mxu2 }
 0x14d   :  { %v1705_v62 = vadd.f32 %v1704_v55, %v1616_v42  ;;  %v1793_v63 = vpop.f32.mrf.mxu3  ;;  %v2498_v55 = vor.u32 %v3334_v61, %v2495_v27 }
 0x14e   :  { %v1618_v13 = vpop.f32.mrf.mxu1 }
 0x14f   :  { %v1794_v43 = vadd.f32 %v1793_v63, %v1705_v62  ;;  %v1619_v47 = vadd.f32 %v1618_v13, %v4202_v38  ;;  %v2493_v38 = vld [vmem:[%s5010_s0 + $0x18] sm:$0xf] }
 0x150   :  { %v1885_v9 = vpop.f32.mrf.mxu0  ;;  %v2494_v49 = vor.u32 %v3338_v24, %v2493_v38  ;;  %v3348_v38 = vld [vmem:[%s5010_s0 + $0x88] sm:$0xf0] }
 0x151   :  { %1657 = vmatmul.bf16.gmra.mxu1 %v3014_v30  ;;  %1746 = vmatmul.bf16.gmra.mxu2 %v3018_v2  ;;  %v4486_v11 = vadd.f32 %v1882_v26, %v1794_v43 }
 0x152   :  { %1835 = vmatmul.bf16.gmra.mxu3 %v3022_v4 }
 0x153   :  { %1924 = vmatmul.bf16.gmra.mxu0 %v3026_v18 }
 0x154   :  { %v1707_v12 = vpop.f32.mrf.mxu2 }
 0x155   :  { %v1708_v14 = vadd.f32 %v1707_v12, %v1619_v47  ;;  %v1796_v60 = vpop.f32.mrf.mxu3  ;;  %v3342_v12 = vld [vmem:[%s5010_s0 + $0x5c] sm:$0xf] }
 0x156   :  { %v1620_v15 = vpop.f32.mrf.mxu1 }
 0x157   :  { %v1797_v20 = vadd.f32 %v1796_v60, %v1708_v14  ;;  %v1621_v26 = vadd.f32 %v1620_v15, %v4210_v46  ;;  %v2502_v46 = vor.u32 %v3339_v10, %v2501_v29  ;;  %v2523_v14 = vld [vmem:[%s5010_s0 + $0x7c] sm:$0xf0]  ;;  %v3347_v15 = vld [vmem:[%s5010_s0 + $0x80] sm:$0xf0] }
 0x158   :  { %v1887_v22 = vpop.f32.mrf.mxu0  ;;  %v2526_v27 = vor.u32 %v3342_v12, %v2523_v14  ;;  %v2567_v12 = vld [vmem:[%s5010_s0 + $0xcc] sm:$0xf0] }
 0x159   :  { %v4495_v39 = vadd.f32 %v1885_v9, %v1797_v20  ;;  %v3343_v20 = vld [vmem:[%s5010_s0 + $0x64] sm:$0xf]  ;;  %v2573_v14 = vld [vmem:[%s5010_s0 + $0xb0] sm:$0xf] }
 0x15c   :  { %v1709_v35 = vpop.f32.mrf.mxu2 }
 0x15d   :  { %v1710_v41 = vadd.f32 %v1709_v35, %v1621_v26  ;;  %v1798_v42 = vpop.f32.mrf.mxu3  ;;  %v2534_v35 = vor.u32 %v3343_v20, %v2531_v57 }
 0x15e   :  { %v1623_v54 = vpop.f32.mrf.mxu1 }
 0x15f   :  { %v1799_v62 = vadd.f32 %v1798_v42, %v1710_v41  ;;  %v1624_v2 = vadd.f32 %v1623_v54, %v4068_v36  ;;  %v2529_v36 = vld [vmem:[%s5010_s0 + $0x60] sm:$0xf] }
 0x160   :  { %v1890_v63 = vpop.f32.mrf.mxu0  ;;  %v2530_v29 = vor.u32 %v3347_v15, %v2529_v36  ;;  %v3357_v36 = vld [vmem:[%s5010_s0 + $0xd0] sm:$0xf0] }
 0x161   :  { %1938 = vmatmul.bf16.vlgmr.msra.gmra.mxu1 %v2490_v48  ;;  %2027 = vmatmul.bf16.vlgmr.msra.gmra.mxu2 %v2494_v49  ;;  %v4516_v30 = vadd.f32 %v1887_v22, %v1799_v62 }
 0x162   :  { %2116 = vmatmul.bf16.vlgmr.msra.gmra.mxu3 %v2498_v55 }
 0x163   :  { %2205 = vmatmul.bf16.vlgmr.msra.gmra.mxu0 %v2502_v46 }
 0x164   :  { %v1712_v13 = vpop.f32.mrf.mxu2 }
 0x165   :  { %v1713_v4 = vadd.f32 %v1712_v13, %v1624_v2  ;;  %v1801_v18 = vpop.f32.mrf.mxu3  ;;  %v3351_v13 = vld [vmem:[%s5010_s0 + $0xa4] sm:$0xf] }
 0x166   :  { %v1625_v43 = vpop.f32.mrf.mxu1 }
 0x167   :  { %v1802_v9 = vadd.f32 %v1801_v18, %v1713_v4  ;;  %v1626_v22 = vadd.f32 %v1625_v43, %v4106_v50  ;;  %v2538_v50 = vor.u32 %v3348_v38, %v2537_v23  ;;  %v2559_v4 = vld [vmem:[%s5010_s0 + $0xc4] sm:$0xf0]  ;;  %v3356_v43 = vld [vmem:[%s5010_s0 + $0xc8] sm:$0xf0] }
 0x168   :  { %v1892_v47 = vpop.f32.mrf.mxu0  ;;  %v2562_v57 = vor.u32 %v3351_v13, %v2559_v4  ;;  %v2603_v13 = vld [vmem:[%s5010_s0 + $0x114] sm:$0xf0] }
 0x169   :  { %v4525_v60 = vadd.f32 %v1890_v63, %v1802_v9  ;;  %v3352_v9 = vld [vmem:[%s5010_s0 + $0xac] sm:$0xf]  ;;  %v2609_v4 = vld [vmem:[%s5010_s0 + $0xf8] sm:$0xf] }
 0x16c   :  { %v1714_v24 = vpop.f32.mrf.mxu2 }
 0x16d   :  { %v1715_v61 = vadd.f32 %v1714_v24, %v1626_v22  ;;  %v1803_v26 = vpop.f32.mrf.mxu3  ;;  %v2570_v24 = vor.u32 %v3352_v9, %v2567_v12 }
 0x16e   :  { %v1628_v10 = vpop.f32.mrf.mxu1 }
 0x16f   :  { %v1804_v41 = vadd.f32 %v1803_v26, %v1715_v61  ;;  %v1629_v49 = vadd.f32 %v1628_v10, %v4114_v58  ;;  %v2565_v58 = vld [vmem:[%s5010_s0 + $0xa8] sm:$0xf] }
 0x170   :  { %v1895_v42 = vpop.f32.mrf.mxu0  ;;  %v2566_v23 = vor.u32 %v3356_v43, %v2565_v58  ;;  %v3366_v58 = vld [vmem:[%s5010_s0 + $0x118] sm:$0xf0] }
 0x171   :  { %1943 = vmatmul.bf16.gmra.mxu1 %v2526_v27  ;;  %2032 = vmatmul.bf16.gmra.mxu2 %v2530_v29  ;;  %v4546_v48 = vadd.f32 %v1892_v47, %v1804_v41 }
 0x172   :  { %2121 = vmatmul.bf16.gmra.mxu3 %v2534_v35 }
 0x173   :  { %2210 = vmatmul.bf16.gmra.mxu0 %v2538_v50 }
 0x174   :  { %v1717_v54 = vpop.f32.mrf.mxu2 }
 0x175   :  { %v1718_v55 = vadd.f32 %v1717_v54, %v1629_v49  ;;  %v1806_v46 = vpop.f32.mrf.mxu3  ;;  %v3360_v54 = vld [vmem:[%s5010_s0 + $0xec] sm:$0xf] }
 0x176   :  { %v1630_v62 = vpop.f32.mrf.mxu1 }
 0x177   :  { %v1807_v63 = vadd.f32 %v1806_v46, %v1718_v55  ;;  %v1631_v47 = vadd.f32 %v1630_v62, %v4146_v6  ;;  %v2574_v6 = vor.u32 %v3357_v36, %v2573_v14  ;;  %v2595_v55 = vld [vmem:[%s5010_s0 + $0x10c] sm:$0xf0]  ;;  %v3365_v62 = vld [vmem:[%s5010_s0 + $0x110] sm:$0xf0] }
 0x178   :  { %v1897_v2 = vpop.f32.mrf.mxu0  ;;  %v2598_v12 = vor.u32 %v3360_v54, %v2595_v55  ;;  %v2639_v54 = vld [vmem:[%s5010_s0 + $0x15c] sm:$0xf0] }
 0x179   :  { %v4555_v18 = vadd.f32 %v1895_v42, %v1807_v63  ;;  %v3361_v63 = vld [vmem:[%s5010_s0 + $0xf4] sm:$0xf]  ;;  %v2645_v55 = vld [vmem:[%s5010_s0 + $0x140] sm:$0xf] }
 0x17c   :  { %v1719_v15 = vpop.f32.mrf.mxu2 }
 0x17d   :  { %v1720_v20 = vadd.f32 %v1719_v15, %v1631_v47  ;;  %v1808_v22 = vpop.f32.mrf.mxu3  ;;  %v2606_v15 = vor.u32 %v3361_v63, %v2603_v13 }
 0x17e   :  { %v1633_v38 = vpop.f32.mrf.mxu1 }
 0x17f   :  { %v1809_v61 = vadd.f32 %v1808_v22, %v1720_v20  ;;  %v1634_v29 = vadd.f32 %v1633_v38, %v4160_v16  ;;  %v2601_v16 = vld [vmem:[%s5010_s0 + $0xf0] sm:$0xf] }
 0x180   :  { %v1900_v26 = vpop.f32.mrf.mxu0  ;;  %v2602_v14 = vor.u32 %v3365_v62, %v2601_v16  ;;  %v3375_v16 = vld [vmem:[%s5010_s0 + $0x160] sm:$0xf0] }
 0x181   :  { %1948 = vmatmul.bf16.gmra.mxu1 %v2562_v57  ;;  %2037 = vmatmul.bf16.gmra.mxu2 %v2566_v23  ;;  %v4576_v27 = vadd.f32 %v1897_v2, %v1809_v61 }
 0x182   :  { %2126 = vmatmul.bf16.gmra.mxu3 %v2570_v24 }
 0x183   :  { %2215 = vmatmul.bf16.gmra.mxu0 %v2574_v6 }
 0x184   :  { %v1722_v10 = vpop.f32.mrf.mxu2 }
 0x185   :  { %v1723_v35 = vadd.f32 %v1722_v10, %v1634_v29  ;;  %v1811_v50 = vpop.f32.mrf.mxu3  ;;  %v3369_v10 = vld [vmem:[%s5010_s0 + $0x134] sm:$0xf] }
 0x186   :  { %v1635_v41 = vpop.f32.mrf.mxu1 }
 0x187   :  { %v1812_v42 = vadd.f32 %v1811_v50, %v1723_v35  ;;  %v1636_v2 = vadd.f32 %v1635_v41, %v4198_v31  ;;  %v2610_v31 = vor.u32 %v3366_v58, %v2609_v4  ;;  %v2631_v35 = vld [vmem:[%s5010_s0 + $0x154] sm:$0xf0]  ;;  %v3374_v41 = vld [vmem:[%s5010_s0 + $0x158] sm:$0xf0] }
 0x188   :  { %v1902_v49 = vpop.f32.mrf.mxu0  ;;  %v2634_v13 = vor.u32 %v3369_v10, %v2631_v35  ;;  %v2675_v10 = vld [vmem:[%s5010_s0 + $0x1a4] sm:$0xf0] }
 0x189   :  { %v4585_v46 = vadd.f32 %v1900_v26, %v1812_v42  ;;  %v3370_v42 = vld [vmem:[%s5010_s0 + $0x13c] sm:$0xf]  ;;  %v2681_v35 = vld [vmem:[%s5010_s0 + $0x188] sm:$0xf] }
 0x18c   :  { %v1724_v43 = vpop.f32.mrf.mxu2 }
 0x18d   :  { %v1725_v9 = vadd.f32 %v1724_v43, %v1636_v2  ;;  %v1813_v47 = vpop.f32.mrf.mxu3  ;;  %v2642_v43 = vor.u32 %v3370_v42, %v2639_v54 }
 0x18e   :  { %v1638_v36 = vpop.f32.mrf.mxu1 }
 0x18f   :  { %v1814_v20 = vadd.f32 %v1813_v47, %v1725_v9  ;;  %v1639_v23 = vadd.f32 %v1638_v36, %v4206_v44  ;;  %v2637_v44 = vld [vmem:[%s5010_s0 + $0x138] sm:$0xf] }
 0x190   :  { %v1905_v22 = vpop.f32.mrf.mxu0  ;;  %v2638_v4 = vor.u32 %v3374_v41, %v2637_v44  ;;  %v3384_v44 = vld [vmem:[%s5010_s0 + $0x1a8] sm:$0xf0] }
 0x191   :  { %1953 = vmatmul.bf16.gmra.mxu1 %v2598_v12  ;;  %2042 = vmatmul.bf16.gmra.mxu2 %v2602_v14  ;;  %v4606_v57 = vadd.f32 %v1902_v49, %v1814_v20 }
 0x192   :  { %2131 = vmatmul.bf16.gmra.mxu3 %v2606_v15 }
 0x193   :  { %2220 = vmatmul.bf16.gmra.mxu0 %v2610_v31 }
 0x194   :  { %v1727_v38 = vpop.f32.mrf.mxu2 }
 0x195   :  { %v1728_v24 = vadd.f32 %v1727_v38, %v1639_v23  ;;  %v1816_v6 = vpop.f32.mrf.mxu3  ;;  %v3378_v38 = vld [vmem:[%s5010_s0 + $0x17c] sm:$0xf] }
 0x196   :  { %v1640_v61 = vpop.f32.mrf.mxu1 }
 0x197   :  { %v1817_v26 = vadd.f32 %v1816_v6, %v1728_v24  ;;  %v1641_v49 = vadd.f32 %v1640_v61, %v4238_v0  ;;  %v2646_v0 = vor.u32 %v3375_v16, %v2645_v55  ;;  %v2667_v24 = vld [vmem:[%s5010_s0 + $0x19c] sm:$0xf0]  ;;  %v3383_v61 = vld [vmem:[%s5010_s0 + $0x1a0] sm:$0xf0] }
 0x198   :  { %v1907_v29 = vpop.f32.mrf.mxu0  ;;  %v2670_v54 = vor.u32 %v3378_v38, %v2667_v24  ;;  %v2711_v38 = vld [vmem:[%s5010_s0 + $0x1ec] sm:$0xf0] }
 0x199   :  { %v4615_v50 = vadd.f32 %v1905_v22, %v1817_v26  ;;  %v3379_v26 = vld [vmem:[%s5010_s0 + $0x184] sm:$0xf]  ;;  %v2717_v24 = vld [vmem:[%s5010_s0 + $0x1d0] sm:$0xf] }
 0x19c   :  { %v1729_v62 = vpop.f32.mrf.mxu2 }
 0x19d   :  { %v1730_v63 = vadd.f32 %v1729_v62, %v1641_v49  ;;  %v1818_v2 = vpop.f32.mrf.mxu3  ;;  %v2678_v62 = vor.u32 %v3379_v26, %v2675_v10 }
 0x19e   :  { %v1643_v58 = vpop.f32.mrf.mxu1 }
 0x19f   :  { %v1819_v9 = vadd.f32 %v1818_v2, %v1730_v63  ;;  %v1644_v14 = vadd.f32 %v1643_v58, %v4070_v37  ;;  %v2673_v37 = vld [vmem:[%s5010_s0 + $0x180] sm:$0xf] }
 0x1a0   :  { %v1910_v47 = vpop.f32.mrf.mxu0  ;;  %v2674_v55 = vor.u32 %v3383_v61, %v2673_v37  ;;  %v3393_v37 = vld [vmem:[%s5010_s0 + $0x1f0] sm:$0xf0] }
 0x1a1   :  { %1958 = vmatmul.bf16.gmra.mxu1 %v2634_v13  ;;  %2047 = vmatmul.bf16.gmra.mxu2 %v2638_v4  ;;  %v4636_v12 = vadd.f32 %v1907_v29, %v1819_v9 }
 0x1a2   :  { %2136 = vmatmul.bf16.gmra.mxu3 %v2642_v43 }
 0x1a3   :  { %2225 = vmatmul.bf16.gmra.mxu0 %v2646_v0 }
 0x1a4   :  { %v1732_v36 = vpop.f32.mrf.mxu2 }
 0x1a5   :  { %v1733_v15 = vadd.f32 %v1732_v36, %v1644_v14  ;;  %v1821_v31 = vpop.f32.mrf.mxu3  ;;  %v3387_v36 = vld [vmem:[%s5010_s0 + $0x1c4] sm:$0xf] }
 0x1a6   :  { %v1645_v20 = vpop.f32.mrf.mxu1 }
 0x1a7   :  { %v1822_v22 = vadd.f32 %v1821_v31, %v1733_v15  ;;  %v1646_v29 = vadd.f32 %v1645_v20, %v4108_v51  ;;  %v2682_v51 = vor.u32 %v3384_v44, %v2681_v35  ;;  %v2703_v15 = vld [vmem:[%s5010_s0 + $0x1e4] sm:$0xf0]  ;;  %v3392_v20 = vld [vmem:[%s5010_s0 + $0x1e8] sm:$0xf0] }
 0x1a8   :  { %v1912_v23 = vpop.f32.mrf.mxu0  ;;  %v2706_v10 = vor.u32 %v3387_v36, %v2703_v15  ;;  %v2747_v36 = vld [vmem:[%s5010_s0 + $0x234] sm:$0xf0] }
 0x1a9   :  { %v4645_v6 = vadd.f32 %v1910_v47, %v1822_v22  ;;  %v3388_v22 = vld [vmem:[%s5010_s0 + $0x1cc] sm:$0xf]  ;;  %v2753_v15 = vld [vmem:[%s5010_s0 + $0x218] sm:$0xf] }
 0x1ac   :  { %v1734_v41 = vpop.f32.mrf.mxu2 }
 0x1ad   :  { %v1735_v42 = vadd.f32 %v1734_v41, %v1646_v29  ;;  %v1823_v49 = vpop.f32.mrf.mxu3  ;;  %v2714_v41 = vor.u32 %v3388_v22, %v2711_v38 }
 0x1ae   :  { %v1648_v16 = vpop.f32.mrf.mxu1 }
 0x1af   :  { %v1824_v63 = vadd.f32 %v1823_v49, %v1735_v42  ;;  %v1649_v4 = vadd.f32 %v1648_v16, %v4116_v59  ;;  %v2709_v59 = vld [vmem:[%s5010_s0 + $0x1c8] sm:$0xf] }
 0x1b0   :  { %v1915_v2 = vpop.f32.mrf.mxu0  ;;  %v2710_v35 = vor.u32 %v3392_v20, %v2709_v59  ;;  %v3402_v59 = vld [vmem:[%s5010_s0 + $0x238] sm:$0xf0] }
 0x1b1   :  { %1963 = vmatmul.bf16.gmra.mxu1 %v2670_v54  ;;  %2052 = vmatmul.bf16.gmra.mxu2 %v2674_v55  ;;  %v4666_v13 = vadd.f32 %v1912_v23, %v1824_v63 }
 0x1b2   :  { %2141 = vmatmul.bf16.gmra.mxu3 %v2678_v62 }
 0x1b3   :  { %2230 = vmatmul.bf16.gmra.mxu0 %v2682_v51 }
 0x1b4   :  { %v1737_v58 = vpop.f32.mrf.mxu2 }
 0x1b5   :  { %v1738_v43 = vadd.f32 %v1737_v58, %v1649_v4  ;;  %v1826_v0 = vpop.f32.mrf.mxu3  ;;  %v3396_v58 = vld [vmem:[%s5010_s0 + $0x20c] sm:$0xf] }
 0x1b6   :  { %v1650_v9 = vpop.f32.mrf.mxu1 }
 0x1b7   :  { %v1827_v47 = vadd.f32 %v1826_v0, %v1738_v43  ;;  %v1651_v23 = vadd.f32 %v1650_v9, %v4148_v7  ;;  %v2718_v7 = vor.u32 %v3393_v37, %v2717_v24  ;;  %v2739_v43 = vld [vmem:[%s5010_s0 + $0x22c] sm:$0xf0]  ;;  %v3401_v9 = vld [vmem:[%s5010_s0 + $0x230] sm:$0xf0] }
 0x1b8   :  { %v1917_v14 = vpop.f32.mrf.mxu0  ;;  %v2742_v38 = vor.u32 %v3396_v58, %v2739_v43  ;;  %v2783_v58 = vld [vmem:[%s5010_s0 + $0x27c] sm:$0xf0] }
 0x1b9   :  { %v4675_v31 = vadd.f32 %v1915_v2, %v1827_v47  ;;  %v3397_v47 = vld [vmem:[%s5010_s0 + $0x214] sm:$0xf]  ;;  %v2789_v43 = vld [vmem:[%s5010_s0 + $0x260] sm:$0xf] }
 0x1bc   :  { %v1739_v61 = vpop.f32.mrf.mxu2 }
 0x1bd   :  { %v1740_v26 = vadd.f32 %v1739_v61, %v1651_v23  ;;  %v1828_v29 = vpop.f32.mrf.mxu3  ;;  %v2750_v61 = vor.u32 %v3397_v47, %v2747_v36 }
 0x1be   :  { %v1653_v44 = vpop.f32.mrf.mxu1 }
 0x1bf   :  { %v1829_v42 = vadd.f32 %v1828_v29, %v1740_v26  ;;  %v1654_v55 = vadd.f32 %v1653_v44, %v4162_v17  ;;  %v2745_v17 = vld [vmem:[%s5010_s0 + $0x210] sm:$0xf] }
 0x1c0   :  { %v1920_v49 = vpop.f32.mrf.mxu0  ;;  %v2746_v24 = vor.u32 %v3401_v9, %v2745_v17  ;;  %v3411_v17 = vld [vmem:[%s5010_s0 + $0x280] sm:$0xf0] }
 0x1c1   :  { %1968 = vmatmul.bf16.gmra.mxu1 %v2706_v10  ;;  %2057 = vmatmul.bf16.gmra.mxu2 %v2710_v35  ;;  %v4696_v54 = vadd.f32 %v1917_v14, %v1829_v42 }
 0x1c2   :  { %2146 = vmatmul.bf16.gmra.mxu3 %v2714_v41 }
 0x1c3   :  { %2235 = vmatmul.bf16.gmra.mxu0 %v2718_v7 }
 0x1c4   :  { %v1742_v16 = vpop.f32.mrf.mxu2 }
 0x1c5   :  { %v1743_v62 = vadd.f32 %v1742_v16, %v1654_v55  ;;  %v1831_v51 = vpop.f32.mrf.mxu3  ;;  %v3405_v16 = vld [vmem:[%s5010_s0 + $0x254] sm:$0xf] }
 0x1c6   :  { %v1655_v63 = vpop.f32.mrf.mxu1 }
 0x1c7   :  { %v1832_v2 = vadd.f32 %v1831_v51, %v1743_v62  ;;  %v1656_v14 = vadd.f32 %v1655_v63, %v4200_v32  ;;  %v2754_v32 = vor.u32 %v3402_v59, %v2753_v15  ;;  %v2775_v62 = vld [vmem:[%s5010_s0 + $0x274] sm:$0xf0]  ;;  %v3410_v63 = vld [vmem:[%s5010_s0 + $0x278] sm:$0xf0] }
 0x1c8   :  { %v1922_v4 = vpop.f32.mrf.mxu0  ;;  %v2778_v36 = vor.u32 %v3405_v16, %v2775_v62  ;;  %v2825_v16 = vld [vmem:[%s5010_s0 + $0x2a8] sm:$0xf]  ;;  %v3420_v62 = vld [vmem:[%s5010_s0 + $0x2c8] sm:$0xf0] }
 0x1c9   :  { %v4705_v0 = vadd.f32 %v1920_v49, %v1832_v2  ;;  %v3406_v2 = vld [vmem:[%s5010_s0 + $0x25c] sm:$0xf] }
 0x1cc   :  { %v1744_v20 = vpop.f32.mrf.mxu2 }
 0x1cd   :  { %v1745_v22 = vadd.f32 %v1744_v20, %v1656_v14  ;;  %v1833_v23 = vpop.f32.mrf.mxu3  ;;  %v2786_v20 = vor.u32 %v3406_v2, %v2783_v58 }
 0x1ce   :  { %v1658_v37 = vpop.f32.mrf.mxu1 }
 0x1cf   :  { %v1834_v26 = vadd.f32 %v1833_v23, %v1745_v22  ;;  %v1659_v35 = vadd.f32 %v1658_v37, %v4208_v45  ;;  %v2781_v45 = vld [vmem:[%s5010_s0 + $0x258] sm:$0xf] }
 0x1d0   :  { %v1925_v29 = vpop.f32.mrf.mxu0  ;;  %v2782_v15 = vor.u32 %v3410_v63, %v2781_v45 }
 0x1d1   :  { %1973 = vmatmul.bf16.gmra.mxu1 %v2742_v38  ;;  %2062 = vmatmul.bf16.gmra.mxu2 %v2746_v24  ;;  %v4726_v10 = vadd.f32 %v1922_v4, %v1834_v26 }
 0x1d2   :  { %2151 = vmatmul.bf16.gmra.mxu3 %v2750_v61 }
 0x1d3   :  { %2240 = vmatmul.bf16.gmra.mxu0 %v2754_v32 }
 0x1d4   :  { %v1747_v44 = vpop.f32.mrf.mxu2 }
 0x1d5   :  { %v1748_v41 = vadd.f32 %v1747_v44, %v1659_v35  ;;  %v1836_v7 = vpop.f32.mrf.mxu3  ;;  %v3414_v35 = vld [vmem:[%s5010_s0 + $0x29c] sm:$0xf]  ;;  %v2811_v44 = vld [vmem:[%s5010_s0 + $0x2bc] sm:$0xf0] }
 0x1d6   :  { %v1660_v42 = vpop.f32.mrf.mxu1 }
 0x1d7   :  { %v1837_v49 = vadd.f32 %v1836_v7, %v1748_v41  ;;  %v1661_v4 = vadd.f32 %v1660_v42, %v4240_v1  ;;  %v2790_v1 = vor.u32 %v3411_v17, %v2789_v43  ;;  %v2817_v7 = vld [vmem:[%s5010_s0 + $0x2a0] sm:$0xf]  ;;  %v3415_v42 = vld [vmem:[%s5010_s0 + $0x2a4] sm:$0xf] }
 0x1d8   :  { %v1927_v55 = vpop.f32.mrf.mxu0 }
 0x1d9   :  { %v4735_v51 = vadd.f32 %v1925_v29, %v1837_v49 }
 0x1dc   :  { %v1749_v9 = vpop.f32.mrf.mxu2 }
 0x1dd   :  { %v1750_v47 = vadd.f32 %v1749_v9, %v1661_v4  ;;  %v1838_v14 = vpop.f32.mrf.mxu3  ;;  %v2814_v4 = vor.u32 %v3414_v35, %v2811_v44  ;;  %v2826_v9 = vor.u32 %v3420_v62, %v2825_v16  ;;  %v3423_v44 = vld [vmem:[%s5010_s0 + $0x2e4] sm:$0xf]  ;;  %v2855_v16 = vld [vmem:[%s5010_s0 + $0x30c] sm:$0xf0] }
 0x1de   :  { %v1939_v59 = vpop.f32.mrf.mxu1  ;;  %v2861_v62 = vld [vmem:[%s5010_s0 + $0x2f0] sm:$0xf] }
 0x1df   :  { %v1839_v22 = vadd.f32 %v1838_v14, %v1750_v47  ;;  %v1940_v24 = vadd.f32 %v1939_v59, %v4262_v40  ;;  %v3419_v40 = vld [vmem:[%s5010_s0 + $0x2c0] sm:$0xf0] }
 0x1e0   :  { %v2206_v23 = vpop.f32.mrf.mxu0  ;;  %v2818_v58 = vor.u32 %v3419_v40, %v2817_v7  ;;  %v3428_v7 = vld [vmem:[%s5010_s0 + $0x308] sm:$0xf0] }
 0x1e1   :  { %1978 = vmatmul.bf16.gmra.mxu1 %v2778_v36  ;;  %2067 = vmatmul.bf16.gmra.mxu2 %v2782_v15  ;;  %v4756_v38 = vadd.f32 %v1927_v55, %v1839_v22  ;;  %v2819_v55 = vld [vmem:[%s5010_s0 + $0x2c4] sm:$0xf0]  ;;  %v3424_v40 = vld [vmem:[%s5010_s0 + $0x2ec] sm:$0xf] }
 0x1e2   :  { %2156 = vmatmul.bf16.gmra.mxu3 %v2786_v20 }
 0x1e3   :  { %2245 = vmatmul.bf16.gmra.mxu0 %v2790_v1 }
 0x1e4   :  { %v2028_v37 = vpop.f32.mrf.mxu2 }
 0x1e5   :  { %v2117_v61 = vpop.f32.mrf.mxu3  ;;  %v2029_v32 = vadd.f32 %v2028_v37, %v1940_v24 }
 0x1e6   :  { %v1941_v26 = vpop.f32.mrf.mxu1 }
 0x1e7   :  { %v2118_v41 = vadd.f32 %v2117_v61, %v2029_v32  ;;  %v1942_v49 = vadd.f32 %v1941_v26, %v4283_v8  ;;  %v2822_v8 = vor.u32 %v3415_v42, %v2819_v55 }
 0x1e8   :  { %v2208_v29 = vpop.f32.mrf.mxu0 }
 0x1e9   :  { %v2207_v43 = vadd.f32 %v2206_v23, %v2118_v41  ;;  %v2853_v41 = vld [vmem:[%s5010_s0 + $0x2e8] sm:$0xf] }
 0x1eb   :  { %v2387_v15 = vmul.f32 %v2207_v43, %v2207_v43 }
 0x1ec   :  { %v2030_v45 = vpop.f32.mrf.mxu2 }
 0x1ed   :  { %v2031_v63 = vadd.f32 %v2030_v45, %v1942_v49  ;;  %v2119_v2 = vpop.f32.mrf.mxu3  ;;  %v3429_v45 = vld [vmem:[%s5010_s0 + $0x310] sm:$0xf0] }
 0x1ee   :  { %v1944_v17 = vpop.f32.mrf.mxu1 }
 0x1ef   :  { %v2120_v47 = vadd.f32 %v2119_v2, %v2031_v63  ;;  %v1945_v22 = vadd.f32 %v1944_v17, %v4292_v33  ;;  %v2847_v33 = vld [vmem:[%s5010_s0 + $0x304] sm:$0xf0]  ;;  %v2854_v17 = vor.u32 %v3428_v7, %v2853_v41  ;;  %v3433_v41 = vld [vmem:[%s5010_s0 + $0x334] sm:$0xf] }
 0x1f0   :  { %v2211_v14 = vpop.f32.mrf.mxu0 }
 0x1f1   :  { %v2209_v36 = vadd.f32 %v2208_v29, %v2120_v47  ;;  %1983 = vmatmul.bf16.gmra.mxu1 %v2814_v4  ;;  %2072 = vmatmul.bf16.gmra.mxu2 %v2818_v58 }
 0x1f2   :  { %2161 = vmatmul.bf16.gmra.mxu3 %v2822_v8 }
 0x1f3   :  { %2250 = vmatmul.bf16.gmra.mxu0 %v2826_v9  ;;  %v3550_v59 = vpack.c.bf16 %v2209_v36, %v2207_v43  ;;  %v2350_v20 = vadd.f32 %v2209_v36, %v2207_v43  ;;  %v2388_v1 = vmul.f32 %v2209_v36, %v2209_v36  ;;  %v2850_v43 = vor.u32 %v3423_v44, %v2847_v33  ;;  %v2889_v44 = vld [vmem:[%s5010_s0 + $0x330] sm:$0xf]  ;;  %v3437_v33 = vld [vmem:[%s5010_s0 + $0x350] sm:$0xf0] }
 0x1f4   :  { %v2033_v24 = vpop.f32.mrf.mxu2  ;;  %v2862_v9 = vor.u32 %v3429_v45, %v2861_v62 }
 0x1f5   :  { %3551 = vst [vmem:[%s5011_s2] sm:$0xff] %v3550_v59   ;;  %v2419_v23 = vadd.f32 %v2388_v1, %v2387_v15  ;;  %v2034_v37 = vadd.f32 %v2033_v24, %v1945_v22  ;;  %v2122_v61 = vpop.f32.mrf.mxu3 }
 0x1f6   :  { %v1946_v32 = vpop.f32.mrf.mxu1 }
 0x1f7   :  { %v2123_v26 = vadd.f32 %v2122_v61, %v2034_v37  ;;  %v1947_v55 = vadd.f32 %v1946_v32, %v4313_v56  ;;  %v2858_v56 = vor.u32 %v3424_v40, %v2855_v16  ;;  %v3438_v16 = vld [vmem:[%s5010_s0 + $0x358] sm:$0xf0] }
 0x1f8   :  { %v2213_v29 = vpop.f32.mrf.mxu0 }
 0x1f9   :  { %v2212_v35 = vadd.f32 %v2211_v14, %v2123_v26 }
 0x1fb   :  { %v2351_v42 = vadd.f32 %v2350_v20, %v2212_v35  ;;  %v2389_v49 = vmul.f32 %v2212_v35, %v2212_v35 }
 0x1fc   :  { %v2035_v63 = vpop.f32.mrf.mxu2 }
 0x1fd   :  { %v2420_v2 = vadd.f32 %v2419_v23, %v2389_v49  ;;  %v2036_v4 = vadd.f32 %v2035_v63, %v1947_v55  ;;  %v2124_v58 = vpop.f32.mrf.mxu3  ;;  %v2891_v49 = vld [vmem:[%s5010_s0 + $0x354] sm:$0xf0] }
 0x1fe   :  { %v1949_v8 = vpop.f32.mrf.mxu1  ;;  %v2897_v55 = vld [vmem:[%s5010_s0 + $0x338] sm:$0xf] }
 0x1ff   :  { %v2125_v47 = vadd.f32 %v2124_v58, %v2036_v4  ;;  %v1950_v1 = vadd.f32 %v1949_v8, %v4334_v19  ;;  %v2883_v19 = vld [vmem:[%s5010_s0 + $0x34c] sm:$0xf0]  ;;  %v2890_v58 = vor.u32 %v3437_v33, %v2889_v44 }
 0x200   :  { %v2216_v14 = vpop.f32.mrf.mxu0 }
 0x201   :  { %v2214_v36 = vadd.f32 %v2213_v29, %v2125_v47  ;;  %1988 = vmatmul.bf16.gmra.mxu1 %v2850_v43  ;;  %2077 = vmatmul.bf16.gmra.mxu2 %v2854_v17  ;;  %v2898_v17 = vor.u32 %v3438_v16, %v2897_v55 }
 0x202   :  { %2166 = vmatmul.bf16.gmra.mxu3 %v2858_v56 }
 0x203   :  { %2255 = vmatmul.bf16.gmra.mxu0 %v2862_v9  ;;  %v3555_v15 = vpack.c.bf16 %v2214_v36, %v2212_v35  ;;  %v2352_v59 = vadd.f32 %v2351_v42, %v2214_v36  ;;  %v2390_v20 = vmul.f32 %v2214_v36, %v2214_v36  ;;  %v3432_v35 = vld [vmem:[%s5010_s0 + $0x32c] sm:$0xf] }
 0x204   :  { %v2038_v22 = vpop.f32.mrf.mxu2  ;;  %v2886_v4 = vor.u32 %v3432_v35, %v2883_v19  ;;  %v3442_v35 = vld [vmem:[%s5010_s0 + $0x37c] sm:$0xf] }
 0x205   :  { %3627 = vst [vmem:[%s5011_s2 + $0x8] sm:$0xff] %v3555_v15   ;;  %v2421_v24 = vadd.f32 %v2420_v2, %v2390_v20  ;;  %v2039_v23 = vadd.f32 %v2038_v22, %v1950_v1  ;;  %v2127_v37 = vpop.f32.mrf.mxu3 }
 0x206   :  { %v1951_v61 = vpop.f32.mrf.mxu1 }
 0x207   :  { %v2128_v32 = vadd.f32 %v2127_v37, %v2039_v23  ;;  %v1952_v42 = vadd.f32 %v1951_v61, %v4355_v52  ;;  %v2894_v52 = vor.u32 %v3433_v41, %v2891_v49  ;;  %v2927_v41 = vld [vmem:[%s5010_s0 + $0x39c] sm:$0xf0] }
 0x208   :  { %v2218_v26 = vpop.f32.mrf.mxu0 }
 0x209   :  { %v2217_v29 = vadd.f32 %v2216_v14, %v2128_v32  ;;  %v3441_v32 = vld [vmem:[%s5010_s0 + $0x374] sm:$0xf] }
 0x20b   :  { %v2353_v7 = vadd.f32 %v2352_v59, %v2217_v29  ;;  %v2391_v40 = vmul.f32 %v2217_v29, %v2217_v29 }
 0x20c   :  { %v2040_v62 = vpop.f32.mrf.mxu2 }
 0x20d   :  { %v2422_v45 = vadd.f32 %v2421_v24, %v2391_v40  ;;  %v2041_v63 = vadd.f32 %v2040_v62, %v1952_v42  ;;  %v2129_v2 = vpop.f32.mrf.mxu3  ;;  %v3447_v40 = vld [vmem:[%s5010_s0 + $0x3a0] sm:$0xf0] }
 0x20e   :  { %v1954_v43 = vpop.f32.mrf.mxu1 }
 0x20f   :  { %v2130_v8 = vadd.f32 %v2129_v2, %v2041_v63  ;;  %v1955_v15 = vadd.f32 %v1954_v43, %v4364_v5  ;;  %v2919_v5 = vld [vmem:[%s5010_s0 + $0x394] sm:$0xf0] }
 0x210   :  { %v2221_v56 = vpop.f32.mrf.mxu0  ;;  %v2922_v62 = vor.u32 %v3441_v32, %v2919_v5 }
 0x211   :  { %v2219_v9 = vadd.f32 %v2218_v26, %v2130_v8  ;;  %1993 = vmatmul.bf16.gmra.mxu1 %v2886_v4  ;;  %2082 = vmatmul.bf16.gmra.mxu2 %v2890_v58  ;;  %v2925_v26 = vld [vmem:[%s5010_s0 + $0x378] sm:$0xf] }
 0x212   :  { %2171 = vmatmul.bf16.gmra.mxu3 %v2894_v52 }
 0x213   :  { %2260 = vmatmul.bf16.gmra.mxu0 %v2898_v17  ;;  %v3560_v47 = vpack.c.bf16 %v2219_v9, %v2217_v29  ;;  %v2354_v14 = vadd.f32 %v2353_v7, %v2219_v9  ;;  %v2392_v36 = vmul.f32 %v2219_v9, %v2219_v9  ;;  %v3446_v29 = vld [vmem:[%s5010_s0 + $0x398] sm:$0xf0]  ;;  %v2933_v7 = vld [vmem:[%s5010_s0 + $0x380] sm:$0xf] }
 0x214   :  { %v2043_v59 = vpop.f32.mrf.mxu2  ;;  %v2934_v2 = vor.u32 %v3447_v40, %v2933_v7 }
 0x215   :  { %3628 = vst [vmem:[%s5011_s2 + $0x10] sm:$0xff] %v3560_v47   ;;  %v2423_v20 = vadd.f32 %v2422_v45, %v2392_v36  ;;  %v2044_v1 = vadd.f32 %v2043_v59, %v1955_v15  ;;  %v2132_v22 = vpop.f32.mrf.mxu3  ;;  %v2926_v45 = vor.u32 %v3446_v29, %v2925_v26  ;;  %v2963_v26 = vld [vmem:[%s5010_s0 + $0x3e4] sm:$0xf0] }
 0x216   :  { %v1956_v24 = vpop.f32.mrf.mxu1  ;;  %v2969_v29 = vld [vmem:[%s5010_s0 + $0x3c8] sm:$0xf] }
 0x217   :  { %v2133_v23 = vadd.f32 %v2132_v22, %v2044_v1  ;;  %v1957_v33 = vadd.f32 %v1956_v24, %v4384_v28  ;;  %v2930_v28 = vor.u32 %v3442_v35, %v2927_v41  ;;  %v3450_v22 = vld [vmem:[%s5010_s0 + $0x3bc] sm:$0xf]  ;;  %v2961_v24 = vld [vmem:[%s5010_s0 + $0x3c0] sm:$0xf]  ;;  %v3456_v35 = vld [vmem:[%s5010_s0 + $0x3e8] sm:$0xf0] }
 0x218   :  { %v2223_v37 = vpop.f32.mrf.mxu0 }
 0x219   :  { %v2222_v61 = vadd.f32 %v2221_v56, %v2133_v23  ;;  %v3455_v23 = vld [vmem:[%s5010_s0 + $0x3e0] sm:$0xf0] }
 0x21a   :  { %v2962_v40 = vor.u32 %v3455_v23, %v2961_v24  ;;  %v3465_v24 = vld [vmem:[%s5010_s0 + $0x430] sm:$0xf0] }
 0x21b   :  { %v2355_v19 = vadd.f32 %v2354_v14, %v2222_v61  ;;  %v2393_v44 = vmul.f32 %v2222_v61, %v2222_v61 }
 0x21c   :  { %v2045_v42 = vpop.f32.mrf.mxu2 }
 0x21d   :  { %v2424_v49 = vadd.f32 %v2423_v20, %v2393_v44  ;;  %v2046_v55 = vadd.f32 %v2045_v42, %v1957_v33  ;;  %v2134_v16 = vpop.f32.mrf.mxu3 }
 0x21e   :  { %v1959_v63 = vpop.f32.mrf.mxu1 }
 0x21f   :  { %v2135_v4 = vadd.f32 %v2134_v16, %v2046_v55  ;;  %v1960_v56 = vadd.f32 %v1959_v63, %v4405_v3  ;;  %v2955_v3 = vld [vmem:[%s5010_s0 + $0x3dc] sm:$0xf0] }
 0x220   :  { %v2226_v58 = vpop.f32.mrf.mxu0  ;;  %v2958_v7 = vor.u32 %v3450_v22, %v2955_v3  ;;  %v2999_v22 = vld [vmem:[%s5010_s0 + $0x42c] sm:$0xf0] }
 0x221   :  { %v2224_v43 = vadd.f32 %v2223_v37, %v2135_v4  ;;  %1998 = vmatmul.bf16.gmra.mxu1 %v2922_v62  ;;  %2087 = vmatmul.bf16.gmra.mxu2 %v2926_v45  ;;  %v3451_v37 = vld [vmem:[%s5010_s0 + $0x3c4] sm:$0xf]  ;;  %v3005_v3 = vld [vmem:[%s5010_s0 + $0x410] sm:$0xf] }
 0x222   :  { %2176 = vmatmul.bf16.gmra.mxu3 %v2930_v28 }
 0x223   :  { %2265 = vmatmul.bf16.gmra.mxu0 %v2934_v2  ;;  %v3565_v52 = vpack.c.bf16 %v2224_v43, %v2222_v61  ;;  %v2356_v17 = vadd.f32 %v2355_v19, %v2224_v43  ;;  %v2394_v8 = vmul.f32 %v2224_v43, %v2224_v43 }
 0x224   :  { %v2048_v9 = vpop.f32.mrf.mxu2 }
 0x225   :  { %3629 = vst [vmem:[%s5011_s2 + $0x18] sm:$0xff] %v3565_v52   ;;  %v2425_v47 = vadd.f32 %v2424_v49, %v2394_v8  ;;  %v2049_v14 = vadd.f32 %v2048_v9, %v1960_v56  ;;  %v2137_v36 = vpop.f32.mrf.mxu3  ;;  %v2970_v49 = vor.u32 %v3456_v35, %v2969_v29  ;;  %v3006_v35 = vor.u32 %v3465_v24, %v3005_v3 }
 0x226   :  { %v1961_v15 = vpop.f32.mrf.mxu1 }
 0x227   :  { %v2138_v59 = vadd.f32 %v2137_v36, %v2049_v14  ;;  %v1962_v5 = vadd.f32 %v1961_v15, %v4426_v25  ;;  %v2966_v25 = vor.u32 %v3451_v37, %v2963_v26  ;;  %v2997_v14 = vld [vmem:[%s5010_s0 + $0x408] sm:$0xf]  ;;  %v3464_v36 = vld [vmem:[%s5010_s0 + $0x428] sm:$0xf0] }
 0x228   :  { %v2228_v20 = vpop.f32.mrf.mxu0  ;;  %v3460_v15 = vld [vmem:[%s5010_s0 + $0x40c] sm:$0xf]  ;;  %v2998_v26 = vor.u32 %v3464_v36, %v2997_v14 }
 0x229   :  { %v2227_v1 = vadd.f32 %v2226_v58, %v2138_v59 }
 0x22b   :  { %v2357_v61 = vadd.f32 %v2356_v17, %v2227_v1  ;;  %v2395_v32 = vmul.f32 %v2227_v1, %v2227_v1 }
 0x22c   :  { %v2050_v19 = vpop.f32.mrf.mxu2 }
 0x22d   :  { %v2426_v44 = vadd.f32 %v2425_v47, %v2395_v32  ;;  %v2051_v33 = vadd.f32 %v2050_v19, %v1962_v5  ;;  %v2139_v41 = vpop.f32.mrf.mxu3  ;;  %v3459_v47 = vld [vmem:[%s5010_s0 + $0x404] sm:$0xf] }
 0x22e   :  { %v1964_v42 = vpop.f32.mrf.mxu1 }
 0x22f   :  { %v2140_v55 = vadd.f32 %v2139_v41, %v2051_v33  ;;  %v1965_v2 = vadd.f32 %v1964_v42, %v4435_v53  ;;  %v2991_v53 = vld [vmem:[%s5010_s0 + $0x424] sm:$0xf0] }
 0x230   :  { %v2231_v16 = vpop.f32.mrf.mxu0  ;;  %v2994_v5 = vor.u32 %v3459_v47, %v2991_v53  ;;  %v3474_v47 = vld [vmem:[%s5010_s0 + $0x478] sm:$0xf0] }
 0x231   :  { %v2229_v62 = vadd.f32 %v2228_v20, %v2140_v55  ;;  %2003 = vmatmul.bf16.gmra.mxu1 %v2958_v7  ;;  %2092 = vmatmul.bf16.gmra.mxu2 %v2962_v40 }
 0x232   :  { %2181 = vmatmul.bf16.gmra.mxu3 %v2966_v25 }
 0x233   :  { %2270 = vmatmul.bf16.gmra.mxu0 %v2970_v49  ;;  %v3570_v45 = vpack.c.bf16 %v2229_v62, %v2227_v1  ;;  %v2358_v63 = vadd.f32 %v2357_v61, %v2229_v62  ;;  %v2396_v28 = vmul.f32 %v2229_v62, %v2229_v62 }
 0x234   :  { %v2053_v4 = vpop.f32.mrf.mxu2 }
 0x235   :  { %3630 = vst [vmem:[%s5011_s2 + $0x20] sm:$0xff] %v3570_v45   ;;  %v2427_v58 = vadd.f32 %v2426_v44, %v2396_v28  ;;  %v2054_v43 = vadd.f32 %v2053_v4, %v1965_v2  ;;  %v2142_v52 = vpop.f32.mrf.mxu3  ;;  %v3468_v2 = vld [vmem:[%s5010_s0 + $0x44c] sm:$0xf]  ;;  %v3033_v4 = vld [vmem:[%s5010_s0 + $0x450] sm:$0xf] }
 0x236   :  { %v1966_v17 = vpop.f32.mrf.mxu1 }
 0x237   :  { %v2143_v8 = vadd.f32 %v2142_v52, %v2054_v43  ;;  %v1967_v1 = vadd.f32 %v1966_v17, %v4456_v21  ;;  %v3002_v21 = vor.u32 %v3460_v15, %v2999_v22  ;;  %v3469_v43 = vld [vmem:[%s5010_s0 + $0x454] sm:$0xf] }
 0x238   :  { %v2233_v56 = vpop.f32.mrf.mxu0 }
 0x239   :  { %v2232_v9 = vadd.f32 %v2231_v16, %v2143_v8 }
 0x23b   :  { %v2359_v59 = vadd.f32 %v2358_v63, %v2232_v9  ;;  %v2397_v20 = vmul.f32 %v2232_v9, %v2232_v9 }
 0x23c   :  { %v2055_v23 = vpop.f32.mrf.mxu2 }
 0x23d   :  { %v2428_v37 = vadd.f32 %v2427_v58, %v2397_v20  ;;  %v2056_v61 = vadd.f32 %v2055_v23, %v1967_v1  ;;  %v2144_v32 = vpop.f32.mrf.mxu3  ;;  %v3473_v58 = vld [vmem:[%s5010_s0 + $0x470] sm:$0xf0] }
 0x23e   :  { %v1969_v29 = vpop.f32.mrf.mxu1  ;;  %v3034_v20 = vor.u32 %v3473_v58, %v3033_v4 }
 0x23f   :  { %v2145_v19 = vadd.f32 %v2144_v32, %v2056_v61  ;;  %v1970_v42 = vadd.f32 %v1969_v29, %v4465_v34  ;;  %v3027_v34 = vld [vmem:[%s5010_s0 + $0x46c] sm:$0xf0] }
 0x240   :  { %v2236_v44 = vpop.f32.mrf.mxu0 }
 0x241   :  { %v2234_v33 = vadd.f32 %v2233_v56, %v2145_v19  ;;  %2008 = vmatmul.bf16.gmra.mxu1 %v2994_v5  ;;  %2097 = vmatmul.bf16.gmra.mxu2 %v2998_v26  ;;  %v3035_v56 = vld [vmem:[%s5010_s0 + $0x474] sm:$0xf0] }
 0x242   :  { %2186 = vmatmul.bf16.gmra.mxu3 %v3002_v21 }
 0x243   :  { %2275 = vmatmul.bf16.gmra.mxu0 %v3006_v35  ;;  %v3575_v41 = vpack.c.bf16 %v2234_v33, %v2232_v9  ;;  %v2360_v7 = vadd.f32 %v2359_v59, %v2234_v33  ;;  %v2398_v40 = vmul.f32 %v2234_v33, %v2234_v33  ;;  %v3041_v9 = vld [vmem:[%s5010_s0 + $0x458] sm:$0xf]  ;;  %v3030_v59 = vor.u32 %v3468_v2, %v3027_v34 }
 0x244   :  { %v2058_v25 = vpop.f32.mrf.mxu2  ;;  %v3042_v22 = vor.u32 %v3474_v47, %v3041_v9 }
 0x245   :  { %3631 = vst [vmem:[%s5011_s2 + $0x28] sm:$0xff] %v3575_v41   ;;  %v2429_v49 = vadd.f32 %v2428_v37, %v2398_v40  ;;  %v2059_v55 = vadd.f32 %v2058_v25, %v1970_v42  ;;  %v2147_v16 = vpop.f32.mrf.mxu3 }
 0x246   :  { %v1971_v62 = vpop.f32.mrf.mxu1 }
 0x247   :  { %v2148_v45 = vadd.f32 %v2147_v16, %v2059_v55  ;;  %v1972_v8 = vadd.f32 %v1971_v62, %v4486_v11  ;;  %v3038_v11 = vor.u32 %v3469_v43, %v3035_v56 }
 0x248   :  { %v2238_v63 = vpop.f32.mrf.mxu0 }
 0x249   :  { %v2237_v28 = vadd.f32 %v2236_v44, %v2148_v45 }
 0x24b   :  { %v2361_v52 = vadd.f32 %v2360_v7, %v2237_v28  ;;  %v2399_v17 = vmul.f32 %v2237_v28, %v2237_v28 }
 0x24c   :  { %v2060_v53 = vpop.f32.mrf.mxu2 }
 0x24d   :  { %v2430_v14 = vadd.f32 %v2429_v49, %v2399_v17  ;;  %v2061_v36 = vadd.f32 %v2060_v53, %v1972_v8  ;;  %v2149_v15 = vpop.f32.mrf.mxu3 }
 0x24e   :  { %v1974_v1 = vpop.f32.mrf.mxu1 }
 0x24f   :  { %v2150_v3 = vadd.f32 %v2149_v15, %v2061_v36  ;;  %v1975_v5 = vadd.f32 %v1974_v1, %v4495_v39 }
 0x250   :  { %v2241_v24 = vpop.f32.mrf.mxu0 }
 0x251   :  { %v2239_v23 = vadd.f32 %v2238_v63, %v2150_v3  ;;  %2013 = vmatmul.bf16.gmra.mxu1 %v3030_v59  ;;  %2102 = vmatmul.bf16.gmra.mxu2 %v3034_v20 }
 0x252   :  { %2191 = vmatmul.bf16.gmra.mxu3 %v3038_v11 }
 0x253   :  { %2280 = vmatmul.bf16.gmra.mxu0 %v3042_v22  ;;  %v3580_v37 = vpack.c.bf16 %v2239_v23, %v2237_v28  ;;  %v2362_v61 = vadd.f32 %v2361_v52, %v2239_v23  ;;  %v2400_v32 = vmul.f32 %v2239_v23, %v2239_v23 }
 0x254   :  { %v2063_v26 = vpop.f32.mrf.mxu2 }
 0x255   :  { %3632 = vst [vmem:[%s5011_s2 + $0x30] sm:$0xff] %v3580_v37   ;;  %v2431_v29 = vadd.f32 %v2430_v14, %v2400_v32  ;;  %v2064_v21 = vadd.f32 %v2063_v26, %v1975_v5  ;;  %v2152_v35 = vpop.f32.mrf.mxu3 }
 0x256   :  { %v1976_v19 = vpop.f32.mrf.mxu1 }
 0x257   :  { %v2153_v44 = vadd.f32 %v2152_v35, %v2064_v21  ;;  %v1977_v42 = vadd.f32 %v1976_v19, %v4516_v30 }
 0x258   :  { %v2243_v33 = vpop.f32.mrf.mxu0 }
 0x259   :  { %v2242_v41 = vadd.f32 %v2241_v24, %v2153_v44 }
 0x25b   :  { %v2363_v7 = vadd.f32 %v2362_v61, %v2242_v41  ;;  %v2401_v40 = vmul.f32 %v2242_v41, %v2242_v41 }
 0x25c   :  { %v2065_v25 = vpop.f32.mrf.mxu2 }
 0x25d   :  { %v2432_v49 = vadd.f32 %v2431_v29, %v2401_v40  ;;  %v2066_v55 = vadd.f32 %v2065_v25, %v1977_v42  ;;  %v2154_v39 = vpop.f32.mrf.mxu3 }
 0x25e   :  { %v1979_v16 = vpop.f32.mrf.mxu1 }
 0x25f   :  { %v2155_v62 = vadd.f32 %v2154_v39, %v2066_v55  ;;  %v1980_v4 = vadd.f32 %v1979_v16, %v4525_v60 }
 0x260   :  { %v2246_v45 = vpop.f32.mrf.mxu0 }
 0x261   :  { %v2244_v63 = vadd.f32 %v2243_v33, %v2155_v62 }
 0x263   :  { %v3585_v28 = vpack.c.bf16 %v2244_v63, %v2242_v41  ;;  %v2364_v2 = vadd.f32 %v2363_v7, %v2244_v63  ;;  %v2402_v34 = vmul.f32 %v2244_v63, %v2244_v63 }
 0x264   :  { %v2068_v58 = vpop.f32.mrf.mxu2 }
 0x265   :  { %3633 = vst [vmem:[%s5011_s2 + $0x38] sm:$0xff] %v3585_v28   ;;  %v2433_v43 = vadd.f32 %v2432_v49, %v2402_v34  ;;  %v2069_v30 = vadd.f32 %v2068_v58, %v1980_v4  ;;  %v2157_v52 = vpop.f32.mrf.mxu3 }
 0x266   :  { %v1981_v17 = vpop.f32.mrf.mxu1 }
 0x267   :  { %v2158_v8 = vadd.f32 %v2157_v52, %v2069_v30  ;;  %v1982_v14 = vadd.f32 %v1981_v17, %v4546_v48 }
 0x268   :  { %v2248_v56 = vpop.f32.mrf.mxu0 }
 0x269   :  { %v2247_v9 = vadd.f32 %v2246_v45, %v2158_v8 }
 0x26b   :  { %v2365_v47 = vadd.f32 %v2364_v2, %v2247_v9  ;;  %v2403_v53 = vmul.f32 %v2247_v9, %v2247_v9 }
 0x26c   :  { %v2070_v36 = vpop.f32.mrf.mxu2 }
 0x26d   :  { %v2434_v15 = vadd.f32 %v2433_v43, %v2403_v53  ;;  %v2071_v59 = vadd.f32 %v2070_v36, %v1982_v14  ;;  %v2159_v60 = vpop.f32.mrf.mxu3 }
 0x26e   :  { %v1984_v20 = vpop.f32.mrf.mxu1 }
 0x26f   :  { %v2160_v1 = vadd.f32 %v2159_v60, %v2071_v59  ;;  %v1985_v37 = vadd.f32 %v1984_v20, %v4555_v18 }
 0x270   :  { %v2251_v11 = vpop.f32.mrf.mxu0 }
 0x271   :  { %v2249_v22 = vadd.f32 %v2248_v56, %v2160_v1 }
 0x273   :  { %v3590_v3 = vpack.c.bf16 %v2249_v22, %v2247_v9  ;;  %v2366_v24 = vadd.f32 %v2365_v47, %v2249_v22  ;;  %v2404_v23 = vmul.f32 %v2249_v22, %v2249_v22 }
 0x274   :  { %v2073_v61 = vpop.f32.mrf.mxu2 }
 0x275   :  { %3634 = vst [vmem:[%s5011_s2 + $0x40] sm:$0xff] %v3590_v3   ;;  %v2435_v32 = vadd.f32 %v2434_v15, %v2404_v23  ;;  %v2074_v48 = vadd.f32 %v2073_v61, %v1985_v37  ;;  %v2162_v5 = vpop.f32.mrf.mxu3 }
 0x276   :  { %v1986_v26 = vpop.f32.mrf.mxu1 }
 0x277   :  { %v2163_v29 = vadd.f32 %v2162_v5, %v2074_v48  ;;  %v1987_v33 = vadd.f32 %v1986_v26, %v4576_v27 }
 0x278   :  { %v2253_v21 = vpop.f32.mrf.mxu0 }
 0x279   :  { %v2252_v35 = vadd.f32 %v2251_v11, %v2163_v29 }
 0x27b   :  { %v2367_v19 = vadd.f32 %v2366_v24, %v2252_v35  ;;  %v2405_v44 = vmul.f32 %v2252_v35, %v2252_v35 }
 0x27c   :  { %v2075_v41 = vpop.f32.mrf.mxu2 }
 0x27d   :  { %v2436_v7 = vadd.f32 %v2435_v32, %v2405_v44  ;;  %v2076_v40 = vadd.f32 %v2075_v41, %v1987_v33  ;;  %v2164_v18 = vpop.f32.mrf.mxu3 }
 0x27e   :  { %v1989_v42 = vpop.f32.mrf.mxu1 }
 0x27f   :  { %v2165_v25 = vadd.f32 %v2164_v18, %v2076_v40  ;;  %v1990_v45 = vadd.f32 %v1989_v42, %v4585_v46 }
 0x280   :  { %v2256_v49 = vpop.f32.mrf.mxu0 }
 0x281   :  { %v2254_v55 = vadd.f32 %v2253_v21, %v2165_v25 }
 0x283   :  { %v3595_v39 = vpack.c.bf16 %v2254_v55, %v2252_v35  ;;  %v2368_v16 = vadd.f32 %v2367_v19, %v2254_v55  ;;  %v2406_v62 = vmul.f32 %v2254_v55, %v2254_v55 }
 0x284   :  { %v2078_v63 = vpop.f32.mrf.mxu2 }
 0x285   :  { %3635 = vst [vmem:[%s5011_s2 + $0x48] sm:$0xff] %v3595_v39   ;;  %v2437_v28 = vadd.f32 %v2436_v7, %v2406_v62  ;;  %v2079_v27 = vadd.f32 %v2078_v63, %v1990_v45  ;;  %v2167_v2 = vpop.f32.mrf.mxu3 }
 0x286   :  { %v1991_v34 = vpop.f32.mrf.mxu1 }
 0x287   :  { %v2168_v4 = vadd.f32 %v2167_v2, %v2079_v27  ;;  %v1992_v17 = vadd.f32 %v1991_v34, %v4606_v57 }
 0x288   :  { %v2258_v58 = vpop.f32.mrf.mxu0 }
 0x289   :  { %v2257_v43 = vadd.f32 %v2256_v49, %v2168_v4 }
 0x28b   :  { %v2369_v30 = vadd.f32 %v2368_v16, %v2257_v43  ;;  %v2407_v52 = vmul.f32 %v2257_v43, %v2257_v43 }
 0x28c   :  { %v2080_v8 = vpop.f32.mrf.mxu2 }
 0x28d   :  { %v2438_v56 = vadd.f32 %v2437_v28, %v2407_v52  ;;  %v2081_v9 = vadd.f32 %v2080_v8, %v1992_v17  ;;  %v2169_v46 = vpop.f32.mrf.mxu3 }
 0x28e   :  { %v1994_v47 = vpop.f32.mrf.mxu1 }
 0x28f   :  { %v2170_v53 = vadd.f32 %v2169_v46, %v2081_v9  ;;  %v1995_v20 = vadd.f32 %v1994_v47, %v4615_v50 }
 0x290   :  { %v2261_v14 = vpop.f32.mrf.mxu0 }
 0x291   :  { %v2259_v36 = vadd.f32 %v2258_v58, %v2170_v53 }
 0x293   :  { %v3600_v15 = vpack.c.bf16 %v2259_v36, %v2257_v43  ;;  %v2370_v59 = vadd.f32 %v2369_v30, %v2259_v36  ;;  %v2408_v60 = vmul.f32 %v2259_v36, %v2259_v36 }
 0x294   :  { %v2083_v1 = vpop.f32.mrf.mxu2 }
 0x295   :  { %3636 = vst [vmem:[%s5011_s2 + $0x50] sm:$0xff] %v3600_v15   ;;  %v2439_v11 = vadd.f32 %v2438_v56, %v2408_v60  ;;  %v2084_v57 = vadd.f32 %v2083_v1, %v1995_v20  ;;  %v2172_v22 = vpop.f32.mrf.mxu3 }
 0x296   :  { %v1996_v3 = vpop.f32.mrf.mxu1 }
 0x297   :  { %v2173_v24 = vadd.f32 %v2172_v22, %v2084_v57  ;;  %v1997_v48 = vadd.f32 %v1996_v3, %v4636_v12 }
 0x298   :  { %v2263_v23 = vpop.f32.mrf.mxu0 }
 0x299   :  { %v2262_v37 = vadd.f32 %v2261_v14, %v2173_v24 }
 0x29b   :  { %v2371_v61 = vadd.f32 %v2370_v59, %v2262_v37  ;;  %v2409_v32 = vmul.f32 %v2262_v37, %v2262_v37 }
 0x29c   :  { %v2085_v5 = vpop.f32.mrf.mxu2 }
 0x29d   :  { %v2440_v26 = vadd.f32 %v2439_v11, %v2409_v32  ;;  %v2086_v29 = vadd.f32 %v2085_v5, %v1997_v48  ;;  %v2174_v50 = vpop.f32.mrf.mxu3 }
 0x29e   :  { %v1999_v21 = vpop.f32.mrf.mxu1 }
 0x29f   :  { %v2175_v35 = vadd.f32 %v2174_v50, %v2086_v29  ;;  %v2000_v40 = vadd.f32 %v1999_v21, %v4645_v6 }
 0x2a0   :  { %v2266_v19 = vpop.f32.mrf.mxu0 }
 0x2a1   :  { %v2264_v44 = vadd.f32 %v2263_v23, %v2175_v35 }
 0x2a3   :  { %v3605_v33 = vpack.c.bf16 %v2264_v44, %v2262_v37  ;;  %v2372_v41 = vadd.f32 %v2371_v61, %v2264_v44  ;;  %v2410_v7 = vmul.f32 %v2264_v44, %v2264_v44 }
 0x2a4   :  { %v2088_v18 = vpop.f32.mrf.mxu2 }
 0x2a5   :  { %3637 = vst [vmem:[%s5011_s2 + $0x58] sm:$0xff] %v3605_v33   ;;  %v2441_v42 = vadd.f32 %v2440_v26, %v2410_v7  ;;  %v2089_v12 = vadd.f32 %v2088_v18, %v2000_v40  ;;  %v2177_v25 = vpop.f32.mrf.mxu3 }
 0x2a6   :  { %v2001_v49 = vpop.f32.mrf.mxu1 }
 0x2a7   :  { %v2178_v55 = vadd.f32 %v2177_v25, %v2089_v12  ;;  %v2002_v63 = vadd.f32 %v2001_v49, %v4666_v13 }
 0x2a8   :  { %v2268_v39 = vpop.f32.mrf.mxu0 }
 0x2a9   :  { %v2267_v16 = vadd.f32 %v2266_v19, %v2178_v55 }
 0x2ab   :  { %v2373_v62 = vadd.f32 %v2372_v41, %v2267_v16  ;;  %v2411_v45 = vmul.f32 %v2267_v16, %v2267_v16 }
 0x2ac   :  { %v2090_v28 = vpop.f32.mrf.mxu2 }
 0x2ad   :  { %v2442_v27 = vadd.f32 %v2441_v42, %v2411_v45  ;;  %v2091_v2 = vadd.f32 %v2090_v28, %v2002_v63  ;;  %v2179_v6 = vpop.f32.mrf.mxu3 }
 0x2ae   :  { %v2004_v34 = vpop.f32.mrf.mxu1 }
 0x2af   :  { %v2180_v4 = vadd.f32 %v2179_v6, %v2091_v2  ;;  %v2005_v8 = vadd.f32 %v2004_v34, %v4675_v31 }
 0x2b0   :  { %v2271_v58 = vpop.f32.mrf.mxu0 }
 0x2b1   :  { %v2269_v43 = vadd.f32 %v2268_v39, %v2180_v4 }
 0x2b3   :  { %v3610_v30 = vpack.c.bf16 %v2269_v43, %v2267_v16  ;;  %v2374_v52 = vadd.f32 %v2373_v62, %v2269_v43  ;;  %v2412_v17 = vmul.f32 %v2269_v43, %v2269_v43 }
 0x2b4   :  { %v2093_v56 = vpop.f32.mrf.mxu2 }
 0x2b5   :  { %3638 = vst [vmem:[%s5011_s2 + $0x60] sm:$0xff] %v3610_v30   ;;  %v2443_v9 = vadd.f32 %v2442_v27, %v2412_v17  ;;  %v2094_v13 = vadd.f32 %v2093_v56, %v2005_v8  ;;  %v2182_v46 = vpop.f32.mrf.mxu3 }
 0x2b6   :  { %v2006_v47 = vpop.f32.mrf.mxu1 }
 0x2b7   :  { %v2183_v53 = vadd.f32 %v2182_v46, %v2094_v13  ;;  %v2007_v60 = vadd.f32 %v2006_v47, %v4696_v54 }
 0x2b8   :  { %v2273_v14 = vpop.f32.mrf.mxu0 }
 0x2b9   :  { %v2272_v36 = vadd.f32 %v2271_v58, %v2183_v53 }
 0x2bb   :  { %v2375_v15 = vadd.f32 %v2374_v52, %v2272_v36  ;;  %v2413_v59 = vmul.f32 %v2272_v36, %v2272_v36 }
 0x2bc   :  { %v2095_v20 = vpop.f32.mrf.mxu2 }
 0x2bd   :  { %v2444_v1 = vadd.f32 %v2443_v9, %v2413_v59  ;;  %v2096_v11 = vadd.f32 %v2095_v20, %v2007_v60  ;;  %v2184_v31 = vpop.f32.mrf.mxu3 }
 0x2be   :  { %v2009_v57 = vpop.f32.mrf.mxu1 }
 0x2bf   :  { %v2185_v22 = vadd.f32 %v2184_v31, %v2096_v11  ;;  %v2010_v32 = vadd.f32 %v2009_v57, %v4705_v0 }
 0x2c0   :  { %v2276_v24 = vpop.f32.mrf.mxu0 }
 0x2c1   :  { %v2274_v3 = vadd.f32 %v2273_v14, %v2185_v22 }
 0x2c3   :  { %v3615_v23 = vpack.c.bf16 %v2274_v3, %v2272_v36  ;;  %v2376_v37 = vadd.f32 %v2375_v15, %v2274_v3  ;;  %v2414_v61 = vmul.f32 %v2274_v3, %v2274_v3 }
 0x2c4   :  { %v2098_v48 = vpop.f32.mrf.mxu2 }
 0x2c5   :  { %3639 = vst [vmem:[%s5011_s2 + $0x68] sm:$0xff] %v3615_v23   ;;  %v2445_v5 = vadd.f32 %v2444_v1, %v2414_v61  ;;  %v2099_v54 = vadd.f32 %v2098_v48, %v2010_v32  ;;  %v2187_v26 = vpop.f32.mrf.mxu3 }
 0x2c6   :  { %v2011_v29 = vpop.f32.mrf.mxu1 }
 0x2c7   :  { %v2188_v50 = vadd.f32 %v2187_v26, %v2099_v54  ;;  %v2012_v44 = vadd.f32 %v2011_v29, %v4726_v10 }
 0x2c8   :  { %v2278_v33 = vpop.f32.mrf.mxu0 }
 0x2c9   :  { %v2277_v21 = vadd.f32 %v2276_v24, %v2188_v50 }
 0x2cb   :  { %v2377_v35 = vadd.f32 %v2376_v37, %v2277_v21  ;;  %v2415_v19 = vmul.f32 %v2277_v21, %v2277_v21 }
 0x2cc   :  { %v2100_v41 = vpop.f32.mrf.mxu2 }
 0x2cd   :  { %v2446_v7 = vadd.f32 %v2445_v5, %v2415_v19  ;;  %v2101_v40 = vadd.f32 %v2100_v41, %v2012_v44  ;;  %v2189_v0 = vpop.f32.mrf.mxu3 }
 0x2ce   :  { %v2014_v18 = vpop.f32.mrf.mxu1 }
 0x2cf   :  { %v2190_v42 = vadd.f32 %v2189_v0, %v2101_v40  ;;  %v2015_v39 = vadd.f32 %v2014_v18, %v4735_v51 }
 0x2d0   :  { %v2281_v63 = vpop.f32.mrf.mxu0 }
 0x2d1   :  { %v2279_v12 = vadd.f32 %v2278_v33, %v2190_v42 }
 0x2d3   :  { %v3620_v25 = vpack.c.bf16 %v2279_v12, %v2277_v21  ;;  %v2378_v49 = vadd.f32 %v2377_v35, %v2279_v12  ;;  %v2416_v55 = vmul.f32 %v2279_v12, %v2279_v12 }
 0x2d4   :  { %v2103_v16 = vpop.f32.mrf.mxu2 }
 0x2d5   :  { %3640 = vst [vmem:[%s5011_s2 + $0x70] sm:$0xff] %v3620_v25   ;;  %v2447_v62 = vadd.f32 %v2446_v7, %v2416_v55  ;;  %v2104_v10 = vadd.f32 %v2103_v16, %v2015_v39  ;;  %v2192_v45 = vpop.f32.mrf.mxu3 }
 0x2d6   :  { %v2016_v27 = vpop.f32.mrf.mxu1 }
 0x2d7   :  { %v2193_v28 = vadd.f32 %v2192_v45, %v2104_v10  ;;  %v2017_v4 = vadd.f32 %v2016_v27, %v4756_v38 }
 0x2d8   :  { %v2283_v17 = vpop.f32.mrf.mxu0 }
 0x2d9   :  { %v2282_v2 = vadd.f32 %v2281_v63, %v2193_v28 }
 0x2db   :  { %v2379_v6 = vadd.f32 %v2378_v49, %v2282_v2  ;;  %v2417_v34 = vmul.f32 %v2282_v2, %v2282_v2 }
 0x2dc   :  { %v2105_v58 = vpop.f32.mrf.mxu2 }
 0x2dd   :  { %v2448_v43 = vadd.f32 %v2447_v62, %v2417_v34  ;;  %v2106_v30 = vadd.f32 %v2105_v58, %v2017_v4  ;;  %v2194_v51 = vpop.f32.mrf.mxu3 }
 0x2df   :  { %v2195_v52 = vadd.f32 %v2194_v51, %v2106_v30 }
 0x2e1   :  { %v2284_v8 = vadd.f32 %v2283_v17, %v2195_v52 }
 0x2e3   :  { %v3625_v56 = vpack.c.bf16 %v2284_v8, %v2282_v2  ;;  %v2380_v9 = vadd.f32 %v2379_v6, %v2284_v8  ;;  %v2418_v13 = vmul.f32 %v2284_v8, %v2284_v8 }
 0x2e5   :  { %3641 = vst [vmem:[%s5011_s2 + $0x78] sm:$0xff] %v3625_v56   ;;  %v2381_v46 = vrot.slane %v2380_v9, 4  ;;  %v2449_v47 = vadd.f32 %v2448_v43, %v2418_v13 }
 0x2e7   :  { %v2382_v53 = vadd.f32 %v2381_v46, %v2380_v9  ;;  %v2450_v14 = vrot.slane %v2449_v47, 4 }
 0x2e9   :  { %v2383_v36 = vrot.slane %v2382_v53, 2  ;;  %v2451_v38 = vadd.f32 %v2450_v14, %v2449_v47 }
 0x2eb   :  { %v2384_v15 = vadd.f32 %v2383_v36, %v2382_v53  ;;  %v2452_v59 = vrot.slane %v2451_v38, 2 }
 0x2ed   :  { %v2385_v60 = vrot.slane %v2384_v15, 1  ;;  %v2453_v20 = vadd.f32 %v2452_v59, %v2451_v38 }
 0x2ef   :  { %v2454_v1 = vrot.slane %v2453_v20, 1  ;;  %v2386_v11 = vadd.f32 %v2385_v60, %v2384_v15 }
 0x2f1   :  { %v2455_v31 = vadd.f32 %v2454_v1, %v2453_v20 }
 0x2f3   :  { %v2457_v57 = vsel %vm2456_vm0, %v2386_v11, %v2455_v31 }
 0x2f4   :  { %2458 = vst [vmem:[%s5012_s3] sm:$0x3] %v2457_v57 }

</bundles_post_ra>
